<compile_context>
chip_gen: v6e
topology: v6e:2x2x1
jax: 0.10.0
libtpu: 0.0.40
codegen_flags: <defaults>
</compile_context>

<pallas_src>
import jax
import jax.numpy as jnp
from jax.experimental import pallas as pl
from jax.experimental.pallas import tpu as pltpu

# ----------------------------- model config (small) -----------------------------
B = 2            # batch
C = 3            # image channels
IMG = 32         # image spatial size
PATCH = 16       # patch size  -> grid 2x2 = 4 patches
GRID = IMG // PATCH
NPATCH = GRID * GRID
LVIS = NPATCH + 1          # vision sequence (class token + patches)
CPP = C * PATCH * PATCH    # im2col patch length
VW = 32                    # vision width
VH = 4                     # vision heads
VLAYERS = 2                # vision transformer layers

CTX = 8                    # text context length
VOCAB = 64                 # vocab size
TW = 32                    # text width
TH = 4                     # text heads
TLAYERS = 2                # text transformer layers

EMBED = 16                 # shared embedding (projection) dim

NEG_INF = -1e9             # causal-mask fill value (finite to stay NaN-safe)
MXU_DTYPE = jnp.bfloat16   # matmul operand dtype (f32 accumulation)

BLOCK_KEYS = ("ln1_g", "ln1_b", "in_w", "in_b", "out_w", "out_b",
              "ln2_g", "ln2_b", "fc_w", "fc_b", "pj_w", "pj_b")


# ----------------------------- in-kernel helpers -----------------------------
def _mm(a, b):
    # a @ b, bf16 operands, f32 accumulate
    return jax.lax.dot_general(
        a.astype(MXU_DTYPE), b.astype(MXU_DTYPE),
        (((1,), (0,)), ((), ())), preferred_element_type=jnp.float32)


def _mm_nt(a, b):
    # a @ b.T  ('qd,kd->qk'), bf16 operands, f32 accumulate
    return jax.lax.dot_general(
        a.astype(MXU_DTYPE), b.astype(MXU_DTYPE),
        (((1,), (1,)), ((), ())), preferred_element_type=jnp.float32)


def _ln(x, g_row, b_row):
    mu = jnp.mean(x, axis=-1, keepdims=True)
    var = jnp.mean(jnp.square(x - mu), axis=-1, keepdims=True)
    return (x - mu) * jax.lax.rsqrt(var + 1e-5) * g_row + b_row


def _softmax(s):
    s = s - jnp.max(s, axis=-1, keepdims=True)
    p = jnp.exp(s)
    return p * pl.reciprocal(jnp.sum(p, axis=-1, keepdims=True), approx=True)


def _transformer_block(x, mask, heads, l, blk):
    (ln1_g, ln1_b, in_w, in_b, out_w, out_b,
     ln2_g, ln2_b, fc_w, fc_b, pj_w, pj_b) = blk
    L, D = x.shape
    Dh = D // heads
    scale = float(Dh) ** -0.5

    # --- attention branch ---
    h = _ln(x, ln1_g[l], ln1_b[l])
    qkv = _mm(h, in_w[l]) + in_b[l]                       # [L, 3D]
    q = qkv[:, 0:D]
    k = qkv[:, D:2 * D]
    v = qkv[:, 2 * D:3 * D]
    w_out = out_w[l]

    attn = None
    for hh in range(heads):
        lo, hi = hh * Dh, (hh + 1) * Dh
        s = _mm_nt(q[:, lo:hi] * scale, k[:, lo:hi])      # [L, L]
        if mask is not None:
            s = s + mask
        p = _softmax(s)
        o_h = _mm(p, v[:, lo:hi])                         # [L, Dh]
        term = _mm(o_h, w_out[lo:hi, :])                  # head-concat fused into out-proj
        attn = term if attn is None else attn + term
    x = x + attn + out_b[l]

    # --- MLP branch ---
    h = _ln(x, ln2_g[l], ln2_b[l])
    m = _mm(h, fc_w[l]) + fc_b[l]
    m = m * jax.nn.sigmoid(1.702 * m)                     # QuickGELU (f32 elementwise)
    m = _mm(m, pj_w[l]) + pj_b[l]
    return x + m


# ----------------------------- fused tower kernels -----------------------------
def _vision_tower_kernel(
        patch_ref, conv_w_ref, prefix_ref, lnpre_g_ref, lnpre_b_ref,
        ln1_g, ln1_b, in_w, in_b, out_w, out_b, ln2_g, ln2_b,
        fc_w, fc_b, pj_w, pj_b,
        lnpost_g_ref, lnpost_b_ref, vproj_ref, o_ref):
    blk = (ln1_g, ln1_b, in_w, in_b, out_w, out_b,
           ln2_g, ln2_b, fc_w, fc_b, pj_w, pj_b)
    # patch row 0 is all-zeros (class-token slot); prefix = pos with cls folded into row 0
    x = _mm(patch_ref[0], conv_w_ref[...]) + prefix_ref[...]     # [LVIS, VW]
    x = _ln(x, lnpre_g_ref[...], lnpre_b_ref[...])
    for l in range(VLAYERS):
        x = _transformer_block(x, None, VH, l, blk)
    cls = _ln(x[0:1, :], lnpost_g_ref[...], lnpost_b_ref[...])   # [1, VW]
    o_ref[0] = _mm(cls, vproj_ref[...])                          # [1, EMBED]


def _text_tower_kernel(
        x_ref, onehot_ref,
        ln1_g, ln1_b, in_w, in_b, out_w, out_b, ln2_g, ln2_b,
        fc_w, fc_b, pj_w, pj_b,
        lnf_g_ref, lnf_b_ref, tproj_ref, o_ref):
    blk = (ln1_g, ln1_b, in_w, in_b, out_w, out_b,
           ln2_g, ln2_b, fc_w, fc_b, pj_w, pj_b)
    x = x_ref[0]                                                 # [CTX, TW]
    rows = jax.lax.broadcasted_iota(jnp.int32, (CTX, CTX), 0)
    cols = jax.lax.broadcasted_iota(jnp.int32, (CTX, CTX), 1)
    mask = jnp.where(cols > rows, NEG_INF, 0.0).astype(jnp.float32)
    for l in range(TLAYERS):
        x = _transformer_block(x, mask, TH, l, blk)
    x = _ln(x, lnf_g_ref[...], lnf_b_ref[...])
    # exact EOT-row select via one-hot multiply + sublane reduce (f32, no gather)
    x_eot = jnp.sum(x * onehot_ref[0], axis=0, keepdims=True)    # [1, TW]
    o_ref[0] = _mm(x_eot, tproj_ref[...])                        # [1, EMBED]


def _logits_kernel(img_ref, txt_ref, ls_ref, o_ref):
    imf = img_ref[...]
    txf = txt_ref[...]
    imf = imf * jax.lax.rsqrt(jnp.sum(imf * imf, axis=-1, keepdims=True) + 1e-12)
    txf = txf * jax.lax.rsqrt(jnp.sum(txf * txf, axis=-1, keepdims=True) + 1e-12)
    scale = jnp.exp(ls_ref[0])                                   # scalar from SMEM
    o_ref[...] = scale * jax.lax.dot_general(
        imf, txf, (((1,), (1,)), ((), ())), preferred_element_type=jnp.float32)


# ----------------------------- pallas_call wrappers -----------------------------
def _rep_spec(a):
    nd = a.ndim
    return pl.BlockSpec(a.shape, lambda b, _nd=nd: (0,) * _nd)   # same block every step


def vision_tower(params, patches_aug):
    Bq = patches_aug.shape[0]
    prefix = params["v_pos"].at[0].add(params["v_cls"])          # cls folded into pos row 0
    weights = ([params["v_conv_w"], prefix,
                params["v_ln_pre_g"], params["v_ln_pre_b"]]
               + [params["v_blocks"][k] for k in BLOCK_KEYS]
               + [params["v_ln_post_g"], params["v_ln_post_b"], params["v_proj"]])
    out = pl.pallas_call(
        _vision_tower_kernel,
        out_shape=jax.ShapeDtypeStruct((Bq, 1, EMBED), jnp.float32),
        grid=(Bq,),
        in_specs=[pl.BlockSpec((1, LVIS, CPP), lambda b: (b, 0, 0))]
                 + [_rep_spec(a) for a in weights],
        out_specs=pl.BlockSpec((1, 1, EMBED), lambda b: (b, 0, 0)),
        compiler_params=pltpu.CompilerParams(dimension_semantics=("parallel",)),
    )(patches_aug, *weights)
    return out.reshape(Bq, EMBED)


def text_tower(params, x_text, onehot):
    Bq = x_text.shape[0]
    weights = ([params["t_blocks"][k] for k in BLOCK_KEYS]
               + [params["t_ln_f_g"], params["t_ln_f_b"], params["t_proj"]])
    out = pl.pallas_call(
        _text_tower_kernel,
        out_shape=jax.ShapeDtypeStruct((Bq, 1, EMBED), jnp.float32),
        grid=(Bq,),
        in_specs=[pl.BlockSpec((1, CTX, TW), lambda b: (b, 0, 0)),
                  pl.BlockSpec((1, CTX, 1), lambda b: (b, 0, 0))]
                 + [_rep_spec(a) for a in weights],
        out_specs=pl.BlockSpec((1, 1, EMBED), lambda b: (b, 0, 0)),
        compiler_params=pltpu.CompilerParams(dimension_semantics=("parallel",)),
    )(x_text, onehot, *weights)
    return out.reshape(Bq, EMBED)


def clip_logits(img_feat, txt_feat, logit_scale):
    Bi, _ = img_feat.shape
    Bt, _ = txt_feat.shape
    return pl.pallas_call(
        _logits_kernel,
        out_shape=jax.ShapeDtypeStruct((Bi, Bt), jnp.float32),
        in_specs=[pl.BlockSpec(memory_space=pltpu.MemorySpace.VMEM),
                  pl.BlockSpec(memory_space=pltpu.MemorySpace.VMEM),
                  pl.BlockSpec(memory_space=pltpu.MemorySpace.SMEM)],
        out_specs=pl.BlockSpec(memory_space=pltpu.MemorySpace.VMEM),
    )(img_feat, txt_feat, logit_scale.reshape(1))


# ----------------------------- parameter init -----------------------------
def init_params(key):
    keys = iter(jax.random.split(key, 32))

    def nrm(shape, std=0.02):
        return (std * jax.random.normal(next(keys), shape)).astype(jnp.float32)

    def stacked_blocks(width, nlayers):
        return dict(
            ln1_g=jnp.ones((nlayers, 1, width), jnp.float32),
            ln1_b=jnp.zeros((nlayers, 1, width), jnp.float32),
            in_w=nrm((nlayers, width, 3 * width)),          # fused QKV projection
            in_b=jnp.zeros((nlayers, 1, 3 * width), jnp.float32),
            out_w=nrm((nlayers, width, width)),
            out_b=jnp.zeros((nlayers, 1, width), jnp.float32),
            ln2_g=jnp.ones((nlayers, 1, width), jnp.float32),
            ln2_b=jnp.zeros((nlayers, 1, width), jnp.float32),
            fc_w=nrm((nlayers, width, 4 * width)),
            fc_b=jnp.zeros((nlayers, 1, 4 * width), jnp.float32),
            pj_w=nrm((nlayers, 4 * width, width)),
            pj_b=jnp.zeros((nlayers, 1, width), jnp.float32),
        )

    return dict(
        # vision tower
        v_conv_w=nrm((CPP, VW)),                            # conv1 (bias=False), im2col layout
        v_cls=nrm((VW,)),
        v_pos=nrm((LVIS, VW)),
        v_ln_pre_g=jnp.ones((1, VW), jnp.float32),
        v_ln_pre_b=jnp.zeros((1, VW), jnp.float32),
        v_blocks=stacked_blocks(VW, VLAYERS),
        v_ln_post_g=jnp.ones((1, VW), jnp.float32),
        v_ln_post_b=jnp.zeros((1, VW), jnp.float32),
        v_proj=nrm((VW, EMBED)),
        # text tower
        t_tok_emb=nrm((VOCAB, TW)),
        t_pos=nrm((CTX, TW)),
        t_blocks=stacked_blocks(TW, TLAYERS),
        t_ln_f_g=jnp.ones((1, TW), jnp.float32),
        t_ln_f_b=jnp.zeros((1, TW), jnp.float32),
        t_proj=nrm((TW, EMBED)),
        # logit scale (CLIP init: log(1/0.07))
        logit_scale=jnp.array(jnp.log(1.0 / 0.07), jnp.float32),
    )


# ----------------------------- model forward (glue + kernels) -----------------------------
def encode_image(params, img):
    Bq, Cc, H, W = img.shape
    P = PATCH
    Gh, Gw = H // P, W // P
    # im2col: non-overlapping patches, channel-major within a patch (matches Conv2d weight layout)
    patches = (img.reshape(Bq, Cc, Gh, P, Gw, P)
                  .transpose(0, 2, 4, 1, 3, 5)
                  .reshape(Bq, Gh * Gw, Cc * P * P))
    # prepend an all-zero row -> class-token slot (cls/pos added inside the kernel via prefix)
    patches_aug = jnp.concatenate(
        [jnp.zeros((Bq, 1, Cc * P * P), jnp.float32), patches], axis=1)   # [B, LVIS, CPP]
    return vision_tower(params, patches_aug)                              # [B, EMBED]


def encode_text(params, tokens):
    Bq, L = tokens.shape
    x = jnp.take(params["t_tok_emb"], tokens, axis=0) + params["t_pos"][None]   # glue gather
    eot = jnp.argmax(tokens, axis=-1)                    # EOT token has the highest id
    onehot = jax.nn.one_hot(eot, L, dtype=jnp.float32).reshape(Bq, L, 1)
    return text_tower(params, x, onehot)                 # [B, EMBED]


def clip_forward(params, img, tokens):
    """Returns logits_per_image, matching CLIPOutputs.logits_per_image."""
    img_feat = encode_image(params, img)
    txt_feat = encode_text(params, tokens)
    return clip_logits(img_feat, txt_feat, params["logit_scale"])


# ----------------------------- main -----------------------------
if __name__ == "__main__":
    key = jax.random.PRNGKey(0)
    k_param, k_img, k_tok = jax.random.split(key, 3)

    params = init_params(k_param)

    img = jax.random.normal(k_img, (B, C, IMG, IMG), jnp.float32)     # NCHW
    # TODO(synk): clip.tokenize (BPE) has no Pallas equivalent; use synthetic token ids
    # with the max-id "EOT" token in the last slot so argmax picks it, as in CLIP.
    tokens = jax.random.randint(k_tok, (B, CTX), 1, VOCAB - 1, dtype=jnp.int32)
    tokens = tokens.at[:, -1].set(VOCAB - 1)

    logits_per_image = jax.jit(clip_forward)(params, img, tokens)
    jax.block_until_ready(logits_per_image)

    assert logits_per_image.shape == (B, B)
    assert bool(jnp.all(jnp.isfinite(logits_per_image)))
    print("KERNEL_OK")
</pallas_src>

<mosaic_0001>
module attributes {stable_mosaic.version = 11 : i64} {
  func.func @_logits_kernel(%arg0: memref<2x16xf32, #tpu.memory_space<vmem>>, %arg1: memref<2x16xf32, #tpu.memory_space<vmem>>, %arg2: memref<1xf32, #tpu.memory_space<smem>>, %arg3: memref<2x2xf32, #tpu.memory_space<vmem>>) attributes {dimension_semantics = [], scalar_prefetch = 0 : i64, scratch_operands = 0 : i64, tpu.core_type = #tpu.core_type<tc>} {
    %c0 = arith.constant 0 : index
    %c0_0 = arith.constant 0 : index
    %0 = vector.load %arg0[%c0, %c0_0] : memref<2x16xf32, #tpu.memory_space<vmem>>, vector<2x16xf32>
    %c0_1 = arith.constant 0 : index
    %c0_2 = arith.constant 0 : index
    %1 = vector.load %arg1[%c0_1, %c0_2] : memref<2x16xf32, #tpu.memory_space<vmem>>, vector<2x16xf32>
    %2 = arith.mulf %0, %0 : vector<2x16xf32>
    %cst = arith.constant dense<0.000000e+00> : vector<2xf32>
    %3 = vector.multi_reduction <add>, %2, %cst [1] : vector<2x16xf32> to vector<2xf32>
    %4 = vector.shape_cast %3 : vector<2xf32> to vector<2x1xf32>
    %cst_3 = arith.constant 9.99999996E-13 : f32
    %5 = vector.broadcast %cst_3 : f32 to vector<2x1xf32>
    %6 = arith.addf %4, %5 : vector<2x1xf32>
    %7 = math.rsqrt %6 : vector<2x1xf32>
    %8 = vector.broadcast %7 : vector<2x1xf32> to vector<2x16xf32>
    %9 = arith.mulf %0, %8 : vector<2x16xf32>
    %10 = arith.mulf %1, %1 : vector<2x16xf32>
    %cst_4 = arith.constant dense<0.000000e+00> : vector<2xf32>
    %11 = vector.multi_reduction <add>, %10, %cst_4 [1] : vector<2x16xf32> to vector<2xf32>
    %12 = vector.shape_cast %11 : vector<2xf32> to vector<2x1xf32>
    %cst_5 = arith.constant 9.99999996E-13 : f32
    %13 = vector.broadcast %cst_5 : f32 to vector<2x1xf32>
    %14 = arith.addf %12, %13 : vector<2x1xf32>
    %15 = math.rsqrt %14 : vector<2x1xf32>
    %16 = vector.broadcast %15 : vector<2x1xf32> to vector<2x16xf32>
    %17 = arith.mulf %1, %16 : vector<2x16xf32>
    %c0_6 = arith.constant 0 : index
    %18 = memref.load %arg2[%c0_6] : memref<1xf32, #tpu.memory_space<smem>>
    %19 = math.exp %18 : f32
    %cst_7 = arith.constant dense<0.000000e+00> : vector<2x2xf32>
    %20 = tpu.matmul %9, %17, %cst_7 {dimension_numbers = #tpu.dot_dimension_numbers<[1], [1], [0], [0], [0, 0, 1, 0], [], []>} : vector<2x16xf32>, vector<2x16xf32>, vector<2x2xf32> -> vector<2x2xf32>
    %21 = vector.broadcast %19 : f32 to vector<2x2xf32>
    %22 = arith.mulf %21, %20 : vector<2x2xf32>
    %c0_8 = arith.constant 0 : index
    %c0_9 = arith.constant 0 : index
    %23 = vector.load %arg3[%c0_8, %c0_9] : memref<2x2xf32, #tpu.memory_space<vmem>>, vector<2x2xf32>
    tpu.vector_store %arg3[%c0_8, %c0_9], %22 {strides = array<i32>} : memref<2x2xf32, #tpu.memory_space<vmem>>, vector<2x2xf32>,
    return
  }
}

module attributes {stable_mosaic.version = 11 : i64} {
  func.func @_vision_tower_kernel(%arg0: i32, %arg1: memref<1x5x768xf32, #tpu.memory_space<vmem>>, %arg2: memref<768x32xf32, #tpu.memory_space<vmem>>, %arg3: memref<5x32xf32, #tpu.memory_space<vmem>>, %arg4: memref<1x32xf32, #tpu.memory_space<vmem>>, %arg5: memref<1x32xf32, #tpu.memory_space<vmem>>, %arg6: memref<2x1x32xf32, #tpu.memory_space<vmem>>, %arg7: memref<2x1x32xf32, #tpu.memory_space<vmem>>, %arg8: memref<2x32x96xf32, #tpu.memory_space<vmem>>, %arg9: memref<2x1x96xf32, #tpu.memory_space<vmem>>, %arg10: memref<2x32x32xf32, #tpu.memory_space<vmem>>, %arg11: memref<2x1x32xf32, #tpu.memory_space<vmem>>, %arg12: memref<2x1x32xf32, #tpu.memory_space<vmem>>, %arg13: memref<2x1x32xf32, #tpu.memory_space<vmem>>, %arg14: memref<2x32x128xf32, #tpu.memory_space<vmem>>, %arg15: memref<2x1x128xf32, #tpu.memory_space<vmem>>, %arg16: memref<2x128x32xf32, #tpu.memory_space<vmem>>, %arg17: memref<2x1x32xf32, #tpu.memory_space<vmem>>, %arg18: memref<1x32xf32, #tpu.memory_space<vmem>>, %arg19: memref<1x32xf32, #tpu.memory_space<vmem>>, %arg20: memref<32x16xf32, #tpu.memory_space<vmem>>, %arg21: memref<1x1x16xf32, #tpu.memory_space<vmem>>) attributes {dimension_semantics = [#tpu.dimension_semantics<parallel>], iteration_bounds = array<i64: 2>, scalar_prefetch = 0 : i64, scratch_operands = 0 : i64, tpu.core_type = #tpu.core_type<tc>, window_params = [{transform_indices = @transform_0, window_bounds = array<i64: 1, 5, 768>}, {pipeline_mode = #tpu.pipeline_mode<synchronous>, transform_indices = @transform_1, window_bounds = array<i64: 768, 32>}, {pipeline_mode = #tpu.pipeline_mode<synchronous>, transform_indices = @transform_2, window_bounds = array<i64: 5, 32>}, {pipeline_mode = #tpu.pipeline_mode<synchronous>, transform_indices = @transform_3, window_bounds = array<i64: 1, 32>}, {pipeline_mode = #tpu.pipeline_mode<synchronous>, transform_indices = @transform_4, window_bounds = array<i64: 1, 32>}, {pipeline_mode = #tpu.pipeline_mode<synchronous>, transform_indices = @transform_5, window_bounds = array<i64: 2, 1, 32>}, {pipeline_mode = #tpu.pipeline_mode<synchronous>, transform_indices = @transform_6, window_bounds = array<i64: 2, 1, 32>}, {pipeline_mode = #tpu.pipeline_mode<synchronous>, transform_indices = @transform_7, window_bounds = array<i64: 2, 32, 96>}, {pipeline_mode = #tpu.pipeline_mode<synchronous>, transform_indices = @transform_8, window_bounds = array<i64: 2, 1, 96>}, {pipeline_mode = #tpu.pipeline_mode<synchronous>, transform_indices = @transform_9, window_bounds = array<i64: 2, 32, 32>}, {pipeline_mode = #tpu.pipeline_mode<synchronous>, transform_indices = @transform_10, window_bounds = array<i64: 2, 1, 32>}, {pipeline_mode = #tpu.pipeline_mode<synchronous>, transform_indices = @transform_11, window_bounds = array<i64: 2, 1, 32>}, {pipeline_mode = #tpu.pipeline_mode<synchronous>, transform_indices = @transform_12, window_bounds = array<i64: 2, 1, 32>}, {pipeline_mode = #tpu.pipeline_mode<synchronous>, transform_indices = @transform_13, window_bounds = array<i64: 2, 32, 128>}, {pipeline_mode = #tpu.pipeline_mode<synchronous>, transform_indices = @transform_14, window_bounds = array<i64: 2, 1, 128>}, {pipeline_mode = #tpu.pipeline_mode<synchronous>, transform_indices = @transform_15, window_bounds = array<i64: 2, 128, 32>}, {pipeline_mode = #tpu.pipeline_mode<synchronous>, transform_indices = @transform_16, window_bounds = array<i64: 2, 1, 32>}, {pipeline_mode = #tpu.pipeline_mode<synchronous>, transform_indices = @transform_17, window_bounds = array<i64: 1, 32>}, {pipeline_mode = #tpu.pipeline_mode<synchronous>, transform_indices = @transform_18, window_bounds = array<i64: 1, 32>}, {pipeline_mode = #tpu.pipeline_mode<synchronous>, transform_indices = @transform_19, window_bounds = array<i64: 32, 16>}, {transform_indices = @transform_20, window_bounds = array<i64: 1, 1, 16>}]} {
    %c0 = arith.constant 0 : index
    %c0_0 = arith.constant 0 : index
    %c0_1 = arith.constant 0 : index
    %0 = vector.load %arg1[%c0, %c0_0, %c0_1] : memref<1x5x768xf32, #tpu.memory_space<vmem>>, vector<1x5x768xf32>
    %1 = vector.shape_cast %0 : vector<1x5x768xf32> to vector<5x768xf32>
    %c0_2 = arith.constant 0 : index
    %c0_3 = arith.constant 0 : index
    %2 = vector.load %arg2[%c0_2, %c0_3] : memref<768x32xf32, #tpu.memory_space<vmem>>, vector<768x32xf32>
    %3 = arith.truncf %1 : vector<5x768xf32> to vector<5x768xbf16>
    %4 = arith.truncf %2 : vector<768x32xf32> to vector<768x32xbf16>
    %cst = arith.constant dense<0.000000e+00> : vector<5x32xf32>
    %5 = tpu.matmul %3, %4, %cst {dimension_numbers = #tpu.dot_dimension_numbers<[1], [0], [0], [1], [0, 0, 1, 1], [], []>} : vector<5x768xbf16>, vector<768x32xbf16>, vector<5x32xf32> -> vector<5x32xf32>
    %c0_4 = arith.constant 0 : index
    %c0_5 = arith.constant 0 : index
    %6 = vector.load %arg3[%c0_4, %c0_5] : memref<5x32xf32, #tpu.memory_space<vmem>>, vector<5x32xf32>
    %7 = arith.addf %5, %6 : vector<5x32xf32>
    %c0_6 = arith.constant 0 : index
    %c0_7 = arith.constant 0 : index
    %8 = vector.load %arg4[%c0_6, %c0_7] : memref<1x32xf32, #tpu.memory_space<vmem>>, vector<1x32xf32>
    %c0_8 = arith.constant 0 : index
    %c0_9 = arith.constant 0 : index
    %9 = vector.load %arg5[%c0_8, %c0_9] : memref<1x32xf32, #tpu.memory_space<vmem>>, vector<1x32xf32>
    %cst_10 = arith.constant dense<0.000000e+00> : vector<5xf32>
    %10 = vector.multi_reduction <add>, %7, %cst_10 [1] : vector<5x32xf32> to vector<5xf32>
    %11 = vector.shape_cast %10 : vector<5xf32> to vector<5x1xf32>
    %cst_11 = arith.constant 3.200000e+01 : f32
    %12 = vector.broadcast %cst_11 : f32 to vector<5x1xf32>
    %13 = arith.divf %11, %12 : vector<5x1xf32>
    %14 = vector.broadcast %13 : vector<5x1xf32> to vector<5x32xf32>
    %15 = arith.subf %7, %14 : vector<5x32xf32>
    %16 = arith.mulf %15, %15 : vector<5x32xf32>
    %cst_12 = arith.constant dense<0.000000e+00> : vector<5xf32>
    %17 = vector.multi_reduction <add>, %16, %cst_12 [1] : vector<5x32xf32> to vector<5xf32>
    %18 = vector.shape_cast %17 : vector<5xf32> to vector<5x1xf32>
    %cst_13 = arith.constant 3.200000e+01 : f32
    %19 = vector.broadcast %cst_13 : f32 to vector<5x1xf32>
    %20 = arith.divf %18, %19 : vector<5x1xf32>
    %21 = vector.broadcast %13 : vector<5x1xf32> to vector<5x32xf32>
    %22 = arith.subf %7, %21 : vector<5x32xf32>
    %cst_14 = arith.constant 9.99999974E-6 : f32
    %23 = vector.broadcast %cst_14 : f32 to vector<5x1xf32>
    %24 = arith.addf %20, %23 : vector<5x1xf32>
    %25 = math.rsqrt %24 : vector<5x1xf32>
    %26 = vector.broadcast %25 : vector<5x1xf32> to vector<5x32xf32>
    %27 = arith.mulf %22, %26 : vector<5x32xf32>
    %28 = vector.broadcast %8 : vector<1x32xf32> to vector<5x32xf32>
    %29 = arith.mulf %27, %28 : vector<5x32xf32>
    %30 = vector.broadcast %9 : vector<1x32xf32> to vector<5x32xf32>
    %31 = arith.addf %29, %30 : vector<5x32xf32>
    %c0_15 = arith.constant 0 : index
    %c0_16 = arith.constant 0 : index
    %c0_17 = arith.constant 0 : index
    %32 = vector.load %arg6[%c0_15, %c0_16, %c0_17] : memref<2x1x32xf32, #tpu.memory_space<vmem>>, vector<1x1x32xf32>
    %33 = vector.shape_cast %32 : vector<1x1x32xf32> to vector<1x32xf32>
    %c0_18 = arith.constant 0 : index
    %c0_19 = arith.constant 0 : index
    %c0_20 = arith.constant 0 : index
    %34 = vector.load %arg7[%c0_18, %c0_19, %c0_20] : memref<2x1x32xf32, #tpu.memory_space<vmem>>, vector<1x1x32xf32>
    %35 = vector.shape_cast %34 : vector<1x1x32xf32> to vector<1x32xf32>
    %cst_21 = arith.constant dense<0.000000e+00> : vector<5xf32>
    %36 = vector.multi_reduction <add>, %31, %cst_21 [1] : vector<5x32xf32> to vector<5xf32>
    %37 = vector.shape_cast %36 : vector<5xf32> to vector<5x1xf32>
    %cst_22 = arith.constant 3.200000e+01 : f32
    %38 = vector.broadcast %cst_22 : f32 to vector<5x1xf32>
    %39 = arith.divf %37, %38 : vector<5x1xf32>
    %40 = vector.broadcast %39 : vector<5x1xf32> to vector<5x32xf32>
    %41 = arith.subf %31, %40 : vector<5x32xf32>
    %42 = arith.mulf %41, %41 : vector<5x32xf32>
    %cst_23 = arith.constant dense<0.000000e+00> : vector<5xf32>
    %43 = vector.multi_reduction <add>, %42, %cst_23 [1] : vector<5x32xf32> to vector<5xf32>
    %44 = vector.shape_cast %43 : vector<5xf32> to vector<5x1xf32>
    %cst_24 = arith.constant 3.200000e+01 : f32
    %45 = vector.broadcast %cst_24 : f32 to vector<5x1xf32>
    %46 = arith.divf %44, %45 : vector<5x1xf32>
    %47 = vector.broadcast %39 : vector<5x1xf32> to vector<5x32xf32>
    %48 = arith.subf %31, %47 : vector<5x32xf32>
    %cst_25 = arith.constant 9.99999974E-6 : f32
    %49 = vector.broadcast %cst_25 : f32 to vector<5x1xf32>
    %50 = arith.addf %46, %49 : vector<5x1xf32>
    %51 = math.rsqrt %50 : vector<5x1xf32>
    %52 = vector.broadcast %51 : vector<5x1xf32> to vector<5x32xf32>
    %53 = arith.mulf %48, %52 : vector<5x32xf32>
    %54 = vector.broadcast %33 : vector<1x32xf32> to vector<5x32xf32>
    %55 = arith.mulf %53, %54 : vector<5x32xf32>
    %56 = vector.broadcast %35 : vector<1x32xf32> to vector<5x32xf32>
    %57 = arith.addf %55, %56 : vector<5x32xf32>
    %c0_26 = arith.constant 0 : index
    %c0_27 = arith.constant 0 : index
    %c0_28 = arith.constant 0 : index
    %58 = vector.load %arg8[%c0_26, %c0_27, %c0_28] : memref<2x32x96xf32, #tpu.memory_space<vmem>>, vector<1x32x96xf32>
    %59 = vector.shape_cast %58 : vector<1x32x96xf32> to vector<32x96xf32>
    %60 = arith.truncf %57 : vector<5x32xf32> to vector<5x32xbf16>
    %61 = arith.truncf %59 : vector<32x96xf32> to vector<32x96xbf16>
    %cst_29 = arith.constant dense<0.000000e+00> : vector<5x96xf32>
    %62 = tpu.matmul %60, %61, %cst_29 {dimension_numbers = #tpu.dot_dimension_numbers<[1], [0], [0], [1], [0, 0, 1, 1], [], []>} : vector<5x32xbf16>, vector<32x96xbf16>, vector<5x96xf32> -> vector<5x96xf32>
    %c0_30 = arith.constant 0 : index
    %c0_31 = arith.constant 0 : index
    %c0_32 = arith.constant 0 : index
    %63 = vector.load %arg9[%c0_30, %c0_31, %c0_32] : memref<2x1x96xf32, #tpu.memory_space<vmem>>, vector<1x1x96xf32>
    %64 = vector.shape_cast %63 : vector<1x1x96xf32> to vector<1x96xf32>
    %65 = vector.broadcast %64 : vector<1x96xf32> to vector<5x96xf32>
    %66 = arith.addf %62, %65 : vector<5x96xf32>
    %67 = vector.extract_strided_slice %66 {offsets = [0, 0], sizes = [5, 32], strides = [1, 1]} : vector<5x96xf32> to vector<5x32xf32>
    %68 = vector.extract_strided_slice %66 {offsets = [0, 32], sizes = [5, 32], strides = [1, 1]} : vector<5x96xf32> to vector<5x32xf32>
    %69 = vector.extract_strided_slice %66 {offsets = [0, 64], sizes = [5, 32], strides = [1, 1]} : vector<5x96xf32> to vector<5x32xf32>
    %c0_33 = arith.constant 0 : index
    %c0_34 = arith.constant 0 : index
    %c0_35 = arith.constant 0 : index
    %70 = vector.load %arg10[%c0_33, %c0_34, %c0_35] : memref<2x32x32xf32, #tpu.memory_space<vmem>>, vector<1x32x32xf32>
    %71 = vector.shape_cast %70 : vector<1x32x32xf32> to vector<32x32xf32>
    %72 = vector.extract_strided_slice %67 {offsets = [0, 0], sizes = [5, 8], strides = [1, 1]} : vector<5x32xf32> to vector<5x8xf32>
    %cst_36 = arith.constant 0.353553385 : f32
    %73 = vector.broadcast %cst_36 : f32 to vector<5x8xf32>
    %74 = arith.mulf %72, %73 : vector<5x8xf32>
    %75 = vector.extract_strided_slice %68 {offsets = [0, 0], sizes = [5, 8], strides = [1, 1]} : vector<5x32xf32> to vector<5x8xf32>
    %76 = arith.truncf %74 : vector<5x8xf32> to vector<5x8xbf16>
    %77 = arith.truncf %75 : vector<5x8xf32> to vector<5x8xbf16>
    %cst_37 = arith.constant dense<0.000000e+00> : vector<5x5xf32>
    %78 = tpu.matmul %76, %77, %cst_37 {dimension_numbers = #tpu.dot_dimension_numbers<[1], [1], [0], [0], [0, 0, 1, 0], [], []>} : vector<5x8xbf16>, vector<5x8xbf16>, vector<5x5xf32> -> vector<5x5xf32>
    %cst_38 = arith.constant dense<0xFF800000> : vector<5xf32>
    %79 = vector.multi_reduction <maximumf>, %78, %cst_38 [1] : vector<5x5xf32> to vector<5xf32>
    %80 = vector.shape_cast %79 : vector<5xf32> to vector<5x1xf32>
    %81 = vector.broadcast %80 : vector<5x1xf32> to vector<5x5xf32>
    %82 = arith.subf %78, %81 : vector<5x5xf32>
    %83 = math.exp %82 : vector<5x5xf32>
    %cst_39 = arith.constant dense<0.000000e+00> : vector<5xf32>
    %84 = vector.multi_reduction <add>, %83, %cst_39 [1] : vector<5x5xf32> to vector<5xf32>
    %85 = vector.shape_cast %84 : vector<5xf32> to vector<5x1xf32>
    %86 = tpu.reciprocal %85 {approx = true} : vector<5x1xf32> -> vector<5x1xf32>
    %87 = vector.broadcast %86 : vector<5x1xf32> to vector<5x5xf32>
    %88 = arith.mulf %83, %87 : vector<5x5xf32>
    %89 = vector.extract_strided_slice %69 {offsets = [0, 0], sizes = [5, 8], strides = [1, 1]} : vector<5x32xf32> to vector<5x8xf32>
    %90 = arith.truncf %88 : vector<5x5xf32> to vector<5x5xbf16>
    %91 = arith.truncf %89 : vector<5x8xf32> to vector<5x8xbf16>
    %cst_40 = arith.constant dense<0.000000e+00> : vector<5x8xf32>
    %92 = tpu.matmul %90, %91, %cst_40 {dimension_numbers = #tpu.dot_dimension_numbers<[1], [0], [0], [1], [0, 0, 1, 1], [], []>} : vector<5x5xbf16>, vector<5x8xbf16>, vector<5x8xf32> -> vector<5x8xf32>
    %93 = vector.extract_strided_slice %71 {offsets = [0, 0], sizes = [8, 32], strides = [1, 1]} : vector<32x32xf32> to vector<8x32xf32>
    %94 = arith.truncf %92 : vector<5x8xf32> to vector<5x8xbf16>
    %95 = arith.truncf %93 : vector<8x32xf32> to vector<8x32xbf16>
    %cst_41 = arith.constant dense<0.000000e+00> : vector<5x32xf32>
    %96 = tpu.matmul %94, %95, %cst_41 {dimension_numbers = #tpu.dot_dimension_numbers<[1], [0], [0], [1], [0, 0, 1, 1], [], []>} : vector<5x8xbf16>, vector<8x32xbf16>, vector<5x32xf32> -> vector<5x32xf32>
    %97 = vector.extract_strided_slice %67 {offsets = [0, 8], sizes = [5, 8], strides = [1, 1]} : vector<5x32xf32> to vector<5x8xf32>
    %cst_42 = arith.constant 0.353553385 : f32
    %98 = vector.broadcast %cst_42 : f32 to vector<5x8xf32>
    %99 = arith.mulf %97, %98 : vector<5x8xf32>
    %100 = vector.extract_strided_slice %68 {offsets = [0, 8], sizes = [5, 8], strides = [1, 1]} : vector<5x32xf32> to vector<5x8xf32>
    %101 = arith.truncf %99 : vector<5x8xf32> to vector<5x8xbf16>
    %102 = arith.truncf %100 : vector<5x8xf32> to vector<5x8xbf16>
    %cst_43 = arith.constant dense<0.000000e+00> : vector<5x5xf32>
    %103 = tpu.matmul %101, %102, %cst_43 {dimension_numbers = #tpu.dot_dimension_numbers<[1], [1], [0], [0], [0, 0, 1, 0], [], []>} : vector<5x8xbf16>, vector<5x8xbf16>, vector<5x5xf32> -> vector<5x5xf32>
    %cst_44 = arith.constant dense<0xFF800000> : vector<5xf32>
    %104 = vector.multi_reduction <maximumf>, %103, %cst_44 [1] : vector<5x5xf32> to vector<5xf32>
    %105 = vector.shape_cast %104 : vector<5xf32> to vector<5x1xf32>
    %106 = vector.broadcast %105 : vector<5x1xf32> to vector<5x5xf32>
    %107 = arith.subf %103, %106 : vector<5x5xf32>
    %108 = math.exp %107 : vector<5x5xf32>
    %cst_45 = arith.constant dense<0.000000e+00> : vector<5xf32>
    %109 = vector.multi_reduction <add>, %108, %cst_45 [1] : vector<5x5xf32> to vector<5xf32>
    %110 = vector.shape_cast %109 : vector<5xf32> to vector<5x1xf32>
    %111 = tpu.reciprocal %110 {approx = true} : vector<5x1xf32> -> vector<5x1xf32>
    %112 = vector.broadcast %111 : vector<5x1xf32> to vector<5x5xf32>
    %113 = arith.mulf %108, %112 : vector<5x5xf32>
    %114 = vector.extract_strided_slice %69 {offsets = [0, 8], sizes = [5, 8], strides = [1, 1]} : vector<5x32xf32> to vector<5x8xf32>
    %115 = arith.truncf %113 : vector<5x5xf32> to vector<5x5xbf16>
    %116 = arith.truncf %114 : vector<5x8xf32> to vector<5x8xbf16>
    %cst_46 = arith.constant dense<0.000000e+00> : vector<5x8xf32>
    %117 = tpu.matmul %115, %116, %cst_46 {dimension_numbers = #tpu.dot_dimension_numbers<[1], [0], [0], [1], [0, 0, 1, 1], [], []>} : vector<5x5xbf16>, vector<5x8xbf16>, vector<5x8xf32> -> vector<5x8xf32>
    %118 = vector.extract_strided_slice %71 {offsets = [8, 0], sizes = [8, 32], strides = [1, 1]} : vector<32x32xf32> to vector<8x32xf32>
    %119 = arith.truncf %117 : vector<5x8xf32> to vector<5x8xbf16>
    %120 = arith.truncf %118 : vector<8x32xf32> to vector<8x32xbf16>
    %cst_47 = arith.constant dense<0.000000e+00> : vector<5x32xf32>
    %121 = tpu.matmul %119, %120, %cst_47 {dimension_numbers = #tpu.dot_dimension_numbers<[1], [0], [0], [1], [0, 0, 1, 1], [], []>} : vector<5x8xbf16>, vector<8x32xbf16>, vector<5x32xf32> -> vector<5x32xf32>
    %122 = arith.addf %96, %121 : vector<5x32xf32>
    %123 = vector.extract_strided_slice %67 {offsets = [0, 16], sizes = [5, 8], strides = [1, 1]} : vector<5x32xf32> to vector<5x8xf32>
    %cst_48 = arith.constant 0.353553385 : f32
    %124 = vector.broadcast %cst_48 : f32 to vector<5x8xf32>
    %125 = arith.mulf %123, %124 : vector<5x8xf32>
    %126 = vector.extract_strided_slice %68 {offsets = [0, 16], sizes = [5, 8], strides = [1, 1]} : vector<5x32xf32> to vector<5x8xf32>
    %127 = arith.truncf %125 : vector<5x8xf32> to vector<5x8xbf16>
    %128 = arith.truncf %126 : vector<5x8xf32> to vector<5x8xbf16>
    %cst_49 = arith.constant dense<0.000000e+00> : vector<5x5xf32>
    %129 = tpu.matmul %127, %128, %cst_49 {dimension_numbers = #tpu.dot_dimension_numbers<[1], [1], [0], [0], [0, 0, 1, 0], [], []>} : vector<5x8xbf16>, vector<5x8xbf16>, vector<5x5xf32> -> vector<5x5xf32>
    %cst_50 = arith.constant dense<0xFF800000> : vector<5xf32>
    %130 = vector.multi_reduction <maximumf>, %129, %cst_50 [1] : vector<5x5xf32> to vector<5xf32>
    %131 = vector.shape_cast %130 : vector<5xf32> to vector<5x1xf32>
    %132 = vector.broadcast %131 : vector<5x1xf32> to vector<5x5xf32>
    %133 = arith.subf %129, %132 : vector<5x5xf32>
    %134 = math.exp %133 : vector<5x5xf32>
    %cst_51 = arith.constant dense<0.000000e+00> : vector<5xf32>
    %135 = vector.multi_reduction <add>, %134, %cst_51 [1] : vector<5x5xf32> to vector<5xf32>
    %136 = vector.shape_cast %135 : vector<5xf32> to vector<5x1xf32>
    %137 = tpu.reciprocal %136 {approx = true} : vector<5x1xf32> -> vector<5x1xf32>
    %138 = vector.broadcast %137 : vector<5x1xf32> to vector<5x5xf32>
    %139 = arith.mulf %134, %138 : vector<5x5xf32>
    %140 = vector.extract_strided_slice %69 {offsets = [0, 16], sizes = [5, 8], strides = [1, 1]} : vector<5x32xf32> to vector<5x8xf32>
    %141 = arith.truncf %139 : vector<5x5xf32> to vector<5x5xbf16>
    %142 = arith.truncf %140 : vector<5x8xf32> to vector<5x8xbf16>
    %cst_52 = arith.constant dense<0.000000e+00> : vector<5x8xf32>
    %143 = tpu.matmul %141, %142, %cst_52 {dimension_numbers = #tpu.dot_dimension_numbers<[1], [0], [0], [1], [0, 0, 1, 1], [], []>} : vector<5x5xbf16>, vector<5x8xbf16>, vector<5x8xf32> -> vector<5x8xf32>
    %144 = vector.extract_strided_slice %71 {offsets = [16, 0], sizes = [8, 32], strides = [1, 1]} : vector<32x32xf32> to vector<8x32xf32>
    %145 = arith.truncf %143 : vector<5x8xf32> to vector<5x8xbf16>
    %146 = arith.truncf %144 : vector<8x32xf32> to vector<8x32xbf16>
    %cst_53 = arith.constant dense<0.000000e+00> : vector<5x32xf32>
    %147 = tpu.matmul %145, %146, %cst_53 {dimension_numbers = #tpu.dot_dimension_numbers<[1], [0], [0], [1], [0, 0, 1, 1], [], []>} : vector<5x8xbf16>, vector<8x32xbf16>, vector<5x32xf32> -> vector<5x32xf32>
    %148 = arith.addf %122, %147 : vector<5x32xf32>
    %149 = vector.extract_strided_slice %67 {offsets = [0, 24], sizes = [5, 8], strides = [1, 1]} : vector<5x32xf32> to vector<5x8xf32>
    %cst_54 = arith.constant 0.353553385 : f32
    %150 = vector.broadcast %cst_54 : f32 to vector<5x8xf32>
    %151 = arith.mulf %149, %150 : vector<5x8xf32>
    %152 = vector.extract_strided_slice %68 {offsets = [0, 24], sizes = [5, 8], strides = [1, 1]} : vector<5x32xf32> to vector<5x8xf32>
    %153 = arith.truncf %151 : vector<5x8xf32> to vector<5x8xbf16>
    %154 = arith.truncf %152 : vector<5x8xf32> to vector<5x8xbf16>
    %cst_55 = arith.constant dense<0.000000e+00> : vector<5x5xf32>
    %155 = tpu.matmul %153, %154, %cst_55 {dimension_numbers = #tpu.dot_dimension_numbers<[1], [1], [0], [0], [0, 0, 1, 0], [], []>} : vector<5x8xbf16>, vector<5x8xbf16>, vector<5x5xf32> -> vector<5x5xf32>
    %cst_56 = arith.constant dense<0xFF800000> : vector<5xf32>
    %156 = vector.multi_reduction <maximumf>, %155, %cst_56 [1] : vector<5x5xf32> to vector<5xf32>
    %157 = vector.shape_cast %156 : vector<5xf32> to vector<5x1xf32>
    %158 = vector.broadcast %157 : vector<5x1xf32> to vector<5x5xf32>
    %159 = arith.subf %155, %158 : vector<5x5xf32>
    %160 = math.exp %159 : vector<5x5xf32>
    %cst_57 = arith.constant dense<0.000000e+00> : vector<5xf32>
    %161 = vector.multi_reduction <add>, %160, %cst_57 [1] : vector<5x5xf32> to vector<5xf32>
    %162 = vector.shape_cast %161 : vector<5xf32> to vector<5x1xf32>
    %163 = tpu.reciprocal %162 {approx = true} : vector<5x1xf32> -> vector<5x1xf32>
    %164 = vector.broadcast %163 : vector<5x1xf32> to vector<5x5xf32>
    %165 = arith.mulf %160, %164 : vector<5x5xf32>
    %166 = vector.extract_strided_slice %69 {offsets = [0, 24], sizes = [5, 8], strides = [1, 1]} : vector<5x32xf32> to vector<5x8xf32>
    %167 = arith.truncf %165 : vector<5x5xf32> to vector<5x5xbf16>
    %168 = arith.truncf %166 : vector<5x8xf32> to vector<5x8xbf16>
    %cst_58 = arith.constant dense<0.000000e+00> : vector<5x8xf32>
    %169 = tpu.matmul %167, %168, %cst_58 {dimension_numbers = #tpu.dot_dimension_numbers<[1], [0], [0], [1], [0, 0, 1, 1], [], []>} : vector<5x5xbf16>, vector<5x8xbf16>, vector<5x8xf32> -> vector<5x8xf32>
    %170 = vector.extract_strided_slice %71 {offsets = [24, 0], sizes = [8, 32], strides = [1, 1]} : vector<32x32xf32> to vector<8x32xf32>
    %171 = arith.truncf %169 : vector<5x8xf32> to vector<5x8xbf16>
    %172 = arith.truncf %170 : vector<8x32xf32> to vector<8x32xbf16>
    %cst_59 = arith.constant dense<0.000000e+00> : vector<5x32xf32>
    %173 = tpu.matmul %171, %172, %cst_59 {dimension_numbers = #tpu.dot_dimension_numbers<[1], [0], [0], [1], [0, 0, 1, 1], [], []>} : vector<5x8xbf16>, vector<8x32xbf16>, vector<5x32xf32> -> vector<5x32xf32>
    %174 = arith.addf %148, %173 : vector<5x32xf32>
    %175 = arith.addf %31, %174 : vector<5x32xf32>
    %c0_60 = arith.constant 0 : index
    %c0_61 = arith.constant 0 : index
    %c0_62 = arith.constant 0 : index
    %176 = vector.load %arg11[%c0_60, %c0_61, %c0_62] : memref<2x1x32xf32, #tpu.memory_space<vmem>>, vector<1x1x32xf32>
    %177 = vector.shape_cast %176 : vector<1x1x32xf32> to vector<1x32xf32>
    %178 = vector.broadcast %177 : vector<1x32xf32> to vector<5x32xf32>
    %179 = arith.addf %175, %178 : vector<5x32xf32>
    %c0_63 = arith.constant 0 : index
    %c0_64 = arith.constant 0 : index
    %c0_65 = arith.constant 0 : index
    %180 = vector.load %arg12[%c0_63, %c0_64, %c0_65] : memref<2x1x32xf32, #tpu.memory_space<vmem>>, vector<1x1x32xf32>
    %181 = vector.shape_cast %180 : vector<1x1x32xf32> to vector<1x32xf32>
    %c0_66 = arith.constant 0 : index
    %c0_67 = arith.constant 0 : index
    %c0_68 = arith.constant 0 : index
    %182 = vector.load %arg13[%c0_66, %c0_67, %c0_68] : memref<2x1x32xf32, #tpu.memory_space<vmem>>, vector<1x1x32xf32>
    %183 = vector.shape_cast %182 : vector<1x1x32xf32> to vector<1x32xf32>
    %cst_69 = arith.constant dense<0.000000e+00> : vector<5xf32>
    %184 = vector.multi_reduction <add>, %179, %cst_69 [1] : vector<5x32xf32> to vector<5xf32>
    %185 = vector.shape_cast %184 : vector<5xf32> to vector<5x1xf32>
    %cst_70 = arith.constant 3.200000e+01 : f32
    %186 = vector.broadcast %cst_70 : f32 to vector<5x1xf32>
    %187 = arith.divf %185, %186 : vector<5x1xf32>
    %188 = vector.broadcast %187 : vector<5x1xf32> to vector<5x32xf32>
    %189 = arith.subf %179, %188 : vector<5x32xf32>
    %190 = arith.mulf %189, %189 : vector<5x32xf32>
    %cst_71 = arith.constant dense<0.000000e+00> : vector<5xf32>
    %191 = vector.multi_reduction <add>, %190, %cst_71 [1] : vector<5x32xf32> to vector<5xf32>
    %192 = vector.shape_cast %191 : vector<5xf32> to vector<5x1xf32>
    %cst_72 = arith.constant 3.200000e+01 : f32
    %193 = vector.broadcast %cst_72 : f32 to vector<5x1xf32>
    %194 = arith.divf %192, %193 : vector<5x1xf32>
    %195 = vector.broadcast %187 : vector<5x1xf32> to vector<5x32xf32>
    %196 = arith.subf %179, %195 : vector<5x32xf32>
    %cst_73 = arith.constant 9.99999974E-6 : f32
    %197 = vector.broadcast %cst_73 : f32 to vector<5x1xf32>
    %198 = arith.addf %194, %197 : vector<5x1xf32>
    %199 = math.rsqrt %198 : vector<5x1xf32>
    %200 = vector.broadcast %199 : vector<5x1xf32> to vector<5x32xf32>
    %201 = arith.mulf %196, %200 : vector<5x32xf32>
    %202 = vector.broadcast %181 : vector<1x32xf32> to vector<5x32xf32>
    %203 = arith.mulf %201, %202 : vector<5x32xf32>
    %204 = vector.broadcast %183 : vector<1x32xf32> to vector<5x32xf32>
    %205 = arith.addf %203, %204 : vector<5x32xf32>
    %c0_74 = arith.constant 0 : index
    %c0_75 = arith.constant 0 : index
    %c0_76 = arith.constant 0 : index
    %206 = vector.load %arg14[%c0_74, %c0_75, %c0_76] : memref<2x32x128xf32, #tpu.memory_space<vmem>>, vector<1x32x128xf32>
    %207 = vector.shape_cast %206 : vector<1x32x128xf32> to vector<32x128xf32>
    %208 = arith.truncf %205 : vector<5x32xf32> to vector<5x32xbf16>
    %209 = arith.truncf %207 : vector<32x128xf32> to vector<32x128xbf16>
    %cst_77 = arith.constant dense<0.000000e+00> : vector<5x128xf32>
    %210 = tpu.matmul %208, %209, %cst_77 {dimension_numbers = #tpu.dot_dimension_numbers<[1], [0], [0], [1], [0, 0, 1, 1], [], []>} : vector<5x32xbf16>, vector<32x128xbf16>, vector<5x128xf32> -> vector<5x128xf32>
    %c0_78 = arith.constant 0 : index
    %c0_79 = arith.constant 0 : index
    %c0_80 = arith.constant 0 : index
    %211 = vector.load %arg15[%c0_78, %c0_79, %c0_80] : memref<2x1x128xf32, #tpu.memory_space<vmem>>, vector<1x1x128xf32>
    %212 = vector.shape_cast %211 : vector<1x1x128xf32> to vector<1x128xf32>
    %213 = vector.broadcast %212 : vector<1x128xf32> to vector<5x128xf32>
    %214 = arith.addf %210, %213 : vector<5x128xf32>
    %cst_81 = arith.constant 1.702000e+00 : f32
    %215 = vector.broadcast %cst_81 : f32 to vector<5x128xf32>
    %216 = arith.mulf %215, %214 : vector<5x128xf32>
    %217 = arith.negf %216 : vector<5x128xf32>
    %218 = math.exp %217 : vector<5x128xf32>
    %cst_82 = arith.constant 1.000000e+00 : f32
    %219 = vector.broadcast %cst_82 : f32 to vector<5x128xf32>
    %220 = arith.addf %219, %218 : vector<5x128xf32>
    %221 = arith.divf %219, %220 : vector<5x128xf32>
    %222 = arith.mulf %214, %221 : vector<5x128xf32>
    %c0_83 = arith.constant 0 : index
    %c0_84 = arith.constant 0 : index
    %c0_85 = arith.constant 0 : index
    %223 = vector.load %arg16[%c0_83, %c0_84, %c0_85] : memref<2x128x32xf32, #tpu.memory_space<vmem>>, vector<1x128x32xf32>
    %224 = vector.shape_cast %223 : vector<1x128x32xf32> to vector<128x32xf32>
    %225 = arith.truncf %222 : vector<5x128xf32> to vector<5x128xbf16>
    %226 = arith.truncf %224 : vector<128x32xf32> to vector<128x32xbf16>
    %cst_86 = arith.constant dense<0.000000e+00> : vector<5x32xf32>
    %227 = tpu.matmul %225, %226, %cst_86 {dimension_numbers = #tpu.dot_dimension_numbers<[1], [0], [0], [1], [0, 0, 1, 1], [], []>} : vector<5x128xbf16>, vector<128x32xbf16>, vector<5x32xf32> -> vector<5x32xf32>
    %c0_87 = arith.constant 0 : index
    %c0_88 = arith.constant 0 : index
    %c0_89 = arith.constant 0 : index
    %228 = vector.load %arg17[%c0_87, %c0_88, %c0_89] : memref<2x1x32xf32, #tpu.memory_space<vmem>>, vector<1x1x32xf32>
    %229 = vector.shape_cast %228 : vector<1x1x32xf32> to vector<1x32xf32>
    %230 = vector.broadcast %229 : vector<1x32xf32> to vector<5x32xf32>
    %231 = arith.addf %227, %230 : vector<5x32xf32>
    %232 = arith.addf %179, %231 : vector<5x32xf32>
    %c1 = arith.constant 1 : index
    %c0_90 = arith.constant 0 : index
    %c0_91 = arith.constant 0 : index
    %233 = vector.load %arg6[%c1, %c0_90, %c0_91] : memref<2x1x32xf32, #tpu.memory_space<vmem>>, vector<1x1x32xf32>
    %234 = vector.shape_cast %233 : vector<1x1x32xf32> to vector<1x32xf32>
    %c1_92 = arith.constant 1 : index
    %c0_93 = arith.constant 0 : index
    %c0_94 = arith.constant 0 : index
    %235 = vector.load %arg7[%c1_92, %c0_93, %c0_94] : memref<2x1x32xf32, #tpu.memory_space<vmem>>, vector<1x1x32xf32>
    %236 = vector.shape_cast %235 : vector<1x1x32xf32> to vector<1x32xf32>
    %cst_95 = arith.constant dense<0.000000e+00> : vector<5xf32>
    %237 = vector.multi_reduction <add>, %232, %cst_95 [1] : vector<5x32xf32> to vector<5xf32>
    %238 = vector.shape_cast %237 : vector<5xf32> to vector<5x1xf32>
    %cst_96 = arith.constant 3.200000e+01 : f32
    %239 = vector.broadcast %cst_96 : f32 to vector<5x1xf32>
    %240 = arith.divf %238, %239 : vector<5x1xf32>
    %241 = vector.broadcast %240 : vector<5x1xf32> to vector<5x32xf32>
    %242 = arith.subf %232, %241 : vector<5x32xf32>
    %243 = arith.mulf %242, %242 : vector<5x32xf32>
    %cst_97 = arith.constant dense<0.000000e+00> : vector<5xf32>
    %244 = vector.multi_reduction <add>, %243, %cst_97 [1] : vector<5x32xf32> to vector<5xf32>
    %245 = vector.shape_cast %244 : vector<5xf32> to vector<5x1xf32>
    %cst_98 = arith.constant 3.200000e+01 : f32
    %246 = vector.broadcast %cst_98 : f32 to vector<5x1xf32>
    %247 = arith.divf %245, %246 : vector<5x1xf32>
    %248 = vector.broadcast %240 : vector<5x1xf32> to vector<5x32xf32>
    %249 = arith.subf %232, %248 : vector<5x32xf32>
    %cst_99 = arith.constant 9.99999974E-6 : f32
    %250 = vector.broadcast %cst_99 : f32 to vector<5x1xf32>
    %251 = arith.addf %247, %250 : vector<5x1xf32>
    %252 = math.rsqrt %251 : vector<5x1xf32>
    %253 = vector.broadcast %252 : vector<5x1xf32> to vector<5x32xf32>
    %254 = arith.mulf %249, %253 : vector<5x32xf32>
    %255 = vector.broadcast %234 : vector<1x32xf32> to vector<5x32xf32>
    %256 = arith.mulf %254, %255 : vector<5x32xf32>
    %257 = vector.broadcast %236 : vector<1x32xf32> to vector<5x32xf32>
    %258 = arith.addf %256, %257 : vector<5x32xf32>
    %c1_100 = arith.constant 1 : index
    %c0_101 = arith.constant 0 : index
    %c0_102 = arith.constant 0 : index
    %259 = vector.load %arg8[%c1_100, %c0_101, %c0_102] : memref<2x32x96xf32, #tpu.memory_space<vmem>>, vector<1x32x96xf32>
    %260 = vector.shape_cast %259 : vector<1x32x96xf32> to vector<32x96xf32>
    %261 = arith.truncf %258 : vector<5x32xf32> to vector<5x32xbf16>
    %262 = arith.truncf %260 : vector<32x96xf32> to vector<32x96xbf16>
    %cst_103 = arith.constant dense<0.000000e+00> : vector<5x96xf32>
    %263 = tpu.matmul %261, %262, %cst_103 {dimension_numbers = #tpu.dot_dimension_numbers<[1], [0], [0], [1], [0, 0, 1, 1], [], []>} : vector<5x32xbf16>, vector<32x96xbf16>, vector<5x96xf32> -> vector<5x96xf32>
    %c1_104 = arith.constant 1 : index
    %c0_105 = arith.constant 0 : index
    %c0_106 = arith.constant 0 : index
    %264 = vector.load %arg9[%c1_104, %c0_105, %c0_106] : memref<2x1x96xf32, #tpu.memory_space<vmem>>, vector<1x1x96xf32>
    %265 = vector.shape_cast %264 : vector<1x1x96xf32> to vector<1x96xf32>
    %266 = vector.broadcast %265 : vector<1x96xf32> to vector<5x96xf32>
    %267 = arith.addf %263, %266 : vector<5x96xf32>
    %268 = vector.extract_strided_slice %267 {offsets = [0, 0], sizes = [5, 32], strides = [1, 1]} : vector<5x96xf32> to vector<5x32xf32>
    %269 = vector.extract_strided_slice %267 {offsets = [0, 32], sizes = [5, 32], strides = [1, 1]} : vector<5x96xf32> to vector<5x32xf32>
    %270 = vector.extract_strided_slice %267 {offsets = [0, 64], sizes = [5, 32], strides = [1, 1]} : vector<5x96xf32> to vector<5x32xf32>
    %c1_107 = arith.constant 1 : index
    %c0_108 = arith.constant 0 : index
    %c0_109 = arith.constant 0 : index
    %271 = vector.load %arg10[%c1_107, %c0_108, %c0_109] : memref<2x32x32xf32, #tpu.memory_space<vmem>>, vector<1x32x32xf32>
    %272 = vector.shape_cast %271 : vector<1x32x32xf32> to vector<32x32xf32>
    %273 = vector.extract_strided_slice %268 {offsets = [0, 0], sizes = [5, 8], strides = [1, 1]} : vector<5x32xf32> to vector<5x8xf32>
    %cst_110 = arith.constant 0.353553385 : f32
    %274 = vector.broadcast %cst_110 : f32 to vector<5x8xf32>
    %275 = arith.mulf %273, %274 : vector<5x8xf32>
    %276 = vector.extract_strided_slice %269 {offsets = [0, 0], sizes = [5, 8], strides = [1, 1]} : vector<5x32xf32> to vector<5x8xf32>
    %277 = arith.truncf %275 : vector<5x8xf32> to vector<5x8xbf16>
    %278 = arith.truncf %276 : vector<5x8xf32> to vector<5x8xbf16>
    %cst_111 = arith.constant dense<0.000000e+00> : vector<5x5xf32>
    %279 = tpu.matmul %277, %278, %cst_111 {dimension_numbers = #tpu.dot_dimension_numbers<[1], [1], [0], [0], [0, 0, 1, 0], [], []>} : vector<5x8xbf16>, vector<5x8xbf16>, vector<5x5xf32> -> vector<5x5xf32>
    %cst_112 = arith.constant dense<0xFF800000> : vector<5xf32>
    %280 = vector.multi_reduction <maximumf>, %279, %cst_112 [1] : vector<5x5xf32> to vector<5xf32>
    %281 = vector.shape_cast %280 : vector<5xf32> to vector<5x1xf32>
    %282 = vector.broadcast %281 : vector<5x1xf32> to vector<5x5xf32>
    %283 = arith.subf %279, %282 : vector<5x5xf32>
    %284 = math.exp %283 : vector<5x5xf32>
    %cst_113 = arith.constant dense<0.000000e+00> : vector<5xf32>
    %285 = vector.multi_reduction <add>, %284, %cst_113 [1] : vector<5x5xf32> to vector<5xf32>
    %286 = vector.shape_cast %285 : vector<5xf32> to vector<5x1xf32>
    %287 = tpu.reciprocal %286 {approx = true} : vector<5x1xf32> -> vector<5x1xf32>
    %288 = vector.broadcast %287 : vector<5x1xf32> to vector<5x5xf32>
    %289 = arith.mulf %284, %288 : vector<5x5xf32>
    %290 = vector.extract_strided_slice %270 {offsets = [0, 0], sizes = [5, 8], strides = [1, 1]} : vector<5x32xf32> to vector<5x8xf32>
    %291 = arith.truncf %289 : vector<5x5xf32> to vector<5x5xbf16>
    %292 = arith.truncf %290 : vector<5x8xf32> to vector<5x8xbf16>
    %cst_114 = arith.constant dense<0.000000e+00> : vector<5x8xf32>
    %293 = tpu.matmul %291, %292, %cst_114 {dimension_numbers = #tpu.dot_dimension_numbers<[1], [0], [0], [1], [0, 0, 1, 1], [], []>} : vector<5x5xbf16>, vector<5x8xbf16>, vector<5x8xf32> -> vector<5x8xf32>
    %294 = vector.extract_strided_slice %272 {offsets = [0, 0], sizes = [8, 32], strides = [1, 1]} : vector<32x32xf32> to vector<8x32xf32>
    %295 = arith.truncf %293 : vector<5x8xf32> to vector<5x8xbf16>
    %296 = arith.truncf %294 : vector<8x32xf32> to vector<8x32xbf16>
    %cst_115 = arith.constant dense<0.000000e+00> : vector<5x32xf32>
    %297 = tpu.matmul %295, %296, %cst_115 {dimension_numbers = #tpu.dot_dimension_numbers<[1], [0], [0], [1], [0, 0, 1, 1], [], []>} : vector<5x8xbf16>, vector<8x32xbf16>, vector<5x32xf32> -> vector<5x32xf32>
    %298 = vector.extract_strided_slice %268 {offsets = [0, 8], sizes = [5, 8], strides = [1, 1]} : vector<5x32xf32> to vector<5x8xf32>
    %cst_116 = arith.constant 0.353553385 : f32
    %299 = vector.broadcast %cst_116 : f32 to vector<5x8xf32>
    %300 = arith.mulf %298, %299 : vector<5x8xf32>
    %301 = vector.extract_strided_slice %269 {offsets = [0, 8], sizes = [5, 8], strides = [1, 1]} : vector<5x32xf32> to vector<5x8xf32>
    %302 = arith.truncf %300 : vector<5x8xf32> to vector<5x8xbf16>
    %303 = arith.truncf %301 : vector<5x8xf32> to vector<5x8xbf16>
    %cst_117 = arith.constant dense<0.000000e+00> : vector<5x5xf32>
    %304 = tpu.matmul %302, %303, %cst_117 {dimension_numbers = #tpu.dot_dimension_numbers<[1], [1], [0], [0], [0, 0, 1, 0], [], []>} : vector<5x8xbf16>, vector<5x8xbf16>, vector<5x5xf32> -> vector<5x5xf32>
    %cst_118 = arith.constant dense<0xFF800000> : vector<5xf32>
    %305 = vector.multi_reduction <maximumf>, %304, %cst_118 [1] : vector<5x5xf32> to vector<5xf32>
    %306 = vector.shape_cast %305 : vector<5xf32> to vector<5x1xf32>
    %307 = vector.broadcast %306 : vector<5x1xf32> to vector<5x5xf32>
    %308 = arith.subf %304, %307 : vector<5x5xf32>
    %309 = math.exp %308 : vector<5x5xf32>
    %cst_119 = arith.constant dense<0.000000e+00> : vector<5xf32>
    %310 = vector.multi_reduction <add>, %309, %cst_119 [1] : vector<5x5xf32> to vector<5xf32>
    %311 = vector.shape_cast %310 : vector<5xf32> to vector<5x1xf32>
    %312 = tpu.reciprocal %311 {approx = true} : vector<5x1xf32> -> vector<5x1xf32>
    %313 = vector.broadcast %312 : vector<5x1xf32> to vector<5x5xf32>
    %314 = arith.mulf %309, %313 : vector<5x5xf32>
    %315 = vector.extract_strided_slice %270 {offsets = [0, 8], sizes = [5, 8], strides = [1, 1]} : vector<5x32xf32> to vector<5x8xf32>
    %316 = arith.truncf %314 : vector<5x5xf32> to vector<5x5xbf16>
    %317 = arith.truncf %315 : vector<5x8xf32> to vector<5x8xbf16>
    %cst_120 = arith.constant dense<0.000000e+00> : vector<5x8xf32>
    %318 = tpu.matmul %316, %317, %cst_120 {dimension_numbers = #tpu.dot_dimension_numbers<[1], [0], [0], [1], [0, 0, 1, 1], [], []>} : vector<5x5xbf16>, vector<5x8xbf16>, vector<5x8xf32> -> vector<5x8xf32>
    %319 = vector.extract_strided_slice %272 {offsets = [8, 0], sizes = [8, 32], strides = [1, 1]} : vector<32x32xf32> to vector<8x32xf32>
    %320 = arith.truncf %318 : vector<5x8xf32> to vector<5x8xbf16>
    %321 = arith.truncf %319 : vector<8x32xf32> to vector<8x32xbf16>
    %cst_121 = arith.constant dense<0.000000e+00> : vector<5x32xf32>
    %322 = tpu.matmul %320, %321, %cst_121 {dimension_numbers = #tpu.dot_dimension_numbers<[1], [0], [0], [1], [0, 0, 1, 1], [], []>} : vector<5x8xbf16>, vector<8x32xbf16>, vector<5x32xf32> -> vector<5x32xf32>
    %323 = arith.addf %297, %322 : vector<5x32xf32>
    %324 = vector.extract_strided_slice %268 {offsets = [0, 16], sizes = [5, 8], strides = [1, 1]} : vector<5x32xf32> to vector<5x8xf32>
    %cst_122 = arith.constant 0.353553385 : f32
    %325 = vector.broadcast %cst_122 : f32 to vector<5x8xf32>
    %326 = arith.mulf %324, %325 : vector<5x8xf32>
    %327 = vector.extract_strided_slice %269 {offsets = [0, 16], sizes = [5, 8], strides = [1, 1]} : vector<5x32xf32> to vector<5x8xf32>
    %328 = arith.truncf %326 : vector<5x8xf32> to vector<5x8xbf16>
    %329 = arith.truncf %327 : vector<5x8xf32> to vector<5x8xbf16>
    %cst_123 = arith.constant dense<0.000000e+00> : vector<5x5xf32>
    %330 = tpu.matmul %328, %329, %cst_123 {dimension_numbers = #tpu.dot_dimension_numbers<[1], [1], [0], [0], [0, 0, 1, 0], [], []>} : vector<5x8xbf16>, vector<5x8xbf16>, vector<5x5xf32> -> vector<5x5xf32>
    %cst_124 = arith.constant dense<0xFF800000> : vector<5xf32>
    %331 = vector.multi_reduction <maximumf>, %330, %cst_124 [1] : vector<5x5xf32> to vector<5xf32>
    %332 = vector.shape_cast %331 : vector<5xf32> to vector<5x1xf32>
    %333 = vector.broadcast %332 : vector<5x1xf32> to vector<5x5xf32>
    %334 = arith.subf %330, %333 : vector<5x5xf32>
    %335 = math.exp %334 : vector<5x5xf32>
    %cst_125 = arith.constant dense<0.000000e+00> : vector<5xf32>
    %336 = vector.multi_reduction <add>, %335, %cst_125 [1] : vector<5x5xf32> to vector<5xf32>
    %337 = vector.shape_cast %336 : vector<5xf32> to vector<5x1xf32>
    %338 = tpu.reciprocal %337 {approx = true} : vector<5x1xf32> -> vector<5x1xf32>
    %339 = vector.broadcast %338 : vector<5x1xf32> to vector<5x5xf32>
    %340 = arith.mulf %335, %339 : vector<5x5xf32>
    %341 = vector.extract_strided_slice %270 {offsets = [0, 16], sizes = [5, 8], strides = [1, 1]} : vector<5x32xf32> to vector<5x8xf32>
    %342 = arith.truncf %340 : vector<5x5xf32> to vector<5x5xbf16>
    %343 = arith.truncf %341 : vector<5x8xf32> to vector<5x8xbf16>
    %cst_126 = arith.constant dense<0.000000e+00> : vector<5x8xf32>
    %344 = tpu.matmul %342, %343, %cst_126 {dimension_numbers = #tpu.dot_dimension_numbers<[1], [0], [0], [1], [0, 0, 1, 1], [], []>} : vector<5x5xbf16>, vector<5x8xbf16>, vector<5x8xf32> -> vector<5x8xf32>
    %345 = vector.extract_strided_slice %272 {offsets = [16, 0], sizes = [8, 32], strides = [1, 1]} : vector<32x32xf32> to vector<8x32xf32>
    %346 = arith.truncf %344 : vector<5x8xf32> to vector<5x8xbf16>
    %347 = arith.truncf %345 : vector<8x32xf32> to vector<8x32xbf16>
    %cst_127 = arith.constant dense<0.000000e+00> : vector<5x32xf32>
    %348 = tpu.matmul %346, %347, %cst_127 {dimension_numbers = #tpu.dot_dimension_numbers<[1], [0], [0], [1], [0, 0, 1, 1], [], []>} : vector<5x8xbf16>, vector<8x32xbf16>, vector<5x32xf32> -> vector<5x32xf32>
    %349 = arith.addf %323, %348 : vector<5x32xf32>
    %350 = vector.extract_strided_slice %268 {offsets = [0, 24], sizes = [5, 8], strides = [1, 1]} : vector<5x32xf32> to vector<5x8xf32>
    %cst_128 = arith.constant 0.353553385 : f32
    %351 = vector.broadcast %cst_128 : f32 to vector<5x8xf32>
    %352 = arith.mulf %350, %351 : vector<5x8xf32>
    %353 = vector.extract_strided_slice %269 {offsets = [0, 24], sizes = [5, 8], strides = [1, 1]} : vector<5x32xf32> to vector<5x8xf32>
    %354 = arith.truncf %352 : vector<5x8xf32> to vector<5x8xbf16>
    %355 = arith.truncf %353 : vector<5x8xf32> to vector<5x8xbf16>
    %cst_129 = arith.constant dense<0.000000e+00> : vector<5x5xf32>
    %356 = tpu.matmul %354, %355, %cst_129 {dimension_numbers = #tpu.dot_dimension_numbers<[1], [1], [0], [0], [0, 0, 1, 0], [], []>} : vector<5x8xbf16>, vector<5x8xbf16>, vector<5x5xf32> -> vector<5x5xf32>
    %cst_130 = arith.constant dense<0xFF800000> : vector<5xf32>
    %357 = vector.multi_reduction <maximumf>, %356, %cst_130 [1] : vector<5x5xf32> to vector<5xf32>
    %358 = vector.shape_cast %357 : vector<5xf32> to vector<5x1xf32>
    %359 = vector.broadcast %358 : vector<5x1xf32> to vector<5x5xf32>
    %360 = arith.subf %356, %359 : vector<5x5xf32>
    %361 = math.exp %360 : vector<5x5xf32>
    %cst_131 = arith.constant dense<0.000000e+00> : vector<5xf32>
    %362 = vector.multi_reduction <add>, %361, %cst_131 [1] : vector<5x5xf32> to vector<5xf32>
    %363 = vector.shape_cast %362 : vector<5xf32> to vector<5x1xf32>
    %364 = tpu.reciprocal %363 {approx = true} : vector<5x1xf32> -> vector<5x1xf32>
    %365 = vector.broadcast %364 : vector<5x1xf32> to vector<5x5xf32>
    %366 = arith.mulf %361, %365 : vector<5x5xf32>
    %367 = vector.extract_strided_slice %270 {offsets = [0, 24], sizes = [5, 8], strides = [1, 1]} : vector<5x32xf32> to vector<5x8xf32>
    %368 = arith.truncf %366 : vector<5x5xf32> to vector<5x5xbf16>
    %369 = arith.truncf %367 : vector<5x8xf32> to vector<5x8xbf16>
    %cst_132 = arith.constant dense<0.000000e+00> : vector<5x8xf32>
    %370 = tpu.matmul %368, %369, %cst_132 {dimension_numbers = #tpu.dot_dimension_numbers<[1], [0], [0], [1], [0, 0, 1, 1], [], []>} : vector<5x5xbf16>, vector<5x8xbf16>, vector<5x8xf32> -> vector<5x8xf32>
    %371 = vector.extract_strided_slice %272 {offsets = [24, 0], sizes = [8, 32], strides = [1, 1]} : vector<32x32xf32> to vector<8x32xf32>
    %372 = arith.truncf %370 : vector<5x8xf32> to vector<5x8xbf16>
    %373 = arith.truncf %371 : vector<8x32xf32> to vector<8x32xbf16>
    %cst_133 = arith.constant dense<0.000000e+00> : vector<5x32xf32>
    %374 = tpu.matmul %372, %373, %cst_133 {dimension_numbers = #tpu.dot_dimension_numbers<[1], [0], [0], [1], [0, 0, 1, 1], [], []>} : vector<5x8xbf16>, vector<8x32xbf16>, vector<5x32xf32> -> vector<5x32xf32>
    %375 = arith.addf %349, %374 : vector<5x32xf32>
    %376 = arith.addf %232, %375 : vector<5x32xf32>
    %c1_134 = arith.constant 1 : index
    %c0_135 = arith.constant 0 : index
    %c0_136 = arith.constant 0 : index
    %377 = vector.load %arg11[%c1_134, %c0_135, %c0_136] : memref<2x1x32xf32, #tpu.memory_space<vmem>>, vector<1x1x32xf32>
    %378 = vector.shape_cast %377 : vector<1x1x32xf32> to vector<1x32xf32>
    %379 = vector.broadcast %378 : vector<1x32xf32> to vector<5x32xf32>
    %380 = arith.addf %376, %379 : vector<5x32xf32>
    %c1_137 = arith.constant 1 : index
    %c0_138 = arith.constant 0 : index
    %c0_139 = arith.constant 0 : index
    %381 = vector.load %arg12[%c1_137, %c0_138, %c0_139] : memref<2x1x32xf32, #tpu.memory_space<vmem>>, vector<1x1x32xf32>
    %382 = vector.shape_cast %381 : vector<1x1x32xf32> to vector<1x32xf32>
    %c1_140 = arith.constant 1 : index
    %c0_141 = arith.constant 0 : index
    %c0_142 = arith.constant 0 : index
    %383 = vector.load %arg13[%c1_140, %c0_141, %c0_142] : memref<2x1x32xf32, #tpu.memory_space<vmem>>, vector<1x1x32xf32>
    %384 = vector.shape_cast %383 : vector<1x1x32xf32> to vector<1x32xf32>
    %cst_143 = arith.constant dense<0.000000e+00> : vector<5xf32>
    %385 = vector.multi_reduction <add>, %380, %cst_143 [1] : vector<5x32xf32> to vector<5xf32>
    %386 = vector.shape_cast %385 : vector<5xf32> to vector<5x1xf32>
    %cst_144 = arith.constant 3.200000e+01 : f32
    %387 = vector.broadcast %cst_144 : f32 to vector<5x1xf32>
    %388 = arith.divf %386, %387 : vector<5x1xf32>
    %389 = vector.broadcast %388 : vector<5x1xf32> to vector<5x32xf32>
    %390 = arith.subf %380, %389 : vector<5x32xf32>
    %391 = arith.mulf %390, %390 : vector<5x32xf32>
    %cst_145 = arith.constant dense<0.000000e+00> : vector<5xf32>
    %392 = vector.multi_reduction <add>, %391, %cst_145 [1] : vector<5x32xf32> to vector<5xf32>
    %393 = vector.shape_cast %392 : vector<5xf32> to vector<5x1xf32>
    %cst_146 = arith.constant 3.200000e+01 : f32
    %394 = vector.broadcast %cst_146 : f32 to vector<5x1xf32>
    %395 = arith.divf %393, %394 : vector<5x1xf32>
    %396 = vector.broadcast %388 : vector<5x1xf32> to vector<5x32xf32>
    %397 = arith.subf %380, %396 : vector<5x32xf32>
    %cst_147 = arith.constant 9.99999974E-6 : f32
    %398 = vector.broadcast %cst_147 : f32 to vector<5x1xf32>
    %399 = arith.addf %395, %398 : vector<5x1xf32>
    %400 = math.rsqrt %399 : vector<5x1xf32>
    %401 = vector.broadcast %400 : vector<5x1xf32> to vector<5x32xf32>
    %402 = arith.mulf %397, %401 : vector<5x32xf32>
    %403 = vector.broadcast %382 : vector<1x32xf32> to vector<5x32xf32>
    %404 = arith.mulf %402, %403 : vector<5x32xf32>
    %405 = vector.broadcast %384 : vector<1x32xf32> to vector<5x32xf32>
    %406 = arith.addf %404, %405 : vector<5x32xf32>
    %c1_148 = arith.constant 1 : index
    %c0_149 = arith.constant 0 : index
    %c0_150 = arith.constant 0 : index
    %407 = vector.load %arg14[%c1_148, %c0_149, %c0_150] : memref<2x32x128xf32, #tpu.memory_space<vmem>>, vector<1x32x128xf32>
    %408 = vector.shape_cast %407 : vector<1x32x128xf32> to vector<32x128xf32>
    %409 = arith.truncf %406 : vector<5x32xf32> to vector<5x32xbf16>
    %410 = arith.truncf %408 : vector<32x128xf32> to vector<32x128xbf16>
    %cst_151 = arith.constant dense<0.000000e+00> : vector<5x128xf32>
    %411 = tpu.matmul %409, %410, %cst_151 {dimension_numbers = #tpu.dot_dimension_numbers<[1], [0], [0], [1], [0, 0, 1, 1], [], []>} : vector<5x32xbf16>, vector<32x128xbf16>, vector<5x128xf32> -> vector<5x128xf32>
    %c1_152 = arith.constant 1 : index
    %c0_153 = arith.constant 0 : index
    %c0_154 = arith.constant 0 : index
    %412 = vector.load %arg15[%c1_152, %c0_153, %c0_154] : memref<2x1x128xf32, #tpu.memory_space<vmem>>, vector<1x1x128xf32>
    %413 = vector.shape_cast %412 : vector<1x1x128xf32> to vector<1x128xf32>
    %414 = vector.broadcast %413 : vector<1x128xf32> to vector<5x128xf32>
    %415 = arith.addf %411, %414 : vector<5x128xf32>
    %cst_155 = arith.constant 1.702000e+00 : f32
    %416 = vector.broadcast %cst_155 : f32 to vector<5x128xf32>
    %417 = arith.mulf %416, %415 : vector<5x128xf32>
    %418 = arith.negf %417 : vector<5x128xf32>
    %419 = math.exp %418 : vector<5x128xf32>
    %cst_156 = arith.constant 1.000000e+00 : f32
    %420 = vector.broadcast %cst_156 : f32 to vector<5x128xf32>
    %421 = arith.addf %420, %419 : vector<5x128xf32>
    %422 = arith.divf %420, %421 : vector<5x128xf32>
    %423 = arith.mulf %415, %422 : vector<5x128xf32>
    %c1_157 = arith.constant 1 : index
    %c0_158 = arith.constant 0 : index
    %c0_159 = arith.constant 0 : index
    %424 = vector.load %arg16[%c1_157, %c0_158, %c0_159] : memref<2x128x32xf32, #tpu.memory_space<vmem>>, vector<1x128x32xf32>
    %425 = vector.shape_cast %424 : vector<1x128x32xf32> to vector<128x32xf32>
    %426 = arith.truncf %423 : vector<5x128xf32> to vector<5x128xbf16>
    %427 = arith.truncf %425 : vector<128x32xf32> to vector<128x32xbf16>
    %cst_160 = arith.constant dense<0.000000e+00> : vector<5x32xf32>
    %428 = tpu.matmul %426, %427, %cst_160 {dimension_numbers = #tpu.dot_dimension_numbers<[1], [0], [0], [1], [0, 0, 1, 1], [], []>} : vector<5x128xbf16>, vector<128x32xbf16>, vector<5x32xf32> -> vector<5x32xf32>
    %c1_161 = arith.constant 1 : index
    %c0_162 = arith.constant 0 : index
    %c0_163 = arith.constant 0 : index
    %429 = vector.load %arg17[%c1_161, %c0_162, %c0_163] : memref<2x1x32xf32, #tpu.memory_space<vmem>>, vector<1x1x32xf32>
    %430 = vector.shape_cast %429 : vector<1x1x32xf32> to vector<1x32xf32>
    %431 = vector.broadcast %430 : vector<1x32xf32> to vector<5x32xf32>
    %432 = arith.addf %428, %431 : vector<5x32xf32>
    %433 = arith.addf %380, %432 : vector<5x32xf32>
    %434 = vector.extract_strided_slice %433 {offsets = [0, 0], sizes = [1, 32], strides = [1, 1]} : vector<5x32xf32> to vector<1x32xf32>
    %c0_164 = arith.constant 0 : index
    %c0_165 = arith.constant 0 : index
    %435 = vector.load %arg18[%c0_164, %c0_165] : memref<1x32xf32, #tpu.memory_space<vmem>>, vector<1x32xf32>
    %c0_166 = arith.constant 0 : index
    %c0_167 = arith.constant 0 : index
    %436 = vector.load %arg19[%c0_166, %c0_167] : memref<1x32xf32, #tpu.memory_space<vmem>>, vector<1x32xf32>
    %cst_168 = arith.constant dense<0.000000e+00> : vector<1xf32>
    %437 = vector.multi_reduction <add>, %434, %cst_168 [1] : vector<1x32xf32> to vector<1xf32>
    %438 = vector.shape_cast %437 : vector<1xf32> to vector<1x1xf32>
    %cst_169 = arith.constant 3.200000e+01 : f32
    %439 = vector.broadcast %cst_169 : f32 to vector<1x1xf32>
    %440 = arith.divf %438, %439 : vector<1x1xf32>
    %441 = vector.broadcast %440 : vector<1x1xf32> to vector<1x32xf32>
    %442 = arith.subf %434, %441 : vector<1x32xf32>
    %443 = arith.mulf %442, %442 : vector<1x32xf32>
    %cst_170 = arith.constant dense<0.000000e+00> : vector<1xf32>
    %444 = vector.multi_reduction <add>, %443, %cst_170 [1] : vector<1x32xf32> to vector<1xf32>
    %445 = vector.shape_cast %444 : vector<1xf32> to vector<1x1xf32>
    %cst_171 = arith.constant 3.200000e+01 : f32
    %446 = vector.broadcast %cst_171 : f32 to vector<1x1xf32>
    %447 = arith.divf %445, %446 : vector<1x1xf32>
    %448 = vector.broadcast %440 : vector<1x1xf32> to vector<1x32xf32>
    %449 = arith.subf %434, %448 : vector<1x32xf32>
    %cst_172 = arith.constant 9.99999974E-6 : f32
    %450 = vector.broadcast %cst_172 : f32 to vector<1x1xf32>
    %451 = arith.addf %447, %450 : vector<1x1xf32>
    %452 = math.rsqrt %451 : vector<1x1xf32>
    %453 = vector.broadcast %452 : vector<1x1xf32> to vector<1x32xf32>
    %454 = arith.mulf %449, %453 : vector<1x32xf32>
    %455 = arith.mulf %454, %435 : vector<1x32xf32>
    %456 = arith.addf %455, %436 : vector<1x32xf32>
    %c0_173 = arith.constant 0 : index
    %c0_174 = arith.constant 0 : index
    %457 = vector.load %arg20[%c0_173, %c0_174] : memref<32x16xf32, #tpu.memory_space<vmem>>, vector<32x16xf32>
    %458 = arith.truncf %456 : vector<1x32xf32> to vector<1x32xbf16>
    %459 = arith.truncf %457 : vector<32x16xf32> to vector<32x16xbf16>
    %cst_175 = arith.constant dense<0.000000e+00> : vector<1x16xf32>
    %460 = tpu.matmul %458, %459, %cst_175 {dimension_numbers = #tpu.dot_dimension_numbers<[1], [0], [0], [1], [0, 0, 1, 1], [], []>} : vector<1x32xbf16>, vector<32x16xbf16>, vector<1x16xf32> -> vector<1x16xf32>
    %c0_176 = arith.constant 0 : index
    %c0_177 = arith.constant 0 : index
    %c0_178 = arith.constant 0 : index
    %461 = vector.load %arg21[%c0_176, %c0_177, %c0_178] : memref<1x1x16xf32, #tpu.memory_space<vmem>>, vector<1x1x16xf32>
    %462 = vector.shape_cast %461 : vector<1x1x16xf32> to vector<1x16xf32>
    %463 = vector.shape_cast %460 : vector<1x16xf32> to vector<1x1x16xf32>
    tpu.vector_store %arg21[%c0_176, %c0_177, %c0_178], %463 {strides = array<i32>} : memref<1x1x16xf32, #tpu.memory_space<vmem>>, vector<1x1x16xf32>,
    return
  }
  func.func @transform_0(%arg0: i32) -> (i32, i32, i32) {
    %c0_i32 = arith.constant 0 : i32
    %c0_i32_0 = arith.constant 0 : i32
    %c0_i32_1 = arith.constant 0 : i32
    return %arg0, %c0_i32, %c0_i32_0 : i32, i32, i32
  }
  func.func @transform_1(%arg0: i32) -> (i32, i32) {
    %c0_i32 = arith.constant 0 : i32
    %c0_i32_0 = arith.constant 0 : i32
    %c0_i32_1 = arith.constant 0 : i32
    return %c0_i32, %c0_i32_0 : i32, i32
  }
  func.func @transform_2(%arg0: i32) -> (i32, i32) {
    %c0_i32 = arith.constant 0 : i32
    %c0_i32_0 = arith.constant 0 : i32
    %c0_i32_1 = arith.constant 0 : i32
    return %c0_i32, %c0_i32_0 : i32, i32
  }
  func.func @transform_3(%arg0: i32) -> (i32, i32) {
    %c0_i32 = arith.constant 0 : i32
    %c0_i32_0 = arith.constant 0 : i32
    %c0_i32_1 = arith.constant 0 : i32
    return %c0_i32, %c0_i32_0 : i32, i32
  }
  func.func @transform_4(%arg0: i32) -> (i32, i32) {
    %c0_i32 = arith.constant 0 : i32
    %c0_i32_0 = arith.constant 0 : i32
    %c0_i32_1 = arith.constant 0 : i32
    return %c0_i32, %c0_i32_0 : i32, i32
  }
  func.func @transform_5(%arg0: i32) -> (i32, i32, i32) {
    %c0_i32 = arith.constant 0 : i32
    %c0_i32_0 = arith.constant 0 : i32
    %c0_i32_1 = arith.constant 0 : i32
    %c0_i32_2 = arith.constant 0 : i32
    return %c0_i32, %c0_i32_0, %c0_i32_1 : i32, i32, i32
  }
  func.func @transform_6(%arg0: i32) -> (i32, i32, i32) {
    %c0_i32 = arith.constant 0 : i32
    %c0_i32_0 = arith.constant 0 : i32
    %c0_i32_1 = arith.constant 0 : i32
    %c0_i32_2 = arith.constant 0 : i32
    return %c0_i32, %c0_i32_0, %c0_i32_1 : i32, i32, i32
  }
  func.func @transform_7(%arg0: i32) -> (i32, i32, i32) {
    %c0_i32 = arith.constant 0 : i32
    %c0_i32_0 = arith.constant 0 : i32
    %c0_i32_1 = arith.constant 0 : i32
    %c0_i32_2 = arith.constant 0 : i32
    return %c0_i32, %c0_i32_0, %c0_i32_1 : i32, i32, i32
  }
  func.func @transform_8(%arg0: i32) -> (i32, i32, i32) {
    %c0_i32 = arith.constant 0 : i32
    %c0_i32_0 = arith.constant 0 : i32
    %c0_i32_1 = arith.constant 0 : i32
    %c0_i32_2 = arith.constant 0 : i32
    return %c0_i32, %c0_i32_0, %c0_i32_1 : i32, i32, i32
  }
  func.func @transform_9(%arg0: i32) -> (i32, i32, i32) {
    %c0_i32 = arith.constant 0 : i32
    %c0_i32_0 = arith.constant 0 : i32
    %c0_i32_1 = arith.constant 0 : i32
    %c0_i32_2 = arith.constant 0 : i32
    return %c0_i32, %c0_i32_0, %c0_i32_1 : i32, i32, i32
  }
  func.func @transform_10(%arg0: i32) -> (i32, i32, i32) {
    %c0_i32 = arith.constant 0 : i32
    %c0_i32_0 = arith.constant 0 : i32
    %c0_i32_1 = arith.constant 0 : i32
    %c0_i32_2 = arith.constant 0 : i32
    return %c0_i32, %c0_i32_0, %c0_i32_1 : i32, i32, i32
  }
  func.func @transform_11(%arg0: i32) -> (i32, i32, i32) {
    %c0_i32 = arith.constant 0 : i32
    %c0_i32_0 = arith.constant 0 : i32
    %c0_i32_1 = arith.constant 0 : i32
    %c0_i32_2 = arith.constant 0 : i32
    return %c0_i32, %c0_i32_0, %c0_i32_1 : i32, i32, i32
  }
  func.func @transform_12(%arg0: i32) -> (i32, i32, i32) {
    %c0_i32 = arith.constant 0 : i32
    %c0_i32_0 = arith.constant 0 : i32
    %c0_i32_1 = arith.constant 0 : i32
    %c0_i32_2 = arith.constant 0 : i32
    return %c0_i32, %c0_i32_0, %c0_i32_1 : i32, i32, i32
  }
  func.func @transform_13(%arg0: i32) -> (i32, i32, i32) {
    %c0_i32 = arith.constant 0 : i32
    %c0_i32_0 = arith.constant 0 : i32
    %c0_i32_1 = arith.constant 0 : i32
    %c0_i32_2 = arith.constant 0 : i32
    return %c0_i32, %c0_i32_0, %c0_i32_1 : i32, i32, i32
  }
  func.func @transform_14(%arg0: i32) -> (i32, i32, i32) {
    %c0_i32 = arith.constant 0 : i32
    %c0_i32_0 = arith.constant 0 : i32
    %c0_i32_1 = arith.constant 0 : i32
    %c0_i32_2 = arith.constant 0 : i32
    return %c0_i32, %c0_i32_0, %c0_i32_1 : i32, i32, i32
  }
  func.func @transform_15(%arg0: i32) -> (i32, i32, i32) {
    %c0_i32 = arith.constant 0 : i32
    %c0_i32_0 = arith.constant 0 : i32
    %c0_i32_1 = arith.constant 0 : i32
    %c0_i32_2 = arith.constant 0 : i32
    return %c0_i32, %c0_i32_0, %c0_i32_1 : i32, i32, i32
  }
  func.func @transform_16(%arg0: i32) -> (i32, i32, i32) {
    %c0_i32 = arith.constant 0 : i32
    %c0_i32_0 = arith.constant 0 : i32
    %c0_i32_1 = arith.constant 0 : i32
    %c0_i32_2 = arith.constant 0 : i32
    return %c0_i32, %c0_i32_0, %c0_i32_1 : i32, i32, i32
  }
  func.func @transform_17(%arg0: i32) -> (i32, i32) {
    %c0_i32 = arith.constant 0 : i32
    %c0_i32_0 = arith.constant 0 : i32
    %c0_i32_1 = arith.constant 0 : i32
    return %c0_i32, %c0_i32_0 : i32, i32
  }
  func.func @transform_18(%arg0: i32) -> (i32, i32) {
    %c0_i32 = arith.constant 0 : i32
    %c0_i32_0 = arith.constant 0 : i32
    %c0_i32_1 = arith.constant 0 : i32
    return %c0_i32, %c0_i32_0 : i32, i32
  }
  func.func @transform_19(%arg0: i32) -> (i32, i32) {
    %c0_i32 = arith.constant 0 : i32
    %c0_i32_0 = arith.constant 0 : i32
    %c0_i32_1 = arith.constant 0 : i32
    return %c0_i32, %c0_i32_0 : i32, i32
  }
  func.func @transform_20(%arg0: i32) -> (i32, i32, i32) {
    %c0_i32 = arith.constant 0 : i32
    %c0_i32_0 = arith.constant 0 : i32
    %c0_i32_1 = arith.constant 0 : i32
    return %arg0, %c0_i32, %c0_i32_0 : i32, i32, i32
  }
}

module attributes {stable_mosaic.version = 11 : i64} {
  func.func @_text_tower_kernel(%arg0: i32, %arg1: memref<1x8x32xf32, #tpu.memory_space<vmem>>, %arg2: memref<1x8x1xf32, #tpu.memory_space<vmem>>, %arg3: memref<2x1x32xf32, #tpu.memory_space<vmem>>, %arg4: memref<2x1x32xf32, #tpu.memory_space<vmem>>, %arg5: memref<2x32x96xf32, #tpu.memory_space<vmem>>, %arg6: memref<2x1x96xf32, #tpu.memory_space<vmem>>, %arg7: memref<2x32x32xf32, #tpu.memory_space<vmem>>, %arg8: memref<2x1x32xf32, #tpu.memory_space<vmem>>, %arg9: memref<2x1x32xf32, #tpu.memory_space<vmem>>, %arg10: memref<2x1x32xf32, #tpu.memory_space<vmem>>, %arg11: memref<2x32x128xf32, #tpu.memory_space<vmem>>, %arg12: memref<2x1x128xf32, #tpu.memory_space<vmem>>, %arg13: memref<2x128x32xf32, #tpu.memory_space<vmem>>, %arg14: memref<2x1x32xf32, #tpu.memory_space<vmem>>, %arg15: memref<1x32xf32, #tpu.memory_space<vmem>>, %arg16: memref<1x32xf32, #tpu.memory_space<vmem>>, %arg17: memref<32x16xf32, #tpu.memory_space<vmem>>, %arg18: memref<1x1x16xf32, #tpu.memory_space<vmem>>) attributes {dimension_semantics = [#tpu.dimension_semantics<parallel>], iteration_bounds = array<i64: 2>, scalar_prefetch = 0 : i64, scratch_operands = 0 : i64, tpu.core_type = #tpu.core_type<tc>, window_params = [{transform_indices = @transform_0, window_bounds = array<i64: 1, 8, 32>}, {transform_indices = @transform_1, window_bounds = array<i64: 1, 8, 1>}, {pipeline_mode = #tpu.pipeline_mode<synchronous>, transform_indices = @transform_2, window_bounds = array<i64: 2, 1, 32>}, {pipeline_mode = #tpu.pipeline_mode<synchronous>, transform_indices = @transform_3, window_bounds = array<i64: 2, 1, 32>}, {pipeline_mode = #tpu.pipeline_mode<synchronous>, transform_indices = @transform_4, window_bounds = array<i64: 2, 32, 96>}, {pipeline_mode = #tpu.pipeline_mode<synchronous>, transform_indices = @transform_5, window_bounds = array<i64: 2, 1, 96>}, {pipeline_mode = #tpu.pipeline_mode<synchronous>, transform_indices = @transform_6, window_bounds = array<i64: 2, 32, 32>}, {pipeline_mode = #tpu.pipeline_mode<synchronous>, transform_indices = @transform_7, window_bounds = array<i64: 2, 1, 32>}, {pipeline_mode = #tpu.pipeline_mode<synchronous>, transform_indices = @transform_8, window_bounds = array<i64: 2, 1, 32>}, {pipeline_mode = #tpu.pipeline_mode<synchronous>, transform_indices = @transform_9, window_bounds = array<i64: 2, 1, 32>}, {pipeline_mode = #tpu.pipeline_mode<synchronous>, transform_indices = @transform_10, window_bounds = array<i64: 2, 32, 128>}, {pipeline_mode = #tpu.pipeline_mode<synchronous>, transform_indices = @transform_11, window_bounds = array<i64: 2, 1, 128>}, {pipeline_mode = #tpu.pipeline_mode<synchronous>, transform_indices = @transform_12, window_bounds = array<i64: 2, 128, 32>}, {pipeline_mode = #tpu.pipeline_mode<synchronous>, transform_indices = @transform_13, window_bounds = array<i64: 2, 1, 32>}, {pipeline_mode = #tpu.pipeline_mode<synchronous>, transform_indices = @transform_14, window_bounds = array<i64: 1, 32>}, {pipeline_mode = #tpu.pipeline_mode<synchronous>, transform_indices = @transform_15, window_bounds = array<i64: 1, 32>}, {pipeline_mode = #tpu.pipeline_mode<synchronous>, transform_indices = @transform_16, window_bounds = array<i64: 32, 16>}, {transform_indices = @transform_17, window_bounds = array<i64: 1, 1, 16>}]} {
    %c0 = arith.constant 0 : index
    %c0_0 = arith.constant 0 : index
    %c0_1 = arith.constant 0 : index
    %0 = vector.load %arg1[%c0, %c0_0, %c0_1] : memref<1x8x32xf32, #tpu.memory_space<vmem>>, vector<1x8x32xf32>
    %1 = vector.shape_cast %0 : vector<1x8x32xf32> to vector<8x32xf32>
    %2 = tpu.iota {dimensions = array<i32: 0>} : vector<8x8xi32>
    %3 = tpu.iota {dimensions = array<i32: 1>} : vector<8x8xi32>
    %4 = arith.cmpi sgt, %3, %2 : vector<8x8xi32>
    %cst = arith.constant -1.000000e+09 : f32
    %cst_2 = arith.constant 0.000000e+00 : f32
    %5 = vector.broadcast %cst : f32 to vector<8x8xf32>
    %6 = vector.broadcast %cst_2 : f32 to vector<8x8xf32>
    %7 = arith.select %4, %5, %6 : vector<8x8xi1>, vector<8x8xf32>
    %c0_3 = arith.constant 0 : index
    %c0_4 = arith.constant 0 : index
    %c0_5 = arith.constant 0 : index
    %8 = vector.load %arg3[%c0_3, %c0_4, %c0_5] : memref<2x1x32xf32, #tpu.memory_space<vmem>>, vector<1x1x32xf32>
    %9 = vector.shape_cast %8 : vector<1x1x32xf32> to vector<1x32xf32>
    %c0_6 = arith.constant 0 : index
    %c0_7 = arith.constant 0 : index
    %c0_8 = arith.constant 0 : index
    %10 = vector.load %arg4[%c0_6, %c0_7, %c0_8] : memref<2x1x32xf32, #tpu.memory_space<vmem>>, vector<1x1x32xf32>
    %11 = vector.shape_cast %10 : vector<1x1x32xf32> to vector<1x32xf32>
    %cst_9 = arith.constant dense<0.000000e+00> : vector<8xf32>
    %12 = vector.multi_reduction <add>, %1, %cst_9 [1] : vector<8x32xf32> to vector<8xf32>
    %13 = vector.shape_cast %12 : vector<8xf32> to vector<8x1xf32>
    %cst_10 = arith.constant 3.200000e+01 : f32
    %14 = vector.broadcast %cst_10 : f32 to vector<8x1xf32>
    %15 = arith.divf %13, %14 : vector<8x1xf32>
    %16 = vector.broadcast %15 : vector<8x1xf32> to vector<8x32xf32>
    %17 = arith.subf %1, %16 : vector<8x32xf32>
    %18 = arith.mulf %17, %17 : vector<8x32xf32>
    %cst_11 = arith.constant dense<0.000000e+00> : vector<8xf32>
    %19 = vector.multi_reduction <add>, %18, %cst_11 [1] : vector<8x32xf32> to vector<8xf32>
    %20 = vector.shape_cast %19 : vector<8xf32> to vector<8x1xf32>
    %cst_12 = arith.constant 3.200000e+01 : f32
    %21 = vector.broadcast %cst_12 : f32 to vector<8x1xf32>
    %22 = arith.divf %20, %21 : vector<8x1xf32>
    %23 = vector.broadcast %15 : vector<8x1xf32> to vector<8x32xf32>
    %24 = arith.subf %1, %23 : vector<8x32xf32>
    %cst_13 = arith.constant 9.99999974E-6 : f32
    %25 = vector.broadcast %cst_13 : f32 to vector<8x1xf32>
    %26 = arith.addf %22, %25 : vector<8x1xf32>
    %27 = math.rsqrt %26 : vector<8x1xf32>
    %28 = vector.broadcast %27 : vector<8x1xf32> to vector<8x32xf32>
    %29 = arith.mulf %24, %28 : vector<8x32xf32>
    %30 = vector.broadcast %9 : vector<1x32xf32> to vector<8x32xf32>
    %31 = arith.mulf %29, %30 : vector<8x32xf32>
    %32 = vector.broadcast %11 : vector<1x32xf32> to vector<8x32xf32>
    %33 = arith.addf %31, %32 : vector<8x32xf32>
    %c0_14 = arith.constant 0 : index
    %c0_15 = arith.constant 0 : index
    %c0_16 = arith.constant 0 : index
    %34 = vector.load %arg5[%c0_14, %c0_15, %c0_16] : memref<2x32x96xf32, #tpu.memory_space<vmem>>, vector<1x32x96xf32>
    %35 = vector.shape_cast %34 : vector<1x32x96xf32> to vector<32x96xf32>
    %36 = arith.truncf %33 : vector<8x32xf32> to vector<8x32xbf16>
    %37 = arith.truncf %35 : vector<32x96xf32> to vector<32x96xbf16>
    %cst_17 = arith.constant dense<0.000000e+00> : vector<8x96xf32>
    %38 = tpu.matmul %36, %37, %cst_17 {dimension_numbers = #tpu.dot_dimension_numbers<[1], [0], [0], [1], [0, 0, 1, 1], [], []>} : vector<8x32xbf16>, vector<32x96xbf16>, vector<8x96xf32> -> vector<8x96xf32>
    %c0_18 = arith.constant 0 : index
    %c0_19 = arith.constant 0 : index
    %c0_20 = arith.constant 0 : index
    %39 = vector.load %arg6[%c0_18, %c0_19, %c0_20] : memref<2x1x96xf32, #tpu.memory_space<vmem>>, vector<1x1x96xf32>
    %40 = vector.shape_cast %39 : vector<1x1x96xf32> to vector<1x96xf32>
    %41 = vector.broadcast %40 : vector<1x96xf32> to vector<8x96xf32>
    %42 = arith.addf %38, %41 : vector<8x96xf32>
    %43 = vector.extract_strided_slice %42 {offsets = [0, 0], sizes = [8, 32], strides = [1, 1]} : vector<8x96xf32> to vector<8x32xf32>
    %44 = vector.extract_strided_slice %42 {offsets = [0, 32], sizes = [8, 32], strides = [1, 1]} : vector<8x96xf32> to vector<8x32xf32>
    %45 = vector.extract_strided_slice %42 {offsets = [0, 64], sizes = [8, 32], strides = [1, 1]} : vector<8x96xf32> to vector<8x32xf32>
    %c0_21 = arith.constant 0 : index
    %c0_22 = arith.constant 0 : index
    %c0_23 = arith.constant 0 : index
    %46 = vector.load %arg7[%c0_21, %c0_22, %c0_23] : memref<2x32x32xf32, #tpu.memory_space<vmem>>, vector<1x32x32xf32>
    %47 = vector.shape_cast %46 : vector<1x32x32xf32> to vector<32x32xf32>
    %48 = vector.extract_strided_slice %43 {offsets = [0, 0], sizes = [8, 8], strides = [1, 1]} : vector<8x32xf32> to vector<8x8xf32>
    %cst_24 = arith.constant 0.353553385 : f32
    %49 = vector.broadcast %cst_24 : f32 to vector<8x8xf32>
    %50 = arith.mulf %48, %49 : vector<8x8xf32>
    %51 = vector.extract_strided_slice %44 {offsets = [0, 0], sizes = [8, 8], strides = [1, 1]} : vector<8x32xf32> to vector<8x8xf32>
    %52 = arith.truncf %50 : vector<8x8xf32> to vector<8x8xbf16>
    %53 = arith.truncf %51 : vector<8x8xf32> to vector<8x8xbf16>
    %cst_25 = arith.constant dense<0.000000e+00> : vector<8x8xf32>
    %54 = tpu.matmul %52, %53, %cst_25 {dimension_numbers = #tpu.dot_dimension_numbers<[1], [1], [0], [0], [0, 0, 1, 0], [], []>} : vector<8x8xbf16>, vector<8x8xbf16>, vector<8x8xf32> -> vector<8x8xf32>
    %55 = arith.addf %54, %7 : vector<8x8xf32>
    %cst_26 = arith.constant dense<0xFF800000> : vector<8xf32>
    %56 = vector.multi_reduction <maximumf>, %55, %cst_26 [1] : vector<8x8xf32> to vector<8xf32>
    %57 = vector.shape_cast %56 : vector<8xf32> to vector<8x1xf32>
    %58 = vector.broadcast %57 : vector<8x1xf32> to vector<8x8xf32>
    %59 = arith.subf %55, %58 : vector<8x8xf32>
    %60 = math.exp %59 : vector<8x8xf32>
    %cst_27 = arith.constant dense<0.000000e+00> : vector<8xf32>
    %61 = vector.multi_reduction <add>, %60, %cst_27 [1] : vector<8x8xf32> to vector<8xf32>
    %62 = vector.shape_cast %61 : vector<8xf32> to vector<8x1xf32>
    %63 = tpu.reciprocal %62 {approx = true} : vector<8x1xf32> -> vector<8x1xf32>
    %64 = vector.broadcast %63 : vector<8x1xf32> to vector<8x8xf32>
    %65 = arith.mulf %60, %64 : vector<8x8xf32>
    %66 = vector.extract_strided_slice %45 {offsets = [0, 0], sizes = [8, 8], strides = [1, 1]} : vector<8x32xf32> to vector<8x8xf32>
    %67 = arith.truncf %65 : vector<8x8xf32> to vector<8x8xbf16>
    %68 = arith.truncf %66 : vector<8x8xf32> to vector<8x8xbf16>
    %cst_28 = arith.constant dense<0.000000e+00> : vector<8x8xf32>
    %69 = tpu.matmul %67, %68, %cst_28 {dimension_numbers = #tpu.dot_dimension_numbers<[1], [0], [0], [1], [0, 0, 1, 1], [], []>} : vector<8x8xbf16>, vector<8x8xbf16>, vector<8x8xf32> -> vector<8x8xf32>
    %70 = vector.extract_strided_slice %47 {offsets = [0, 0], sizes = [8, 32], strides = [1, 1]} : vector<32x32xf32> to vector<8x32xf32>
    %71 = arith.truncf %69 : vector<8x8xf32> to vector<8x8xbf16>
    %72 = arith.truncf %70 : vector<8x32xf32> to vector<8x32xbf16>
    %cst_29 = arith.constant dense<0.000000e+00> : vector<8x32xf32>
    %73 = tpu.matmul %71, %72, %cst_29 {dimension_numbers = #tpu.dot_dimension_numbers<[1], [0], [0], [1], [0, 0, 1, 1], [], []>} : vector<8x8xbf16>, vector<8x32xbf16>, vector<8x32xf32> -> vector<8x32xf32>
    %74 = vector.extract_strided_slice %43 {offsets = [0, 8], sizes = [8, 8], strides = [1, 1]} : vector<8x32xf32> to vector<8x8xf32>
    %cst_30 = arith.constant 0.353553385 : f32
    %75 = vector.broadcast %cst_30 : f32 to vector<8x8xf32>
    %76 = arith.mulf %74, %75 : vector<8x8xf32>
    %77 = vector.extract_strided_slice %44 {offsets = [0, 8], sizes = [8, 8], strides = [1, 1]} : vector<8x32xf32> to vector<8x8xf32>
    %78 = arith.truncf %76 : vector<8x8xf32> to vector<8x8xbf16>
    %79 = arith.truncf %77 : vector<8x8xf32> to vector<8x8xbf16>
    %cst_31 = arith.constant dense<0.000000e+00> : vector<8x8xf32>
    %80 = tpu.matmul %78, %79, %cst_31 {dimension_numbers = #tpu.dot_dimension_numbers<[1], [1], [0], [0], [0, 0, 1, 0], [], []>} : vector<8x8xbf16>, vector<8x8xbf16>, vector<8x8xf32> -> vector<8x8xf32>
    %81 = arith.addf %80, %7 : vector<8x8xf32>
    %cst_32 = arith.constant dense<0xFF800000> : vector<8xf32>
    %82 = vector.multi_reduction <maximumf>, %81, %cst_32 [1] : vector<8x8xf32> to vector<8xf32>
    %83 = vector.shape_cast %82 : vector<8xf32> to vector<8x1xf32>
    %84 = vector.broadcast %83 : vector<8x1xf32> to vector<8x8xf32>
    %85 = arith.subf %81, %84 : vector<8x8xf32>
    %86 = math.exp %85 : vector<8x8xf32>
    %cst_33 = arith.constant dense<0.000000e+00> : vector<8xf32>
    %87 = vector.multi_reduction <add>, %86, %cst_33 [1] : vector<8x8xf32> to vector<8xf32>
    %88 = vector.shape_cast %87 : vector<8xf32> to vector<8x1xf32>
    %89 = tpu.reciprocal %88 {approx = true} : vector<8x1xf32> -> vector<8x1xf32>
    %90 = vector.broadcast %89 : vector<8x1xf32> to vector<8x8xf32>
    %91 = arith.mulf %86, %90 : vector<8x8xf32>
    %92 = vector.extract_strided_slice %45 {offsets = [0, 8], sizes = [8, 8], strides = [1, 1]} : vector<8x32xf32> to vector<8x8xf32>
    %93 = arith.truncf %91 : vector<8x8xf32> to vector<8x8xbf16>
    %94 = arith.truncf %92 : vector<8x8xf32> to vector<8x8xbf16>
    %cst_34 = arith.constant dense<0.000000e+00> : vector<8x8xf32>
    %95 = tpu.matmul %93, %94, %cst_34 {dimension_numbers = #tpu.dot_dimension_numbers<[1], [0], [0], [1], [0, 0, 1, 1], [], []>} : vector<8x8xbf16>, vector<8x8xbf16>, vector<8x8xf32> -> vector<8x8xf32>
    %96 = vector.extract_strided_slice %47 {offsets = [8, 0], sizes = [8, 32], strides = [1, 1]} : vector<32x32xf32> to vector<8x32xf32>
    %97 = arith.truncf %95 : vector<8x8xf32> to vector<8x8xbf16>
    %98 = arith.truncf %96 : vector<8x32xf32> to vector<8x32xbf16>
    %cst_35 = arith.constant dense<0.000000e+00> : vector<8x32xf32>
    %99 = tpu.matmul %97, %98, %cst_35 {dimension_numbers = #tpu.dot_dimension_numbers<[1], [0], [0], [1], [0, 0, 1, 1], [], []>} : vector<8x8xbf16>, vector<8x32xbf16>, vector<8x32xf32> -> vector<8x32xf32>
    %100 = arith.addf %73, %99 : vector<8x32xf32>
    %101 = vector.extract_strided_slice %43 {offsets = [0, 16], sizes = [8, 8], strides = [1, 1]} : vector<8x32xf32> to vector<8x8xf32>
    %cst_36 = arith.constant 0.353553385 : f32
    %102 = vector.broadcast %cst_36 : f32 to vector<8x8xf32>
    %103 = arith.mulf %101, %102 : vector<8x8xf32>
    %104 = vector.extract_strided_slice %44 {offsets = [0, 16], sizes = [8, 8], strides = [1, 1]} : vector<8x32xf32> to vector<8x8xf32>
    %105 = arith.truncf %103 : vector<8x8xf32> to vector<8x8xbf16>
    %106 = arith.truncf %104 : vector<8x8xf32> to vector<8x8xbf16>
    %cst_37 = arith.constant dense<0.000000e+00> : vector<8x8xf32>
    %107 = tpu.matmul %105, %106, %cst_37 {dimension_numbers = #tpu.dot_dimension_numbers<[1], [1], [0], [0], [0, 0, 1, 0], [], []>} : vector<8x8xbf16>, vector<8x8xbf16>, vector<8x8xf32> -> vector<8x8xf32>
    %108 = arith.addf %107, %7 : vector<8x8xf32>
    %cst_38 = arith.constant dense<0xFF800000> : vector<8xf32>
    %109 = vector.multi_reduction <maximumf>, %108, %cst_38 [1] : vector<8x8xf32> to vector<8xf32>
    %110 = vector.shape_cast %109 : vector<8xf32> to vector<8x1xf32>
    %111 = vector.broadcast %110 : vector<8x1xf32> to vector<8x8xf32>
    %112 = arith.subf %108, %111 : vector<8x8xf32>
    %113 = math.exp %112 : vector<8x8xf32>
    %cst_39 = arith.constant dense<0.000000e+00> : vector<8xf32>
    %114 = vector.multi_reduction <add>, %113, %cst_39 [1] : vector<8x8xf32> to vector<8xf32>
    %115 = vector.shape_cast %114 : vector<8xf32> to vector<8x1xf32>
    %116 = tpu.reciprocal %115 {approx = true} : vector<8x1xf32> -> vector<8x1xf32>
    %117 = vector.broadcast %116 : vector<8x1xf32> to vector<8x8xf32>
    %118 = arith.mulf %113, %117 : vector<8x8xf32>
    %119 = vector.extract_strided_slice %45 {offsets = [0, 16], sizes = [8, 8], strides = [1, 1]} : vector<8x32xf32> to vector<8x8xf32>
    %120 = arith.truncf %118 : vector<8x8xf32> to vector<8x8xbf16>
    %121 = arith.truncf %119 : vector<8x8xf32> to vector<8x8xbf16>
    %cst_40 = arith.constant dense<0.000000e+00> : vector<8x8xf32>
    %122 = tpu.matmul %120, %121, %cst_40 {dimension_numbers = #tpu.dot_dimension_numbers<[1], [0], [0], [1], [0, 0, 1, 1], [], []>} : vector<8x8xbf16>, vector<8x8xbf16>, vector<8x8xf32> -> vector<8x8xf32>
    %123 = vector.extract_strided_slice %47 {offsets = [16, 0], sizes = [8, 32], strides = [1, 1]} : vector<32x32xf32> to vector<8x32xf32>
    %124 = arith.truncf %122 : vector<8x8xf32> to vector<8x8xbf16>
    %125 = arith.truncf %123 : vector<8x32xf32> to vector<8x32xbf16>
    %cst_41 = arith.constant dense<0.000000e+00> : vector<8x32xf32>
    %126 = tpu.matmul %124, %125, %cst_41 {dimension_numbers = #tpu.dot_dimension_numbers<[1], [0], [0], [1], [0, 0, 1, 1], [], []>} : vector<8x8xbf16>, vector<8x32xbf16>, vector<8x32xf32> -> vector<8x32xf32>
    %127 = arith.addf %100, %126 : vector<8x32xf32>
    %128 = vector.extract_strided_slice %43 {offsets = [0, 24], sizes = [8, 8], strides = [1, 1]} : vector<8x32xf32> to vector<8x8xf32>
    %cst_42 = arith.constant 0.353553385 : f32
    %129 = vector.broadcast %cst_42 : f32 to vector<8x8xf32>
    %130 = arith.mulf %128, %129 : vector<8x8xf32>
    %131 = vector.extract_strided_slice %44 {offsets = [0, 24], sizes = [8, 8], strides = [1, 1]} : vector<8x32xf32> to vector<8x8xf32>
    %132 = arith.truncf %130 : vector<8x8xf32> to vector<8x8xbf16>
    %133 = arith.truncf %131 : vector<8x8xf32> to vector<8x8xbf16>
    %cst_43 = arith.constant dense<0.000000e+00> : vector<8x8xf32>
    %134 = tpu.matmul %132, %133, %cst_43 {dimension_numbers = #tpu.dot_dimension_numbers<[1], [1], [0], [0], [0, 0, 1, 0], [], []>} : vector<8x8xbf16>, vector<8x8xbf16>, vector<8x8xf32> -> vector<8x8xf32>
    %135 = arith.addf %134, %7 : vector<8x8xf32>
    %cst_44 = arith.constant dense<0xFF800000> : vector<8xf32>
    %136 = vector.multi_reduction <maximumf>, %135, %cst_44 [1] : vector<8x8xf32> to vector<8xf32>
    %137 = vector.shape_cast %136 : vector<8xf32> to vector<8x1xf32>
    %138 = vector.broadcast %137 : vector<8x1xf32> to vector<8x8xf32>
    %139 = arith.subf %135, %138 : vector<8x8xf32>
    %140 = math.exp %139 : vector<8x8xf32>
    %cst_45 = arith.constant dense<0.000000e+00> : vector<8xf32>
    %141 = vector.multi_reduction <add>, %140, %cst_45 [1] : vector<8x8xf32> to vector<8xf32>
    %142 = vector.shape_cast %141 : vector<8xf32> to vector<8x1xf32>
    %143 = tpu.reciprocal %142 {approx = true} : vector<8x1xf32> -> vector<8x1xf32>
    %144 = vector.broadcast %143 : vector<8x1xf32> to vector<8x8xf32>
    %145 = arith.mulf %140, %144 : vector<8x8xf32>
    %146 = vector.extract_strided_slice %45 {offsets = [0, 24], sizes = [8, 8], strides = [1, 1]} : vector<8x32xf32> to vector<8x8xf32>
    %147 = arith.truncf %145 : vector<8x8xf32> to vector<8x8xbf16>
    %148 = arith.truncf %146 : vector<8x8xf32> to vector<8x8xbf16>
    %cst_46 = arith.constant dense<0.000000e+00> : vector<8x8xf32>
    %149 = tpu.matmul %147, %148, %cst_46 {dimension_numbers = #tpu.dot_dimension_numbers<[1], [0], [0], [1], [0, 0, 1, 1], [], []>} : vector<8x8xbf16>, vector<8x8xbf16>, vector<8x8xf32> -> vector<8x8xf32>
    %150 = vector.extract_strided_slice %47 {offsets = [24, 0], sizes = [8, 32], strides = [1, 1]} : vector<32x32xf32> to vector<8x32xf32>
    %151 = arith.truncf %149 : vector<8x8xf32> to vector<8x8xbf16>
    %152 = arith.truncf %150 : vector<8x32xf32> to vector<8x32xbf16>
    %cst_47 = arith.constant dense<0.000000e+00> : vector<8x32xf32>
    %153 = tpu.matmul %151, %152, %cst_47 {dimension_numbers = #tpu.dot_dimension_numbers<[1], [0], [0], [1], [0, 0, 1, 1], [], []>} : vector<8x8xbf16>, vector<8x32xbf16>, vector<8x32xf32> -> vector<8x32xf32>
    %154 = arith.addf %127, %153 : vector<8x32xf32>
    %155 = arith.addf %1, %154 : vector<8x32xf32>
    %c0_48 = arith.constant 0 : index
    %c0_49 = arith.constant 0 : index
    %c0_50 = arith.constant 0 : index
    %156 = vector.load %arg8[%c0_48, %c0_49, %c0_50] : memref<2x1x32xf32, #tpu.memory_space<vmem>>, vector<1x1x32xf32>
    %157 = vector.shape_cast %156 : vector<1x1x32xf32> to vector<1x32xf32>
    %158 = vector.broadcast %157 : vector<1x32xf32> to vector<8x32xf32>
    %159 = arith.addf %155, %158 : vector<8x32xf32>
    %c0_51 = arith.constant 0 : index
    %c0_52 = arith.constant 0 : index
    %c0_53 = arith.constant 0 : index
    %160 = vector.load %arg9[%c0_51, %c0_52, %c0_53] : memref<2x1x32xf32, #tpu.memory_space<vmem>>, vector<1x1x32xf32>
    %161 = vector.shape_cast %160 : vector<1x1x32xf32> to vector<1x32xf32>
    %c0_54 = arith.constant 0 : index
    %c0_55 = arith.constant 0 : index
    %c0_56 = arith.constant 0 : index
    %162 = vector.load %arg10[%c0_54, %c0_55, %c0_56] : memref<2x1x32xf32, #tpu.memory_space<vmem>>, vector<1x1x32xf32>
    %163 = vector.shape_cast %162 : vector<1x1x32xf32> to vector<1x32xf32>
    %cst_57 = arith.constant dense<0.000000e+00> : vector<8xf32>
    %164 = vector.multi_reduction <add>, %159, %cst_57 [1] : vector<8x32xf32> to vector<8xf32>
    %165 = vector.shape_cast %164 : vector<8xf32> to vector<8x1xf32>
    %cst_58 = arith.constant 3.200000e+01 : f32
    %166 = vector.broadcast %cst_58 : f32 to vector<8x1xf32>
    %167 = arith.divf %165, %166 : vector<8x1xf32>
    %168 = vector.broadcast %167 : vector<8x1xf32> to vector<8x32xf32>
    %169 = arith.subf %159, %168 : vector<8x32xf32>
    %170 = arith.mulf %169, %169 : vector<8x32xf32>
    %cst_59 = arith.constant dense<0.000000e+00> : vector<8xf32>
    %171 = vector.multi_reduction <add>, %170, %cst_59 [1] : vector<8x32xf32> to vector<8xf32>
    %172 = vector.shape_cast %171 : vector<8xf32> to vector<8x1xf32>
    %cst_60 = arith.constant 3.200000e+01 : f32
    %173 = vector.broadcast %cst_60 : f32 to vector<8x1xf32>
    %174 = arith.divf %172, %173 : vector<8x1xf32>
    %175 = vector.broadcast %167 : vector<8x1xf32> to vector<8x32xf32>
    %176 = arith.subf %159, %175 : vector<8x32xf32>
    %cst_61 = arith.constant 9.99999974E-6 : f32
    %177 = vector.broadcast %cst_61 : f32 to vector<8x1xf32>
    %178 = arith.addf %174, %177 : vector<8x1xf32>
    %179 = math.rsqrt %178 : vector<8x1xf32>
    %180 = vector.broadcast %179 : vector<8x1xf32> to vector<8x32xf32>
    %181 = arith.mulf %176, %180 : vector<8x32xf32>
    %182 = vector.broadcast %161 : vector<1x32xf32> to vector<8x32xf32>
    %183 = arith.mulf %181, %182 : vector<8x32xf32>
    %184 = vector.broadcast %163 : vector<1x32xf32> to vector<8x32xf32>
    %185 = arith.addf %183, %184 : vector<8x32xf32>
    %c0_62 = arith.constant 0 : index
    %c0_63 = arith.constant 0 : index
    %c0_64 = arith.constant 0 : index
    %186 = vector.load %arg11[%c0_62, %c0_63, %c0_64] : memref<2x32x128xf32, #tpu.memory_space<vmem>>, vector<1x32x128xf32>
    %187 = vector.shape_cast %186 : vector<1x32x128xf32> to vector<32x128xf32>
    %188 = arith.truncf %185 : vector<8x32xf32> to vector<8x32xbf16>
    %189 = arith.truncf %187 : vector<32x128xf32> to vector<32x128xbf16>
    %cst_65 = arith.constant dense<0.000000e+00> : vector<8x128xf32>
    %190 = tpu.matmul %188, %189, %cst_65 {dimension_numbers = #tpu.dot_dimension_numbers<[1], [0], [0], [1], [0, 0, 1, 1], [], []>} : vector<8x32xbf16>, vector<32x128xbf16>, vector<8x128xf32> -> vector<8x128xf32>
    %c0_66 = arith.constant 0 : index
    %c0_67 = arith.constant 0 : index
    %c0_68 = arith.constant 0 : index
    %191 = vector.load %arg12[%c0_66, %c0_67, %c0_68] : memref<2x1x128xf32, #tpu.memory_space<vmem>>, vector<1x1x128xf32>
    %192 = vector.shape_cast %191 : vector<1x1x128xf32> to vector<1x128xf32>
    %193 = vector.broadcast %192 : vector<1x128xf32> to vector<8x128xf32>
    %194 = arith.addf %190, %193 : vector<8x128xf32>
    %cst_69 = arith.constant 1.702000e+00 : f32
    %195 = vector.broadcast %cst_69 : f32 to vector<8x128xf32>
    %196 = arith.mulf %195, %194 : vector<8x128xf32>
    %197 = arith.negf %196 : vector<8x128xf32>
    %198 = math.exp %197 : vector<8x128xf32>
    %cst_70 = arith.constant 1.000000e+00 : f32
    %199 = vector.broadcast %cst_70 : f32 to vector<8x128xf32>
    %200 = arith.addf %199, %198 : vector<8x128xf32>
    %201 = arith.divf %199, %200 : vector<8x128xf32>
    %202 = arith.mulf %194, %201 : vector<8x128xf32>
    %c0_71 = arith.constant 0 : index
    %c0_72 = arith.constant 0 : index
    %c0_73 = arith.constant 0 : index
    %203 = vector.load %arg13[%c0_71, %c0_72, %c0_73] : memref<2x128x32xf32, #tpu.memory_space<vmem>>, vector<1x128x32xf32>
    %204 = vector.shape_cast %203 : vector<1x128x32xf32> to vector<128x32xf32>
    %205 = arith.truncf %202 : vector<8x128xf32> to vector<8x128xbf16>
    %206 = arith.truncf %204 : vector<128x32xf32> to vector<128x32xbf16>
    %cst_74 = arith.constant dense<0.000000e+00> : vector<8x32xf32>
    %207 = tpu.matmul %205, %206, %cst_74 {dimension_numbers = #tpu.dot_dimension_numbers<[1], [0], [0], [1], [0, 0, 1, 1], [], []>} : vector<8x128xbf16>, vector<128x32xbf16>, vector<8x32xf32> -> vector<8x32xf32>
    %c0_75 = arith.constant 0 : index
    %c0_76 = arith.constant 0 : index
    %c0_77 = arith.constant 0 : index
    %208 = vector.load %arg14[%c0_75, %c0_76, %c0_77] : memref<2x1x32xf32, #tpu.memory_space<vmem>>, vector<1x1x32xf32>
    %209 = vector.shape_cast %208 : vector<1x1x32xf32> to vector<1x32xf32>
    %210 = vector.broadcast %209 : vector<1x32xf32> to vector<8x32xf32>
    %211 = arith.addf %207, %210 : vector<8x32xf32>
    %212 = arith.addf %159, %211 : vector<8x32xf32>
    %c1 = arith.constant 1 : index
    %c0_78 = arith.constant 0 : index
    %c0_79 = arith.constant 0 : index
    %213 = vector.load %arg3[%c1, %c0_78, %c0_79] : memref<2x1x32xf32, #tpu.memory_space<vmem>>, vector<1x1x32xf32>
    %214 = vector.shape_cast %213 : vector<1x1x32xf32> to vector<1x32xf32>
    %c1_80 = arith.constant 1 : index
    %c0_81 = arith.constant 0 : index
    %c0_82 = arith.constant 0 : index
    %215 = vector.load %arg4[%c1_80, %c0_81, %c0_82] : memref<2x1x32xf32, #tpu.memory_space<vmem>>, vector<1x1x32xf32>
    %216 = vector.shape_cast %215 : vector<1x1x32xf32> to vector<1x32xf32>
    %cst_83 = arith.constant dense<0.000000e+00> : vector<8xf32>
    %217 = vector.multi_reduction <add>, %212, %cst_83 [1] : vector<8x32xf32> to vector<8xf32>
    %218 = vector.shape_cast %217 : vector<8xf32> to vector<8x1xf32>
    %cst_84 = arith.constant 3.200000e+01 : f32
    %219 = vector.broadcast %cst_84 : f32 to vector<8x1xf32>
    %220 = arith.divf %218, %219 : vector<8x1xf32>
    %221 = vector.broadcast %220 : vector<8x1xf32> to vector<8x32xf32>
    %222 = arith.subf %212, %221 : vector<8x32xf32>
    %223 = arith.mulf %222, %222 : vector<8x32xf32>
    %cst_85 = arith.constant dense<0.000000e+00> : vector<8xf32>
    %224 = vector.multi_reduction <add>, %223, %cst_85 [1] : vector<8x32xf32> to vector<8xf32>
    %225 = vector.shape_cast %224 : vector<8xf32> to vector<8x1xf32>
    %cst_86 = arith.constant 3.200000e+01 : f32
    %226 = vector.broadcast %cst_86 : f32 to vector<8x1xf32>
    %227 = arith.divf %225, %226 : vector<8x1xf32>
    %228 = vector.broadcast %220 : vector<8x1xf32> to vector<8x32xf32>
    %229 = arith.subf %212, %228 : vector<8x32xf32>
    %cst_87 = arith.constant 9.99999974E-6 : f32
    %230 = vector.broadcast %cst_87 : f32 to vector<8x1xf32>
    %231 = arith.addf %227, %230 : vector<8x1xf32>
    %232 = math.rsqrt %231 : vector<8x1xf32>
    %233 = vector.broadcast %232 : vector<8x1xf32> to vector<8x32xf32>
    %234 = arith.mulf %229, %233 : vector<8x32xf32>
    %235 = vector.broadcast %214 : vector<1x32xf32> to vector<8x32xf32>
    %236 = arith.mulf %234, %235 : vector<8x32xf32>
    %237 = vector.broadcast %216 : vector<1x32xf32> to vector<8x32xf32>
    %238 = arith.addf %236, %237 : vector<8x32xf32>
    %c1_88 = arith.constant 1 : index
    %c0_89 = arith.constant 0 : index
    %c0_90 = arith.constant 0 : index
    %239 = vector.load %arg5[%c1_88, %c0_89, %c0_90] : memref<2x32x96xf32, #tpu.memory_space<vmem>>, vector<1x32x96xf32>
    %240 = vector.shape_cast %239 : vector<1x32x96xf32> to vector<32x96xf32>
    %241 = arith.truncf %238 : vector<8x32xf32> to vector<8x32xbf16>
    %242 = arith.truncf %240 : vector<32x96xf32> to vector<32x96xbf16>
    %cst_91 = arith.constant dense<0.000000e+00> : vector<8x96xf32>
    %243 = tpu.matmul %241, %242, %cst_91 {dimension_numbers = #tpu.dot_dimension_numbers<[1], [0], [0], [1], [0, 0, 1, 1], [], []>} : vector<8x32xbf16>, vector<32x96xbf16>, vector<8x96xf32> -> vector<8x96xf32>
    %c1_92 = arith.constant 1 : index
    %c0_93 = arith.constant 0 : index
    %c0_94 = arith.constant 0 : index
    %244 = vector.load %arg6[%c1_92, %c0_93, %c0_94] : memref<2x1x96xf32, #tpu.memory_space<vmem>>, vector<1x1x96xf32>
    %245 = vector.shape_cast %244 : vector<1x1x96xf32> to vector<1x96xf32>
    %246 = vector.broadcast %245 : vector<1x96xf32> to vector<8x96xf32>
    %247 = arith.addf %243, %246 : vector<8x96xf32>
    %248 = vector.extract_strided_slice %247 {offsets = [0, 0], sizes = [8, 32], strides = [1, 1]} : vector<8x96xf32> to vector<8x32xf32>
    %249 = vector.extract_strided_slice %247 {offsets = [0, 32], sizes = [8, 32], strides = [1, 1]} : vector<8x96xf32> to vector<8x32xf32>
    %250 = vector.extract_strided_slice %247 {offsets = [0, 64], sizes = [8, 32], strides = [1, 1]} : vector<8x96xf32> to vector<8x32xf32>
    %c1_95 = arith.constant 1 : index
    %c0_96 = arith.constant 0 : index
    %c0_97 = arith.constant 0 : index
    %251 = vector.load %arg7[%c1_95, %c0_96, %c0_97] : memref<2x32x32xf32, #tpu.memory_space<vmem>>, vector<1x32x32xf32>
    %252 = vector.shape_cast %251 : vector<1x32x32xf32> to vector<32x32xf32>
    %253 = vector.extract_strided_slice %248 {offsets = [0, 0], sizes = [8, 8], strides = [1, 1]} : vector<8x32xf32> to vector<8x8xf32>
    %cst_98 = arith.constant 0.353553385 : f32
    %254 = vector.broadcast %cst_98 : f32 to vector<8x8xf32>
    %255 = arith.mulf %253, %254 : vector<8x8xf32>
    %256 = vector.extract_strided_slice %249 {offsets = [0, 0], sizes = [8, 8], strides = [1, 1]} : vector<8x32xf32> to vector<8x8xf32>
    %257 = arith.truncf %255 : vector<8x8xf32> to vector<8x8xbf16>
    %258 = arith.truncf %256 : vector<8x8xf32> to vector<8x8xbf16>
    %cst_99 = arith.constant dense<0.000000e+00> : vector<8x8xf32>
    %259 = tpu.matmul %257, %258, %cst_99 {dimension_numbers = #tpu.dot_dimension_numbers<[1], [1], [0], [0], [0, 0, 1, 0], [], []>} : vector<8x8xbf16>, vector<8x8xbf16>, vector<8x8xf32> -> vector<8x8xf32>
    %260 = arith.addf %259, %7 : vector<8x8xf32>
    %cst_100 = arith.constant dense<0xFF800000> : vector<8xf32>
    %261 = vector.multi_reduction <maximumf>, %260, %cst_100 [1] : vector<8x8xf32> to vector<8xf32>
    %262 = vector.shape_cast %261 : vector<8xf32> to vector<8x1xf32>
    %263 = vector.broadcast %262 : vector<8x1xf32> to vector<8x8xf32>
    %264 = arith.subf %260, %263 : vector<8x8xf32>
    %265 = math.exp %264 : vector<8x8xf32>
    %cst_101 = arith.constant dense<0.000000e+00> : vector<8xf32>
    %266 = vector.multi_reduction <add>, %265, %cst_101 [1] : vector<8x8xf32> to vector<8xf32>
    %267 = vector.shape_cast %266 : vector<8xf32> to vector<8x1xf32>
    %268 = tpu.reciprocal %267 {approx = true} : vector<8x1xf32> -> vector<8x1xf32>
    %269 = vector.broadcast %268 : vector<8x1xf32> to vector<8x8xf32>
    %270 = arith.mulf %265, %269 : vector<8x8xf32>
    %271 = vector.extract_strided_slice %250 {offsets = [0, 0], sizes = [8, 8], strides = [1, 1]} : vector<8x32xf32> to vector<8x8xf32>
    %272 = arith.truncf %270 : vector<8x8xf32> to vector<8x8xbf16>
    %273 = arith.truncf %271 : vector<8x8xf32> to vector<8x8xbf16>
    %cst_102 = arith.constant dense<0.000000e+00> : vector<8x8xf32>
    %274 = tpu.matmul %272, %273, %cst_102 {dimension_numbers = #tpu.dot_dimension_numbers<[1], [0], [0], [1], [0, 0, 1, 1], [], []>} : vector<8x8xbf16>, vector<8x8xbf16>, vector<8x8xf32> -> vector<8x8xf32>
    %275 = vector.extract_strided_slice %252 {offsets = [0, 0], sizes = [8, 32], strides = [1, 1]} : vector<32x32xf32> to vector<8x32xf32>
    %276 = arith.truncf %274 : vector<8x8xf32> to vector<8x8xbf16>
    %277 = arith.truncf %275 : vector<8x32xf32> to vector<8x32xbf16>
    %cst_103 = arith.constant dense<0.000000e+00> : vector<8x32xf32>
    %278 = tpu.matmul %276, %277, %cst_103 {dimension_numbers = #tpu.dot_dimension_numbers<[1], [0], [0], [1], [0, 0, 1, 1], [], []>} : vector<8x8xbf16>, vector<8x32xbf16>, vector<8x32xf32> -> vector<8x32xf32>
    %279 = vector.extract_strided_slice %248 {offsets = [0, 8], sizes = [8, 8], strides = [1, 1]} : vector<8x32xf32> to vector<8x8xf32>
    %cst_104 = arith.constant 0.353553385 : f32
    %280 = vector.broadcast %cst_104 : f32 to vector<8x8xf32>
    %281 = arith.mulf %279, %280 : vector<8x8xf32>
    %282 = vector.extract_strided_slice %249 {offsets = [0, 8], sizes = [8, 8], strides = [1, 1]} : vector<8x32xf32> to vector<8x8xf32>
    %283 = arith.truncf %281 : vector<8x8xf32> to vector<8x8xbf16>
    %284 = arith.truncf %282 : vector<8x8xf32> to vector<8x8xbf16>
    %cst_105 = arith.constant dense<0.000000e+00> : vector<8x8xf32>
    %285 = tpu.matmul %283, %284, %cst_105 {dimension_numbers = #tpu.dot_dimension_numbers<[1], [1], [0], [0], [0, 0, 1, 0], [], []>} : vector<8x8xbf16>, vector<8x8xbf16>, vector<8x8xf32> -> vector<8x8xf32>
    %286 = arith.addf %285, %7 : vector<8x8xf32>
    %cst_106 = arith.constant dense<0xFF800000> : vector<8xf32>
    %287 = vector.multi_reduction <maximumf>, %286, %cst_106 [1] : vector<8x8xf32> to vector<8xf32>
    %288 = vector.shape_cast %287 : vector<8xf32> to vector<8x1xf32>
    %289 = vector.broadcast %288 : vector<8x1xf32> to vector<8x8xf32>
    %290 = arith.subf %286, %289 : vector<8x8xf32>
    %291 = math.exp %290 : vector<8x8xf32>
    %cst_107 = arith.constant dense<0.000000e+00> : vector<8xf32>
    %292 = vector.multi_reduction <add>, %291, %cst_107 [1] : vector<8x8xf32> to vector<8xf32>
    %293 = vector.shape_cast %292 : vector<8xf32> to vector<8x1xf32>
    %294 = tpu.reciprocal %293 {approx = true} : vector<8x1xf32> -> vector<8x1xf32>
    %295 = vector.broadcast %294 : vector<8x1xf32> to vector<8x8xf32>
    %296 = arith.mulf %291, %295 : vector<8x8xf32>
    %297 = vector.extract_strided_slice %250 {offsets = [0, 8], sizes = [8, 8], strides = [1, 1]} : vector<8x32xf32> to vector<8x8xf32>
    %298 = arith.truncf %296 : vector<8x8xf32> to vector<8x8xbf16>
    %299 = arith.truncf %297 : vector<8x8xf32> to vector<8x8xbf16>
    %cst_108 = arith.constant dense<0.000000e+00> : vector<8x8xf32>
    %300 = tpu.matmul %298, %299, %cst_108 {dimension_numbers = #tpu.dot_dimension_numbers<[1], [0], [0], [1], [0, 0, 1, 1], [], []>} : vector<8x8xbf16>, vector<8x8xbf16>, vector<8x8xf32> -> vector<8x8xf32>
    %301 = vector.extract_strided_slice %252 {offsets = [8, 0], sizes = [8, 32], strides = [1, 1]} : vector<32x32xf32> to vector<8x32xf32>
    %302 = arith.truncf %300 : vector<8x8xf32> to vector<8x8xbf16>
    %303 = arith.truncf %301 : vector<8x32xf32> to vector<8x32xbf16>
    %cst_109 = arith.constant dense<0.000000e+00> : vector<8x32xf32>
    %304 = tpu.matmul %302, %303, %cst_109 {dimension_numbers = #tpu.dot_dimension_numbers<[1], [0], [0], [1], [0, 0, 1, 1], [], []>} : vector<8x8xbf16>, vector<8x32xbf16>, vector<8x32xf32> -> vector<8x32xf32>
    %305 = arith.addf %278, %304 : vector<8x32xf32>
    %306 = vector.extract_strided_slice %248 {offsets = [0, 16], sizes = [8, 8], strides = [1, 1]} : vector<8x32xf32> to vector<8x8xf32>
    %cst_110 = arith.constant 0.353553385 : f32
    %307 = vector.broadcast %cst_110 : f32 to vector<8x8xf32>
    %308 = arith.mulf %306, %307 : vector<8x8xf32>
    %309 = vector.extract_strided_slice %249 {offsets = [0, 16], sizes = [8, 8], strides = [1, 1]} : vector<8x32xf32> to vector<8x8xf32>
    %310 = arith.truncf %308 : vector<8x8xf32> to vector<8x8xbf16>
    %311 = arith.truncf %309 : vector<8x8xf32> to vector<8x8xbf16>
    %cst_111 = arith.constant dense<0.000000e+00> : vector<8x8xf32>
    %312 = tpu.matmul %310, %311, %cst_111 {dimension_numbers = #tpu.dot_dimension_numbers<[1], [1], [0], [0], [0, 0, 1, 0], [], []>} : vector<8x8xbf16>, vector<8x8xbf16>, vector<8x8xf32> -> vector<8x8xf32>
    %313 = arith.addf %312, %7 : vector<8x8xf32>
    %cst_112 = arith.constant dense<0xFF800000> : vector<8xf32>
    %314 = vector.multi_reduction <maximumf>, %313, %cst_112 [1] : vector<8x8xf32> to vector<8xf32>
    %315 = vector.shape_cast %314 : vector<8xf32> to vector<8x1xf32>
    %316 = vector.broadcast %315 : vector<8x1xf32> to vector<8x8xf32>
    %317 = arith.subf %313, %316 : vector<8x8xf32>
    %318 = math.exp %317 : vector<8x8xf32>
    %cst_113 = arith.constant dense<0.000000e+00> : vector<8xf32>
    %319 = vector.multi_reduction <add>, %318, %cst_113 [1] : vector<8x8xf32> to vector<8xf32>
    %320 = vector.shape_cast %319 : vector<8xf32> to vector<8x1xf32>
    %321 = tpu.reciprocal %320 {approx = true} : vector<8x1xf32> -> vector<8x1xf32>
    %322 = vector.broadcast %321 : vector<8x1xf32> to vector<8x8xf32>
    %323 = arith.mulf %318, %322 : vector<8x8xf32>
    %324 = vector.extract_strided_slice %250 {offsets = [0, 16], sizes = [8, 8], strides = [1, 1]} : vector<8x32xf32> to vector<8x8xf32>
    %325 = arith.truncf %323 : vector<8x8xf32> to vector<8x8xbf16>
    %326 = arith.truncf %324 : vector<8x8xf32> to vector<8x8xbf16>
    %cst_114 = arith.constant dense<0.000000e+00> : vector<8x8xf32>
    %327 = tpu.matmul %325, %326, %cst_114 {dimension_numbers = #tpu.dot_dimension_numbers<[1], [0], [0], [1], [0, 0, 1, 1], [], []>} : vector<8x8xbf16>, vector<8x8xbf16>, vector<8x8xf32> -> vector<8x8xf32>
    %328 = vector.extract_strided_slice %252 {offsets = [16, 0], sizes = [8, 32], strides = [1, 1]} : vector<32x32xf32> to vector<8x32xf32>
    %329 = arith.truncf %327 : vector<8x8xf32> to vector<8x8xbf16>
    %330 = arith.truncf %328 : vector<8x32xf32> to vector<8x32xbf16>
    %cst_115 = arith.constant dense<0.000000e+00> : vector<8x32xf32>
    %331 = tpu.matmul %329, %330, %cst_115 {dimension_numbers = #tpu.dot_dimension_numbers<[1], [0], [0], [1], [0, 0, 1, 1], [], []>} : vector<8x8xbf16>, vector<8x32xbf16>, vector<8x32xf32> -> vector<8x32xf32>
    %332 = arith.addf %305, %331 : vector<8x32xf32>
    %333 = vector.extract_strided_slice %248 {offsets = [0, 24], sizes = [8, 8], strides = [1, 1]} : vector<8x32xf32> to vector<8x8xf32>
    %cst_116 = arith.constant 0.353553385 : f32
    %334 = vector.broadcast %cst_116 : f32 to vector<8x8xf32>
    %335 = arith.mulf %333, %334 : vector<8x8xf32>
    %336 = vector.extract_strided_slice %249 {offsets = [0, 24], sizes = [8, 8], strides = [1, 1]} : vector<8x32xf32> to vector<8x8xf32>
    %337 = arith.truncf %335 : vector<8x8xf32> to vector<8x8xbf16>
    %338 = arith.truncf %336 : vector<8x8xf32> to vector<8x8xbf16>
    %cst_117 = arith.constant dense<0.000000e+00> : vector<8x8xf32>
    %339 = tpu.matmul %337, %338, %cst_117 {dimension_numbers = #tpu.dot_dimension_numbers<[1], [1], [0], [0], [0, 0, 1, 0], [], []>} : vector<8x8xbf16>, vector<8x8xbf16>, vector<8x8xf32> -> vector<8x8xf32>
    %340 = arith.addf %339, %7 : vector<8x8xf32>
    %cst_118 = arith.constant dense<0xFF800000> : vector<8xf32>
    %341 = vector.multi_reduction <maximumf>, %340, %cst_118 [1] : vector<8x8xf32> to vector<8xf32>
    %342 = vector.shape_cast %341 : vector<8xf32> to vector<8x1xf32>
    %343 = vector.broadcast %342 : vector<8x1xf32> to vector<8x8xf32>
    %344 = arith.subf %340, %343 : vector<8x8xf32>
    %345 = math.exp %344 : vector<8x8xf32>
    %cst_119 = arith.constant dense<0.000000e+00> : vector<8xf32>
    %346 = vector.multi_reduction <add>, %345, %cst_119 [1] : vector<8x8xf32> to vector<8xf32>
    %347 = vector.shape_cast %346 : vector<8xf32> to vector<8x1xf32>
    %348 = tpu.reciprocal %347 {approx = true} : vector<8x1xf32> -> vector<8x1xf32>
    %349 = vector.broadcast %348 : vector<8x1xf32> to vector<8x8xf32>
    %350 = arith.mulf %345, %349 : vector<8x8xf32>
    %351 = vector.extract_strided_slice %250 {offsets = [0, 24], sizes = [8, 8], strides = [1, 1]} : vector<8x32xf32> to vector<8x8xf32>
    %352 = arith.truncf %350 : vector<8x8xf32> to vector<8x8xbf16>
    %353 = arith.truncf %351 : vector<8x8xf32> to vector<8x8xbf16>
    %cst_120 = arith.constant dense<0.000000e+00> : vector<8x8xf32>
    %354 = tpu.matmul %352, %353, %cst_120 {dimension_numbers = #tpu.dot_dimension_numbers<[1], [0], [0], [1], [0, 0, 1, 1], [], []>} : vector<8x8xbf16>, vector<8x8xbf16>, vector<8x8xf32> -> vector<8x8xf32>
    %355 = vector.extract_strided_slice %252 {offsets = [24, 0], sizes = [8, 32], strides = [1, 1]} : vector<32x32xf32> to vector<8x32xf32>
    %356 = arith.truncf %354 : vector<8x8xf32> to vector<8x8xbf16>
    %357 = arith.truncf %355 : vector<8x32xf32> to vector<8x32xbf16>
    %cst_121 = arith.constant dense<0.000000e+00> : vector<8x32xf32>
    %358 = tpu.matmul %356, %357, %cst_121 {dimension_numbers = #tpu.dot_dimension_numbers<[1], [0], [0], [1], [0, 0, 1, 1], [], []>} : vector<8x8xbf16>, vector<8x32xbf16>, vector<8x32xf32> -> vector<8x32xf32>
    %359 = arith.addf %332, %358 : vector<8x32xf32>
    %360 = arith.addf %212, %359 : vector<8x32xf32>
    %c1_122 = arith.constant 1 : index
    %c0_123 = arith.constant 0 : index
    %c0_124 = arith.constant 0 : index
    %361 = vector.load %arg8[%c1_122, %c0_123, %c0_124] : memref<2x1x32xf32, #tpu.memory_space<vmem>>, vector<1x1x32xf32>
    %362 = vector.shape_cast %361 : vector<1x1x32xf32> to vector<1x32xf32>
    %363 = vector.broadcast %362 : vector<1x32xf32> to vector<8x32xf32>
    %364 = arith.addf %360, %363 : vector<8x32xf32>
    %c1_125 = arith.constant 1 : index
    %c0_126 = arith.constant 0 : index
    %c0_127 = arith.constant 0 : index
    %365 = vector.load %arg9[%c1_125, %c0_126, %c0_127] : memref<2x1x32xf32, #tpu.memory_space<vmem>>, vector<1x1x32xf32>
    %366 = vector.shape_cast %365 : vector<1x1x32xf32> to vector<1x32xf32>
    %c1_128 = arith.constant 1 : index
    %c0_129 = arith.constant 0 : index
    %c0_130 = arith.constant 0 : index
    %367 = vector.load %arg10[%c1_128, %c0_129, %c0_130] : memref<2x1x32xf32, #tpu.memory_space<vmem>>, vector<1x1x32xf32>
    %368 = vector.shape_cast %367 : vector<1x1x32xf32> to vector<1x32xf32>
    %cst_131 = arith.constant dense<0.000000e+00> : vector<8xf32>
    %369 = vector.multi_reduction <add>, %364, %cst_131 [1] : vector<8x32xf32> to vector<8xf32>
    %370 = vector.shape_cast %369 : vector<8xf32> to vector<8x1xf32>
    %cst_132 = arith.constant 3.200000e+01 : f32
    %371 = vector.broadcast %cst_132 : f32 to vector<8x1xf32>
    %372 = arith.divf %370, %371 : vector<8x1xf32>
    %373 = vector.broadcast %372 : vector<8x1xf32> to vector<8x32xf32>
    %374 = arith.subf %364, %373 : vector<8x32xf32>
    %375 = arith.mulf %374, %374 : vector<8x32xf32>
    %cst_133 = arith.constant dense<0.000000e+00> : vector<8xf32>
    %376 = vector.multi_reduction <add>, %375, %cst_133 [1] : vector<8x32xf32> to vector<8xf32>
    %377 = vector.shape_cast %376 : vector<8xf32> to vector<8x1xf32>
    %cst_134 = arith.constant 3.200000e+01 : f32
    %378 = vector.broadcast %cst_134 : f32 to vector<8x1xf32>
    %379 = arith.divf %377, %378 : vector<8x1xf32>
    %380 = vector.broadcast %372 : vector<8x1xf32> to vector<8x32xf32>
    %381 = arith.subf %364, %380 : vector<8x32xf32>
    %cst_135 = arith.constant 9.99999974E-6 : f32
    %382 = vector.broadcast %cst_135 : f32 to vector<8x1xf32>
    %383 = arith.addf %379, %382 : vector<8x1xf32>
    %384 = math.rsqrt %383 : vector<8x1xf32>
    %385 = vector.broadcast %384 : vector<8x1xf32> to vector<8x32xf32>
    %386 = arith.mulf %381, %385 : vector<8x32xf32>
    %387 = vector.broadcast %366 : vector<1x32xf32> to vector<8x32xf32>
    %388 = arith.mulf %386, %387 : vector<8x32xf32>
    %389 = vector.broadcast %368 : vector<1x32xf32> to vector<8x32xf32>
    %390 = arith.addf %388, %389 : vector<8x32xf32>
    %c1_136 = arith.constant 1 : index
    %c0_137 = arith.constant 0 : index
    %c0_138 = arith.constant 0 : index
    %391 = vector.load %arg11[%c1_136, %c0_137, %c0_138] : memref<2x32x128xf32, #tpu.memory_space<vmem>>, vector<1x32x128xf32>
    %392 = vector.shape_cast %391 : vector<1x32x128xf32> to vector<32x128xf32>
    %393 = arith.truncf %390 : vector<8x32xf32> to vector<8x32xbf16>
    %394 = arith.truncf %392 : vector<32x128xf32> to vector<32x128xbf16>
    %cst_139 = arith.constant dense<0.000000e+00> : vector<8x128xf32>
    %395 = tpu.matmul %393, %394, %cst_139 {dimension_numbers = #tpu.dot_dimension_numbers<[1], [0], [0], [1], [0, 0, 1, 1], [], []>} : vector<8x32xbf16>, vector<32x128xbf16>, vector<8x128xf32> -> vector<8x128xf32>
    %c1_140 = arith.constant 1 : index
    %c0_141 = arith.constant 0 : index
    %c0_142 = arith.constant 0 : index
    %396 = vector.load %arg12[%c1_140, %c0_141, %c0_142] : memref<2x1x128xf32, #tpu.memory_space<vmem>>, vector<1x1x128xf32>
    %397 = vector.shape_cast %396 : vector<1x1x128xf32> to vector<1x128xf32>
    %398 = vector.broadcast %397 : vector<1x128xf32> to vector<8x128xf32>
    %399 = arith.addf %395, %398 : vector<8x128xf32>
    %cst_143 = arith.constant 1.702000e+00 : f32
    %400 = vector.broadcast %cst_143 : f32 to vector<8x128xf32>
    %401 = arith.mulf %400, %399 : vector<8x128xf32>
    %402 = arith.negf %401 : vector<8x128xf32>
    %403 = math.exp %402 : vector<8x128xf32>
    %cst_144 = arith.constant 1.000000e+00 : f32
    %404 = vector.broadcast %cst_144 : f32 to vector<8x128xf32>
    %405 = arith.addf %404, %403 : vector<8x128xf32>
    %406 = arith.divf %404, %405 : vector<8x128xf32>
    %407 = arith.mulf %399, %406 : vector<8x128xf32>
    %c1_145 = arith.constant 1 : index
    %c0_146 = arith.constant 0 : index
    %c0_147 = arith.constant 0 : index
    %408 = vector.load %arg13[%c1_145, %c0_146, %c0_147] : memref<2x128x32xf32, #tpu.memory_space<vmem>>, vector<1x128x32xf32>
    %409 = vector.shape_cast %408 : vector<1x128x32xf32> to vector<128x32xf32>
    %410 = arith.truncf %407 : vector<8x128xf32> to vector<8x128xbf16>
    %411 = arith.truncf %409 : vector<128x32xf32> to vector<128x32xbf16>
    %cst_148 = arith.constant dense<0.000000e+00> : vector<8x32xf32>
    %412 = tpu.matmul %410, %411, %cst_148 {dimension_numbers = #tpu.dot_dimension_numbers<[1], [0], [0], [1], [0, 0, 1, 1], [], []>} : vector<8x128xbf16>, vector<128x32xbf16>, vector<8x32xf32> -> vector<8x32xf32>
    %c1_149 = arith.constant 1 : index
    %c0_150 = arith.constant 0 : index
    %c0_151 = arith.constant 0 : index
    %413 = vector.load %arg14[%c1_149, %c0_150, %c0_151] : memref<2x1x32xf32, #tpu.memory_space<vmem>>, vector<1x1x32xf32>
    %414 = vector.shape_cast %413 : vector<1x1x32xf32> to vector<1x32xf32>
    %415 = vector.broadcast %414 : vector<1x32xf32> to vector<8x32xf32>
    %416 = arith.addf %412, %415 : vector<8x32xf32>
    %417 = arith.addf %364, %416 : vector<8x32xf32>
    %c0_152 = arith.constant 0 : index
    %c0_153 = arith.constant 0 : index
    %418 = vector.load %arg15[%c0_152, %c0_153] : memref<1x32xf32, #tpu.memory_space<vmem>>, vector<1x32xf32>
    %c0_154 = arith.constant 0 : index
    %c0_155 = arith.constant 0 : index
    %419 = vector.load %arg16[%c0_154, %c0_155] : memref<1x32xf32, #tpu.memory_space<vmem>>, vector<1x32xf32>
    %cst_156 = arith.constant dense<0.000000e+00> : vector<8xf32>
    %420 = vector.multi_reduction <add>, %417, %cst_156 [1] : vector<8x32xf32> to vector<8xf32>
    %421 = vector.shape_cast %420 : vector<8xf32> to vector<8x1xf32>
    %cst_157 = arith.constant 3.200000e+01 : f32
    %422 = vector.broadcast %cst_157 : f32 to vector<8x1xf32>
    %423 = arith.divf %421, %422 : vector<8x1xf32>
    %424 = vector.broadcast %423 : vector<8x1xf32> to vector<8x32xf32>
    %425 = arith.subf %417, %424 : vector<8x32xf32>
    %426 = arith.mulf %425, %425 : vector<8x32xf32>
    %cst_158 = arith.constant dense<0.000000e+00> : vector<8xf32>
    %427 = vector.multi_reduction <add>, %426, %cst_158 [1] : vector<8x32xf32> to vector<8xf32>
    %428 = vector.shape_cast %427 : vector<8xf32> to vector<8x1xf32>
    %cst_159 = arith.constant 3.200000e+01 : f32
    %429 = vector.broadcast %cst_159 : f32 to vector<8x1xf32>
    %430 = arith.divf %428, %429 : vector<8x1xf32>
    %431 = vector.broadcast %423 : vector<8x1xf32> to vector<8x32xf32>
    %432 = arith.subf %417, %431 : vector<8x32xf32>
    %cst_160 = arith.constant 9.99999974E-6 : f32
    %433 = vector.broadcast %cst_160 : f32 to vector<8x1xf32>
    %434 = arith.addf %430, %433 : vector<8x1xf32>
    %435 = math.rsqrt %434 : vector<8x1xf32>
    %436 = vector.broadcast %435 : vector<8x1xf32> to vector<8x32xf32>
    %437 = arith.mulf %432, %436 : vector<8x32xf32>
    %438 = vector.broadcast %418 : vector<1x32xf32> to vector<8x32xf32>
    %439 = arith.mulf %437, %438 : vector<8x32xf32>
    %440 = vector.broadcast %419 : vector<1x32xf32> to vector<8x32xf32>
    %441 = arith.addf %439, %440 : vector<8x32xf32>
    %c0_161 = arith.constant 0 : index
    %c0_162 = arith.constant 0 : index
    %c0_163 = arith.constant 0 : index
    %442 = vector.load %arg2[%c0_161, %c0_162, %c0_163] : memref<1x8x1xf32, #tpu.memory_space<vmem>>, vector<1x8x1xf32>
    %443 = vector.shape_cast %442 : vector<1x8x1xf32> to vector<8x1xf32>
    %444 = vector.broadcast %443 : vector<8x1xf32> to vector<8x32xf32>
    %445 = arith.mulf %441, %444 : vector<8x32xf32>
    %cst_164 = arith.constant dense<0.000000e+00> : vector<32xf32>
    %446 = vector.multi_reduction <add>, %445, %cst_164 [0] : vector<8x32xf32> to vector<32xf32>
    %447 = vector.shape_cast %446 : vector<32xf32> to vector<1x32xf32>
    %c0_165 = arith.constant 0 : index
    %c0_166 = arith.constant 0 : index
    %448 = vector.load %arg17[%c0_165, %c0_166] : memref<32x16xf32, #tpu.memory_space<vmem>>, vector<32x16xf32>
    %449 = arith.truncf %447 : vector<1x32xf32> to vector<1x32xbf16>
    %450 = arith.truncf %448 : vector<32x16xf32> to vector<32x16xbf16>
    %cst_167 = arith.constant dense<0.000000e+00> : vector<1x16xf32>
    %451 = tpu.matmul %449, %450, %cst_167 {dimension_numbers = #tpu.dot_dimension_numbers<[1], [0], [0], [1], [0, 0, 1, 1], [], []>} : vector<1x32xbf16>, vector<32x16xbf16>, vector<1x16xf32> -> vector<1x16xf32>
    %c0_168 = arith.constant 0 : index
    %c0_169 = arith.constant 0 : index
    %c0_170 = arith.constant 0 : index
    %452 = vector.load %arg18[%c0_168, %c0_169, %c0_170] : memref<1x1x16xf32, #tpu.memory_space<vmem>>, vector<1x1x16xf32>
    %453 = vector.shape_cast %452 : vector<1x1x16xf32> to vector<1x16xf32>
    %454 = vector.shape_cast %451 : vector<1x16xf32> to vector<1x1x16xf32>
    tpu.vector_store %arg18[%c0_168, %c0_169, %c0_170], %454 {strides = array<i32>} : memref<1x1x16xf32, #tpu.memory_space<vmem>>, vector<1x1x16xf32>,
    return
  }
  func.func @transform_0(%arg0: i32) -> (i32, i32, i32) {
    %c0_i32 = arith.constant 0 : i32
    %c0_i32_0 = arith.constant 0 : i32
    %c0_i32_1 = arith.constant 0 : i32
    return %arg0, %c0_i32, %c0_i32_0 : i32, i32, i32
  }
  func.func @transform_1(%arg0: i32) -> (i32, i32, i32) {
    %c0_i32 = arith.constant 0 : i32
    %c0_i32_0 = arith.constant 0 : i32
    %c0_i32_1 = arith.constant 0 : i32
    return %arg0, %c0_i32, %c0_i32_0 : i32, i32, i32
  }
  func.func @transform_2(%arg0: i32) -> (i32, i32, i32) {
    %c0_i32 = arith.constant 0 : i32
    %c0_i32_0 = arith.constant 0 : i32
    %c0_i32_1 = arith.constant 0 : i32
    %c0_i32_2 = arith.constant 0 : i32
    return %c0_i32, %c0_i32_0, %c0_i32_1 : i32, i32, i32
  }
  func.func @transform_3(%arg0: i32) -> (i32, i32, i32) {
    %c0_i32 = arith.constant 0 : i32
    %c0_i32_0 = arith.constant 0 : i32
    %c0_i32_1 = arith.constant 0 : i32
    %c0_i32_2 = arith.constant 0 : i32
    return %c0_i32, %c0_i32_0, %c0_i32_1 : i32, i32, i32
  }
  func.func @transform_4(%arg0: i32) -> (i32, i32, i32) {
    %c0_i32 = arith.constant 0 : i32
    %c0_i32_0 = arith.constant 0 : i32
    %c0_i32_1 = arith.constant 0 : i32
    %c0_i32_2 = arith.constant 0 : i32
    return %c0_i32, %c0_i32_0, %c0_i32_1 : i32, i32, i32
  }
  func.func @transform_5(%arg0: i32) -> (i32, i32, i32) {
    %c0_i32 = arith.constant 0 : i32
    %c0_i32_0 = arith.constant 0 : i32
    %c0_i32_1 = arith.constant 0 : i32
    %c0_i32_2 = arith.constant 0 : i32
    return %c0_i32, %c0_i32_0, %c0_i32_1 : i32, i32, i32
  }
  func.func @transform_6(%arg0: i32) -> (i32, i32, i32) {
    %c0_i32 = arith.constant 0 : i32
    %c0_i32_0 = arith.constant 0 : i32
    %c0_i32_1 = arith.constant 0 : i32
    %c0_i32_2 = arith.constant 0 : i32
    return %c0_i32, %c0_i32_0, %c0_i32_1 : i32, i32, i32
  }
  func.func @transform_7(%arg0: i32) -> (i32, i32, i32) {
    %c0_i32 = arith.constant 0 : i32
    %c0_i32_0 = arith.constant 0 : i32
    %c0_i32_1 = arith.constant 0 : i32
    %c0_i32_2 = arith.constant 0 : i32
    return %c0_i32, %c0_i32_0, %c0_i32_1 : i32, i32, i32
  }
  func.func @transform_8(%arg0: i32) -> (i32, i32, i32) {
    %c0_i32 = arith.constant 0 : i32
    %c0_i32_0 = arith.constant 0 : i32
    %c0_i32_1 = arith.constant 0 : i32
    %c0_i32_2 = arith.constant 0 : i32
    return %c0_i32, %c0_i32_0, %c0_i32_1 : i32, i32, i32
  }
  func.func @transform_9(%arg0: i32) -> (i32, i32, i32) {
    %c0_i32 = arith.constant 0 : i32
    %c0_i32_0 = arith.constant 0 : i32
    %c0_i32_1 = arith.constant 0 : i32
    %c0_i32_2 = arith.constant 0 : i32
    return %c0_i32, %c0_i32_0, %c0_i32_1 : i32, i32, i32
  }
  func.func @transform_10(%arg0: i32) -> (i32, i32, i32) {
    %c0_i32 = arith.constant 0 : i32
    %c0_i32_0 = arith.constant 0 : i32
    %c0_i32_1 = arith.constant 0 : i32
    %c0_i32_2 = arith.constant 0 : i32
    return %c0_i32, %c0_i32_0, %c0_i32_1 : i32, i32, i32
  }
  func.func @transform_11(%arg0: i32) -> (i32, i32, i32) {
    %c0_i32 = arith.constant 0 : i32
    %c0_i32_0 = arith.constant 0 : i32
    %c0_i32_1 = arith.constant 0 : i32
    %c0_i32_2 = arith.constant 0 : i32
    return %c0_i32, %c0_i32_0, %c0_i32_1 : i32, i32, i32
  }
  func.func @transform_12(%arg0: i32) -> (i32, i32, i32) {
    %c0_i32 = arith.constant 0 : i32
    %c0_i32_0 = arith.constant 0 : i32
    %c0_i32_1 = arith.constant 0 : i32
    %c0_i32_2 = arith.constant 0 : i32
    return %c0_i32, %c0_i32_0, %c0_i32_1 : i32, i32, i32
  }
  func.func @transform_13(%arg0: i32) -> (i32, i32, i32) {
    %c0_i32 = arith.constant 0 : i32
    %c0_i32_0 = arith.constant 0 : i32
    %c0_i32_1 = arith.constant 0 : i32
    %c0_i32_2 = arith.constant 0 : i32
    return %c0_i32, %c0_i32_0, %c0_i32_1 : i32, i32, i32
  }
  func.func @transform_14(%arg0: i32) -> (i32, i32) {
    %c0_i32 = arith.constant 0 : i32
    %c0_i32_0 = arith.constant 0 : i32
    %c0_i32_1 = arith.constant 0 : i32
    return %c0_i32, %c0_i32_0 : i32, i32
  }
  func.func @transform_15(%arg0: i32) -> (i32, i32) {
    %c0_i32 = arith.constant 0 : i32
    %c0_i32_0 = arith.constant 0 : i32
    %c0_i32_1 = arith.constant 0 : i32
    return %c0_i32, %c0_i32_0 : i32, i32
  }
  func.func @transform_16(%arg0: i32) -> (i32, i32) {
    %c0_i32 = arith.constant 0 : i32
    %c0_i32_0 = arith.constant 0 : i32
    %c0_i32_1 = arith.constant 0 : i32
    return %c0_i32, %c0_i32_0 : i32, i32
  }
  func.func @transform_17(%arg0: i32) -> (i32, i32, i32) {
    %c0_i32 = arith.constant 0 : i32
    %c0_i32_0 = arith.constant 0 : i32
    %c0_i32_1 = arith.constant 0 : i32
    return %arg0, %c0_i32, %c0_i32_0 : i32, i32, i32
  }
}

</mosaic_0001>

<bundles_post_ra>
// kernel: clip_forward.5
= control target key start
LH: loop header
LB: loop body
LE: loop exit
PB: predicated region body
PF: predicated region fallthrough
CT: control target
= control target key end

     0   :  { %vm19_vm0 = vcmask 123904   ;;  %s210_s0 = inlined_call_operand.vmem [shape: f32[2,16], index: 0, kind: input, shape index: {}]   ;;  %s211_s1 = inlined_call_operand.vmem [shape: f32[2,16], index: 1, kind: input, shape index: {}]   ;;  %s212_s2 = inlined_call_operand.<no memory space> [shape: f32[1], index: 2, kind: input, shape index: {}]   ;;  %s213_s3 = inlined_call_operand.hbm [shape: f32[2,2], index: 3, kind: output, shape index: {}]  }
   0x1   :  { %v17_v0 = vld [vmem:[%s211_s1] sm:$0x3] }
   0x2   :  { %v16_v1 = vld [vmem:[%s210_s0] sm:$0x3]  ;;  %v26_v2 = vmul.f32 %v17_v0, %v17_v0 }
   0x3   :  { %v18_v3 = vmul.f32 %v16_v1, %v16_v1 }
   0x4   :  { %9 = vsyncpa [#allocation4], 0  ;;  %v27_v4 = vsel %vm19_vm0, %v26_v2, 0.0  ;;  %v175_v6 = vmov 0.0   ;;  %vm176_vm1 = vmmov 0   ;;  %v34_v7 = vstv %s212_s2  ;;  %s177_s1 = smov [#allocation3]  }
   0x5   :  { %28 = vadd.xlane.f32.xlu0 %v27_v4  ;;  %v20_v5 = vsel %vm19_vm0, %v18_v3, 0.0  ;;  %137 = vmatprep.subr.mxu0 %v175_v6  ;;  %v35_v8 = vmul.f32 1.442695, %v34_v7  ;;  %vm38_vm2 = vcmask 130048   ;;  %s125_s2 = sshll.u32 %s177_s1, 4  ;;  %vm117_vm3 = vcmask 9216   ;;  %s126_s2 = int_to_ptr.vmem [resolvable:$true] %s125_s2 }
   0x6   :  { %139 = vmatprep.mubr.msk.f32.mxu0 %vm176_vm1, %v175_v6  ;;  %s153_s18 = scalar_lea.vmem %s126_s2, 32  ;;  %p158_p1 = scmp.lt.s32.totalorder %s126_s2, %s126_s2 }
   0x7   :  { %147 = vpow2.f32 %v35_v8  ;;  %p154_p0 = scmp.ne.s32.totalorder %s126_s2, %s153_s18  ;;  %p159_p2 = scmp.lt.s32.totalorder %s153_s18, %s153_s18 }
   0x9   :  { %21 = vadd.xlane.f32.xlu0 %v20_v5  ;;  %p160_p3 = por %p159_p2, %p158_p1 }
   0xb   :  { %p161_p4 = pnand %p160_p3, %p154_p0 }
  0x14   :  { %v148_v9 = vpop.eup %147 }
  0x15   :  { %142 = vpush %v148_v9 }
  0x46   :  { %s143_s0 = spop %142 }
  0x47   :  { %v115_v18 = vstv %s143_s0 }
  0x8e   :  { %v29_v10 = vpop.xlane.xlu0 %28 }
  0x8f   :  { %v30_v11 = vadd.f32 1e-12, %v29_v10 }
  0x91   :  { %149 = vrsqrt.f32 %v30_v11 }
  0x92   :  { %v22_v12 = vpop.xlane.xlu0 %21 }
  0x93   :  { %v23_v13 = vadd.f32 1e-12, %v22_v12 }
  0x95   :  { %151 = vrsqrt.f32 %v23_v13 }
  0x9e   :  { %v150_v14 = vpop.eup %149 }
  0x9f   :  { %v32_v15 = vmul.f32 %v150_v14, %v17_v0 }
  0xa1   :  { %138 = vmatpush3.xpose.msk.msra.mxu0 %vm38_vm2, %v32_v15 }
  0xa2   :  { %v152_v16 = vpop.eup %151 }
  0xa3   :  { %v25_v17 = vmul.f32 %v152_v16, %v16_v1 }
  0xa5   :  { %140 = vmatmul.mubr.msk.f32.vlgmr.msra.gmra.mxu0 %vm38_vm2, %v25_v17 }
 0x165   :  { %v111_v19 = vpop.f32.mrf.mxu0 }
 0x166   :  { %v116_v20 = vmul.f32 %v115_v18, %v111_v19 }
 0x167   :  { %v141_v21 = vpop.f32.mrf.mxu0 }
 0x168   :  { %118 = vst.msk [vmem:[#allocation3] sm:$0x3] %vm117_vm3, %v116_v20 }
 0x169   :  { %164 = shalt.err (!%p161_p4)
}
 0x16a   :  { %128 = dma.vmem_to_hbm [thread:$0]  %s126_s2, 32, %s213_s3, [#allocation4]  }
 0x16b   :  { %173 = dma.done.wait [#allocation4], 32  }
 0x16c   :  { %174 = vsyncadd [#allocation4], 4294967264 }
 0x16d   :  { %132 = vsyncpa [#allocation4], 1 }

// kernel: clip_forward.3
= control target key start
LH: loop header
LB: loop body
LE: loop exit
PB: predicated region body
PF: predicated region fallthrough
CT: control target
= control target key end

     0   :  { %s4394_s0 = inlined_call_operand.vmem [shape: f32[2,5,768], index: 0, kind: input, shape index: {}]   ;;  %s4395_s1 = inlined_call_operand.vmem [shape: f32[768,32], index: 1, kind: input, shape index: {}]   ;;  %s4396_s2 = inlined_call_operand.vmem [shape: f32[5,32], index: 2, kind: input, shape index: {}]   ;;  %s4397_s3 = inlined_call_operand.vmem [shape: f32[1,32], index: 3, kind: input, shape index: {}]   ;;  %s4398_s4 = inlined_call_operand.vmem [shape: f32[1,32], index: 4, kind: input, shape index: {}]   ;;  %s4399_s5 = inlined_call_operand.vmem [shape: f32[2,1,32], index: 5, kind: input, shape index: {}]   ;;  %s4400_s6 = inlined_call_operand.vmem [shape: f32[2,1,32], index: 6, kind: input, shape index: {}]   ;;  %s4401_s7 = inlined_call_operand.vmem [shape: f32[2,32,96], index: 7, kind: input, shape index: {}]   ;;  %s4402_s8 = inlined_call_operand.vmem [shape: f32[2,1,96], index: 8, kind: input, shape index: {}]   ;;  %s4403_s9 = inlined_call_operand.vmem [shape: f32[2,32,32], index: 9, kind: input, shape index: {}]   ;;  %s4404_s10 = inlined_call_operand.vmem [shape: f32[2,1,32], index: 10, kind: input, shape index: {}]   ;;  %s4405_s11 = inlined_call_operand.vmem [shape: f32[2,1,32], index: 11, kind: input, shape index: {}]   ;;  %s4406_s12 = inlined_call_operand.vmem [shape: f32[2,1,32], index: 12, kind: input, shape index: {}]   ;;  %s4407_s13 = inlined_call_operand.vmem [shape: f32[2,32,128], index: 13, kind: input, shape index: {}]   ;;  %s4408_s14 = inlined_call_operand.vmem [shape: f32[2,1,128], index: 14, kind: input, shape index: {}]   ;;  %s4409_s15 = inlined_call_operand.vmem [shape: f32[2,128,32], index: 15, kind: input, shape index: {}]   ;;  %s4410_s16 = inlined_call_operand.vmem [shape: f32[2,1,32], index: 16, kind: input, shape index: {}]   ;;  %s4411_s17 = inlined_call_operand.vmem [shape: f32[1,32], index: 17, kind: input, shape index: {}]   ;;  %s4412_s18 = inlined_call_operand.vmem [shape: f32[1,32], index: 18, kind: input, shape index: {}]   ;;  %s4413_s19 = inlined_call_operand.vmem [shape: f32[32,16], index: 19, kind: input, shape index: {}]   ;;  %s4414_s20 = inlined_call_operand.vmem [shape: f32[2,1,16], index: 20, kind: output, shape index: {}]  }
   0x1   :  { %4423 = sst [smem:[#allocation3_spill]] %s4394_s0 }
   0x2   :  { %4424 = sst [smem:[#allocation4_spill]] %s4395_s1  ;;  %s3545_s1 = smov 0  }
   0x3   :  { %4425 = sst [smem:[#allocation5_spill]] %s4396_s2 }
   0x4   :  { %4426 = sst [smem:[#allocation6_spill]] %s4397_s3 }
   0x5   :  { %4427 = sst [smem:[#allocation7_spill]] %s4398_s4 }
   0x6 LB: > { %4428 = sst [smem:[#allocation2_spill]] %s3424_s1  ;;  %s2879_s22 = sadd.s32 4294967295, %s3424_s1   ;;  %s3424_s1 = sphi %s3545_s1, %s30_s1  }
   0x7   : > { %p2883_p0 = scmp.ge.s32.totalorder %s3424_s1, 1  ;;  %p562_p1 = scmp.lt.s32.totalorder %s3424_s1, 3 }
   0x9   : > { %p563_p2 = pnand %p2883_p0, %p562_p1 }
   0xa   : > { %s4429_s2 = sld [smem:[#allocation4_spill]] (!%p563_p2)  ;;  %p3609_p3 = scmp.lt.s32.totalorder (!%p563_p2), %s2879_s22, 1 }
   0xb   : > { %566 = sbr.rel (%p563_p2) target bundleno = 9121 (0x23a1), region = 100  ;;  %s4431_s27 = sld [smem:[#allocation3_spill]] (!%p563_p2) }
   0xc   : > { %s4432_s23 = sld [smem:[#allocation5_spill]] (!%p563_p2)  ;;  %s3428_s26 = smov (!%p563_p2), 96  }
   0xd   : > { %s4433_s24 = sld [smem:[#allocation6_spill]] (!%p563_p2)  ;;  %s3430_s4 = smov (!%p563_p2), 64  }
   0xe   : > { %s4434_s3 = sld [smem:[#allocation7_spill]] (!%p563_p2)  ;;  %s3431_s29 = smov (!%p563_p2), 120  }
   0xf   : > { %s4421_s21 = smov (!%p563_p2), 112   ;;  %s4418_s1 = smov (!%p563_p2), 104  }
  0x10   : > { %v663_v0 = vld [vmem:[%s4429_s2 + $0xf0] sm:$0xff]  ;;  %v664_v1 = vld [vmem:[%s4429_s2 + $0xf8] sm:$0xff]  ;;  %v661_v11 = vld [vmem:[%s4429_s2 + $0xe0] sm:$0xff]  ;;  %s4443_s22 = smov (!%p3609_p3, %s2879_s22), 1  ;;  %vm906_vm0 = vcmask 258048   ;;  %vm3427_vm1 = vmmov 0  }
  0x11   : > { %v647_v2 = vld [vmem:[%s4429_s2 + $0x70] sm:$0xff]  ;;  %v750_v3 = vpack.c.bf16 %v664_v1, %v663_v0  ;;  %v648_v4 = vld [vmem:[%s4429_s2 + $0x78] sm:$0xff]  ;;  %v662_v13 = vld [vmem:[%s4429_s2 + $0xe8] sm:$0xff]  ;;  %s3343_s30 = smul.u32 48, %s4443_s22  ;;  %vm978_vm2 = vcmask 261120   ;;  %vm1032_vm3 = vcmask 64512  }
  0x12   : > { %v695_v5 = vld [vmem:[%s4429_s2 + $0x1f0] sm:$0xff]  ;;  %v696_v6 = vld [vmem:[%s4429_s2 + $0x1f8] sm:$0xff]  ;;  %v742_v7 = vpack.c.bf16 %v648_v4, %v647_v2  ;;  %v645_v14 = vld [vmem:[%s4429_s2 + $0x60] sm:$0xff]  ;;  %v749_v16 = vpack.c.bf16 %v662_v13, %v661_v11  ;;  %vm1079_vm4 = vcmask 36864   ;;  %vm1098_vm5 = vcmask 1041408   ;;  %s4420_s0 = smov 48  }
  0x13   : > { %v766_v8 = vpack.c.bf16 %v696_v6, %v695_v5  ;;  %v679_v9 = vld [vmem:[%s4429_s2 + $0x170] sm:$0xff]  ;;  %v680_v10 = vld [vmem:[%s4429_s2 + $0x178] sm:$0xff]  ;;  %2972 = vmatprep.subr.bf16.mxu0 %v750_v3  ;;  %v646_v15 = vld [vmem:[%s4429_s2 + $0x68] sm:$0xff]  ;;  %s3710_s28 = scalar_lea.vmem %s4431_s27, %s3343_s30  ;;  %s3429_s27 = smov 88   ;;  %vm1099_vm6 = vcmask 1042432   ;;  %vm1094_vm7 = vcmask 39936  }
  0x14   : > { %v758_v12 = vpack.c.bf16 %v680_v10, %v679_v9  ;;  %2973 = vmatpush3.bf16.msra.mxu0 %v742_v7  ;;  %v741_v17 = vpack.c.bf16 %v646_v15, %v645_v14  ;;  %v693_v18 = vld [vmem:[%s4429_s2 + $0x1e0] sm:$0xff]  ;;  %v694_v19 = vld [vmem:[%s4429_s2 + $0x1e8] sm:$0xff]  ;;  %v659_v23 = vld [vmem:[%s4429_s2 + $0xd0] sm:$0xff]  ;;  %vm1263_vm8 = vcmask 1043456   ;;  %s4417_s30 = smov 40   ;;  %s4437_s25 = smov 48  }
  0x15   : > { %2994 = vmatprep.subr.bf16.mxu1 %v766_v8  ;;  %v677_v20 = vld [vmem:[%s4429_s2 + $0x160] sm:$0xff]  ;;  %v765_v21 = vpack.c.bf16 %v694_v19, %v693_v18  ;;  %v678_v22 = vld [vmem:[%s4429_s2 + $0x168] sm:$0xff]  ;;  %v660_v24 = vld [vmem:[%s4429_s2 + $0xd8] sm:$0xff]  ;;  %2974 = vmatprep.subr.bf16.mxu0 %v749_v16  ;;  %vm2764_vm9 = vcmask 253952   ;;  %vm2830_vm10 = vcmask 122880  }
  0x16   : > { %2995 = vmatpush3.bf16.msra.mxu1 %v758_v12  ;;  %v757_v25 = vpack.c.bf16 %v678_v22, %v677_v20  ;;  %v748_v26 = vpack.c.bf16 %v660_v24, %v659_v23  ;;  %v643_v27 = vld [vmem:[%s4429_s2 + $0x50] sm:$0xff]  ;;  %v644_v28 = vld [vmem:[%s4429_s2 + $0x58] sm:$0xff]  ;;  %v657_v35 = vld [vmem:[%s4429_s2 + $0xc0] sm:$0xff] }
  0x17   : > { %v691_v29 = vld [vmem:[%s4429_s2 + $0x1d0] sm:$0xff]  ;;  %2996 = vmatprep.subr.bf16.mxu1 %v765_v21  ;;  %v692_v30 = vld [vmem:[%s4429_s2 + $0x1d8] sm:$0xff]  ;;  %v740_v33 = vpack.c.bf16 %v644_v28, %v643_v27  ;;  %v658_v36 = vld [vmem:[%s4429_s2 + $0xc8] sm:$0xff] }
  0x18   : > { %v675_v31 = vld [vmem:[%s4429_s2 + $0x150] sm:$0xff]  ;;  %v676_v32 = vld [vmem:[%s4429_s2 + $0x158] sm:$0xff]  ;;  %2975 = vmatpush3.bf16.msra.mxu0 %v741_v17  ;;  %v764_v34 = vpack.c.bf16 %v692_v30, %v691_v29  ;;  %v641_v37 = vld [vmem:[%s4429_s2 + $0x40] sm:$0xff]  ;;  %v747_v39 = vpack.c.bf16 %v658_v36, %v657_v35 }
  0x19   : > { %2976 = vmatprep.subr.bf16.mxu0 %v748_v26  ;;  %v756_v38 = vpack.c.bf16 %v676_v32, %v675_v31  ;;  %v642_v40 = vld [vmem:[%s4429_s2 + $0x48] sm:$0xff]  ;;  %v689_v41 = vld [vmem:[%s4429_s2 + $0x1c0] sm:$0xff]  ;;  %v655_v46 = vld [vmem:[%s4429_s2 + $0xb0] sm:$0xff] }
  0x1a   : > { %2997 = vmatpush3.bf16.msra.mxu1 %v757_v25  ;;  %v690_v42 = vld [vmem:[%s4429_s2 + $0x1c8] sm:$0xff]  ;;  %v673_v44 = vld [vmem:[%s4429_s2 + $0x140] sm:$0xff]  ;;  %v656_v47 = vld [vmem:[%s4429_s2 + $0xb8] sm:$0xff]  ;;  %v739_v48 = vpack.c.bf16 %v642_v40, %v641_v37 }
  0x1b   : > { %2998 = vmatprep.subr.bf16.mxu1 %v764_v34  ;;  %v763_v43 = vpack.c.bf16 %v690_v42, %v689_v41  ;;  %v674_v45 = vld [vmem:[%s4429_s2 + $0x148] sm:$0xff]  ;;  %v687_v49 = vld [vmem:[%s4429_s2 + $0x1b0] sm:$0xff]  ;;  %v688_v50 = vld [vmem:[%s4429_s2 + $0x1b8] sm:$0xff]  ;;  %v746_v52 = vpack.c.bf16 %v656_v47, %v655_v46 }
  0x1c   : > { %2977 = vmatpush3.bf16.msra.mxu0 %v740_v33  ;;  %v755_v51 = vpack.c.bf16 %v674_v45, %v673_v44  ;;  %v639_v53 = vld [vmem:[%s4429_s2 + $0x30] sm:$0xff]  ;;  %v640_v54 = vld [vmem:[%s4429_s2 + $0x38] sm:$0xff]  ;;  %v762_v56 = vpack.c.bf16 %v688_v50, %v687_v49  ;;  %v653_v58 = vld [vmem:[%s4429_s2 + $0xa0] sm:$0xff] }
  0x1d   : > { %2978 = vmatprep.subr.bf16.mxu0 %v747_v39  ;;  %v671_v55 = vld [vmem:[%s4429_s2 + $0x130] sm:$0xff]  ;;  %v672_v57 = vld [vmem:[%s4429_s2 + $0x138] sm:$0xff]  ;;  %v654_v59 = vld [vmem:[%s4429_s2 + $0xa8] sm:$0xff]  ;;  %v738_v62 = vpack.c.bf16 %v640_v54, %v639_v53 }
  0x1e   : > { %2999 = vmatpush3.bf16.msra.mxu1 %v756_v38  ;;  %v685_v60 = vld [vmem:[%s4429_s2 + $0x1a0] sm:$0xff]  ;;  %v686_v61 = vld [vmem:[%s4429_s2 + $0x1a8] sm:$0xff]  ;;  %v754_v63 = vpack.c.bf16 %v672_v57, %v671_v55  ;;  %v745_v0 = vpack.c.bf16 %v654_v59, %v653_v58  ;;  %v651_v6 = vld [vmem:[%s4429_s2 + $0x90] sm:$0xff] }
  0x1f   : > { %3000 = vmatprep.subr.bf16.mxu1 %v763_v43  ;;  %v637_v1 = vld [vmem:[%s4429_s2 + $0x20] sm:$0xff]  ;;  %v638_v2 = vld [vmem:[%s4429_s2 + $0x28] sm:$0xff]  ;;  %v761_v4 = vpack.c.bf16 %v686_v61, %v685_v60  ;;  %v652_v7 = vld [vmem:[%s4429_s2 + $0x98] sm:$0xff] }
  0x20   : > { %2979 = vmatpush3.bf16.msra.mxu0 %v739_v48  ;;  %v669_v3 = vld [vmem:[%s4429_s2 + $0x120] sm:$0xff]  ;;  %v670_v5 = vld [vmem:[%s4429_s2 + $0x128] sm:$0xff]  ;;  %v683_v8 = vld [vmem:[%s4429_s2 + $0x190] sm:$0xff]  ;;  %v737_v10 = vpack.c.bf16 %v638_v2, %v637_v1  ;;  %v744_v14 = vpack.c.bf16 %v652_v7, %v651_v6 }
  0x21   : > { %2980 = vmatprep.subr.bf16.mxu0 %v746_v52  ;;  %v684_v9 = vld [vmem:[%s4429_s2 + $0x198] sm:$0xff]  ;;  %v635_v11 = vld [vmem:[%s4429_s2 + $0x10] sm:$0xff]  ;;  %v628_v12 = vld [vmem:[%s3710_s28 + $0x8] sm:$0x1f]  ;;  %v753_v13 = vpack.c.bf16 %v670_v5, %v669_v3 }
  0x22   : > { %3001 = vmatpush3.bf16.msra.mxu1 %v755_v51  ;;  %v636_v15 = vld [vmem:[%s4429_s2 + $0x18] sm:$0xff]  ;;  %v667_v16 = vld [vmem:[%s4429_s2 + $0x110] sm:$0xff]  ;;  %v730_v18 = vpack.c.bf16 %v628_v12, %v628_v12  ;;  %v760_v19 = vpack.c.bf16 %v684_v9, %v683_v8  ;;  %v649_v20 = vld [vmem:[%s4429_s2 + $0x80] sm:$0xff] }
  0x23   : > { %3002 = vmatprep.subr.bf16.mxu1 %v762_v56  ;;  %v668_v17 = vld [vmem:[%s4429_s2 + $0x118] sm:$0xff]  ;;  %v650_v21 = vld [vmem:[%s4429_s2 + $0x88] sm:$0xff]  ;;  %v681_v23 = vld [vmem:[%s4429_s2 + $0x180] sm:$0xff]  ;;  %v736_v26 = vpack.c.bf16 %v636_v15, %v635_v11 }
  0x24   : > { %2981 = vmatpush3.bf16.msra.mxu0 %v738_v62  ;;  %v630_v22 = vld [vmem:[%s3710_s28 + $0x18] sm:$0x1f]  ;;  %v682_v24 = vld [vmem:[%s4429_s2 + $0x188] sm:$0xff]  ;;  %816 = vmatprep.mubr.bf16.mxu0 %v730_v18  ;;  %v752_v27 = vpack.c.bf16 %v668_v17, %v667_v16  ;;  %v743_v28 = vpack.c.bf16 %v650_v21, %v649_v20  ;;  %v633_v29 = vld [vmem:[%s4429_s2] sm:$0xff] }
  0x25   : > { %2982 = vmatprep.subr.bf16.mxu0 %v745_v0  ;;  %v732_v25 = vpack.c.bf16 %v630_v22, %v630_v22  ;;  %v634_v30 = vld [vmem:[%s4429_s2 + $0x8] sm:$0xff]  ;;  %v665_v31 = vld [vmem:[%s4429_s2 + $0x100] sm:$0xff]  ;;  %v759_v32 = vpack.c.bf16 %v682_v24, %v681_v23  ;;  %v727_v34 = vld [vmem:[%s4429_s2 + $0x2f0] sm:$0xff] }
  0x26   : > { %3003 = vmatpush3.bf16.msra.mxu1 %v754_v63  ;;  %v666_v33 = vld [vmem:[%s4429_s2 + $0x108] sm:$0xff]  ;;  %v728_v35 = vld [vmem:[%s4429_s2 + $0x2f8] sm:$0xff]  ;;  %v735_v36 = vpack.c.bf16 %v634_v30, %v633_v29  ;;  %v627_v37 = vld [vmem:[%s3710_s28] sm:$0x1f] }
  0x27   : > { %3004 = vmatprep.subr.bf16.mxu1 %v761_v4  ;;  %856 = vmatprep.mubr.bf16.mxu1 %v732_v25  ;;  %v751_v38 = vpack.c.bf16 %v666_v33, %v665_v31  ;;  %v782_v39 = vpack.c.bf16 %v728_v35, %v727_v34  ;;  %v711_v40 = vld [vmem:[%s4429_s2 + $0x270] sm:$0xff]  ;;  %v712_v41 = vld [vmem:[%s4429_s2 + $0x278] sm:$0xff]  ;;  %v725_v43 = vld [vmem:[%s4429_s2 + $0x2e0] sm:$0xff]  ;;  %v729_v45 = vpack.c.bf16 %v627_v37, %v627_v37 }
  0x28   : > { %2983 = vmatpush3.bf16.msra.mxu0 %v737_v10  ;;  %v629_v42 = vld [vmem:[%s3710_s28 + $0x10] sm:$0x1f]  ;;  %v726_v44 = vld [vmem:[%s4429_s2 + $0x2e8] sm:$0xff]  ;;  %v774_v46 = vpack.c.bf16 %v712_v41, %v711_v40  ;;  %v709_v49 = vld [vmem:[%s4429_s2 + $0x260] sm:$0xff] }
  0x29   : > { %2984 = vmatprep.subr.bf16.mxu0 %v744_v14  ;;  %v731_v47 = vpack.c.bf16 %v629_v42, %v629_v42  ;;  %v781_v48 = vpack.c.bf16 %v726_v44, %v725_v43  ;;  %v710_v50 = vld [vmem:[%s4429_s2 + $0x268] sm:$0xff]  ;;  %v723_v52 = vld [vmem:[%s4429_s2 + $0x2d0] sm:$0xff]  ;;  %v724_v53 = vld [vmem:[%s4429_s2 + $0x2d8] sm:$0xff] }
  0x2a   : > { %3005 = vmatpush3.bf16.msra.mxu1 %v753_v13  ;;  %v632_v51 = vld [vmem:[%s3710_s28 + $0x28] sm:$0x1f]  ;;  %v773_v55 = vpack.c.bf16 %v710_v50, %v709_v49  ;;  %v780_v56 = vpack.c.bf16 %v724_v53, %v723_v52  ;;  %v707_v57 = vld [vmem:[%s4429_s2 + $0x250] sm:$0xff]  ;;  %v708_v58 = vld [vmem:[%s4429_s2 + $0x258] sm:$0xff] }
  0x2b   : > { %3006 = vmatprep.subr.bf16.mxu1 %v760_v19  ;;  %v734_v54 = vpack.c.bf16 %v632_v51, %v632_v51  ;;  %v721_v59 = vld [vmem:[%s4429_s2 + $0x2c0] sm:$0xff]  ;;  %v722_v60 = vld [vmem:[%s4429_s2 + $0x2c8] sm:$0xff]  ;;  %v772_v61 = vpack.c.bf16 %v708_v58, %v707_v57  ;;  %v719_v1 = vld [vmem:[%s4429_s2 + $0x2b0] sm:$0xff] }
  0x2c   : > { %2985 = vmatpush3.bf16.msra.mxu0 %v736_v26  ;;  %v779_v62 = vpack.c.bf16 %v722_v60, %v721_v59  ;;  %v705_v63 = vld [vmem:[%s4429_s2 + $0x240] sm:$0xff]  ;;  %v706_v0 = vld [vmem:[%s4429_s2 + $0x248] sm:$0xff]  ;;  %v720_v2 = vld [vmem:[%s4429_s2 + $0x2b8] sm:$0xff] }
  0x2d   : > { %2986 = vmatprep.subr.bf16.mxu0 %v743_v28  ;;  %v771_v3 = vpack.c.bf16 %v706_v0, %v705_v63  ;;  %v778_v4 = vpack.c.bf16 %v720_v2, %v719_v1  ;;  %v703_v5 = vld [vmem:[%s4429_s2 + $0x230] sm:$0xff]  ;;  %v704_v6 = vld [vmem:[%s4429_s2 + $0x238] sm:$0xff]  ;;  %v717_v7 = vld [vmem:[%s4429_s2 + $0x2a0] sm:$0xff] }
  0x2e   : > { %3007 = vmatpush3.bf16.msra.mxu1 %v752_v27  ;;  %v718_v8 = vld [vmem:[%s4429_s2 + $0x2a8] sm:$0xff]  ;;  %v770_v9 = vpack.c.bf16 %v704_v6, %v703_v5  ;;  %v701_v11 = vld [vmem:[%s4429_s2 + $0x220] sm:$0xff]  ;;  %v715_v13 = vld [vmem:[%s4429_s2 + $0x290] sm:$0xff] }
  0x2f   : > { %3008 = vmatprep.subr.bf16.mxu1 %v759_v32  ;;  %v777_v10 = vpack.c.bf16 %v718_v8, %v717_v7  ;;  %v702_v12 = vld [vmem:[%s4429_s2 + $0x228] sm:$0xff]  ;;  %v716_v14 = vld [vmem:[%s4429_s2 + $0x298] sm:$0xff]  ;;  %v699_v17 = vld [vmem:[%s4429_s2 + $0x210] sm:$0xff]  ;;  %v3426_v7 = vmov 0.0  }
  0x30   : > { %2987 = vmatpush3.bf16.msra.mxu0 %v735_v36  ;;  %v769_v15 = vpack.c.bf16 %v702_v12, %v701_v11  ;;  %v776_v16 = vpack.c.bf16 %v716_v14, %v715_v13  ;;  %v700_v18 = vld [vmem:[%s4429_s2 + $0x218] sm:$0xff]  ;;  %v713_v19 = vld [vmem:[%s4429_s2 + $0x280] sm:$0xff]  ;;  %v714_v20 = vld [vmem:[%s4429_s2 + $0x288] sm:$0xff] }
  0x31   : > { %3016 = vmatprep.subr.bf16.mxu0 %v782_v39  ;;  %v768_v21 = vpack.c.bf16 %v700_v18, %v699_v17  ;;  %v775_v22 = vpack.c.bf16 %v714_v20, %v713_v19  ;;  %v697_v23 = vld [vmem:[%s4429_s2 + $0x200] sm:$0xff]  ;;  %v698_v24 = vld [vmem:[%s4429_s2 + $0x208] sm:$0xff]  ;;  %v967_v5 = vld [vmem:[%s4401_s7 + $0x18] sm:$0xff] }
  0x32   : > { %3009 = vmatpush3.bf16.msra.mxu1 %v751_v38  ;;  %v767_v25 = vpack.c.bf16 %v698_v24, %v697_v23  ;;  %v631_v26 = vld [vmem:[%s3710_s28 + $0x20] sm:$0x1f]  ;;  %s3433_s28 = smov 56  }
  0x33   : > { %817 = vmatmul.mubr.bf16.vlgmr.msra.gmra.mxu0 %v729_v45  ;;  %v733_v27 = vpack.c.bf16 %v631_v26, %v631_v26  ;;  %v783_v37 = vld [vmem:[%s4432_s23] sm:$0x1f]  ;;  %3119 = vmatprep.subr.bf16.mxu1 %v3426_v7 }
  0x34   : > { %3017 = vmatpush3.bf16.msra.mxu0 %v774_v46  ;;  %896 = vmatprep.mubr.bf16.mxu0 %v734_v54  ;;  %v2885_v57 = vld [vmem:[%s4433_s24] ss:$0 sm:$0xff]  ;;  %s4422_s24 = smov 80  }
  0x35   : > { %857 = vmatmul.mubr.bf16.vlgmr.msra.gmra.mxu1 %v731_v47  ;;  %3018 = vmatprep.subr.bf16.mxu0 %v781_v48  ;;  %v2886_v59 = vld [vmem:[%s4434_s3] ss:$0 sm:$0xff]  ;;  %s4419_s3 = smov 72  }
  0x36   : > { %v964_v8 = vld [vmem:[%s4401_s7] sm:$0xff]  ;;  %3123 = vmatprep.mubr.msk.bf16.mxu1 %vm3427_vm1, %v3426_v7 }
  0x37   : > { %v2888_v17 = vld [vmem:[%s4400_s6] ss:$0 sm:$0xff] }
  0x38   : > { %3019 = vmatpush3.bf16.msra.mxu0 %v773_v55 }
  0x39   : > { %3020 = vmatprep.subr.bf16.mxu0 %v780_v56 }
  0x3c   : > { %3021 = vmatpush3.bf16.msra.mxu0 %v772_v61 }
  0x3d   : > { %3022 = vmatprep.subr.bf16.mxu0 %v779_v62 }
  0x40   : > { %3023 = vmatpush3.bf16.msra.mxu0 %v771_v3 }
  0x41   : > { %3024 = vmatprep.subr.bf16.mxu0 %v778_v4  ;;  %v966_v4 = vld [vmem:[%s4401_s7 + $0x10] sm:$0xff] }
  0x42   : > { %v970_v6 = vpack.c.bf16 %v967_v5, %v966_v4 }
  0x44   : > { %3025 = vmatpush3.bf16.msra.mxu0 %v770_v9  ;;  %v965_v9 = vld [vmem:[%s4401_s7 + $0x8] sm:$0xff]  ;;  %3120 = vmatpush3.bf16.msra.mxu1 %v970_v6 }
  0x45   : > { %3026 = vmatprep.subr.bf16.mxu0 %v777_v10  ;;  %v969_v10 = vpack.c.bf16 %v965_v9, %v964_v8  ;;  %3121 = vmatprep.subr.bf16.mxu1 %v3426_v7 }
  0x48   : > { %3027 = vmatpush3.bf16.msra.mxu0 %v769_v15  ;;  %3122 = vmatpush3.bf16.msra.mxu1 %v969_v10  ;;  %v2887_v15 = vld [vmem:[%s4399_s5] ss:$0 sm:$0xff] }
  0x49   : > { %3028 = vmatprep.subr.bf16.mxu0 %v776_v16  ;;  %3127 = vmatprep.subr.bf16.mxu1 %v3426_v7 }
  0x4c   : > { %3029 = vmatpush3.bf16.msra.mxu0 %v768_v21  ;;  %v2889_v21 = vld [vmem:[%s4402_s8] ss:$0 sm:$0xff] }
  0x4d   : > { %3030 = vmatprep.subr.bf16.mxu0 %v775_v22 }
  0x50   : > { %3031 = vmatpush3.bf16.msra.mxu0 %v767_v25 }
  0x51   : > { %3157 = vmatprep.subr.bf16.mxu0 %v3426_v7 }
  0x53   : > { %897 = vmatmul.mubr.bf16.vlgmr.msra.gmra.mxu0 %v733_v27 }
  0x54   : > { %3159 = vmatprep.mubr.msk.bf16.mxu0 %vm3427_vm1, %v3426_v7 }
  0xf3   : > { %v2988_v28 = vpop.f32.mrf.mxu0 }
  0xf5   : > { %v3010_v29 = vpop.f32.mrf.mxu1  ;;  %v2989_v30 = vpop.f32.mrf.mxu0 }
  0xf6   : > { %v2990_v36 = vadd.f32 %v2989_v30, %v2988_v28 }
  0xf7   : > { %v3011_v31 = vpop.f32.mrf.mxu1  ;;  %v2991_v32 = vpop.f32.mrf.mxu0 }
  0xf8   : > { %v819_v38 = vadd.f32 %v2990_v36, %v783_v37  ;;  %v3012_v39 = vadd.f32 %v3011_v31, %v3010_v29 }
  0xf9   : > { %v3013_v33 = vpop.f32.mrf.mxu1  ;;  %v2992_v34 = vpop.f32.mrf.mxu0 }
  0xfa   : > { %v859_v42 = vadd.f32 %v3012_v39, %v819_v38 }
  0xfb   : > { %v3014_v35 = vpop.f32.mrf.mxu1 }
 0x113   : > { %v3032_v40 = vpop.f32.mrf.mxu0 }
 0x115   : > { %v3033_v41 = vpop.f32.mrf.mxu0 }
 0x116   : > { %v3034_v43 = vadd.f32 %v3033_v41, %v3032_v40 }
 0x117   : > { %v3035_v44 = vpop.f32.mrf.mxu0 }
 0x118   : > { %v899_v45 = vadd.f32 %v3034_v43, %v859_v42  ;;  %v3432_v42 = vmov 65535  }
 0x119   : > { %v3036_v46 = vpop.f32.mrf.mxu0  ;;  %v1100_v43 = vsel %vm1098_vm5, 4294967295, %v3432_v42 }
 0x11a   : > { %v907_v47 = vsel %vm906_vm0, %v899_v45, 0.0 }
 0x11b   : > { %908 = vadd.xlane.f32.xlu0 %v907_v47 }
 0x1a4   : > { %v909_v48 = vpop.xlane.xlu0 %908 }
 0x1a5   : > { %v911_v49 = vmul.f32 0.03125, %v909_v48 }
 0x1a7   : > { %v912_v50 = vsub.f32 %v899_v45, %v911_v49  ;;  %v3934_v45 = vsel %vm1099_vm6, %v1100_v43, 0 }
 0x1a9   : > { %v913_v51 = vmul.f32 %v912_v50, %v912_v50 }
 0x1ab   : > { %v914_v52 = vsel %vm906_vm0, %v913_v51, 0.0 }
 0x1ac   : > { %915 = vadd.xlane.f32.xlu0 %v914_v52 }
 0x235   : > { %v916_v53 = vpop.xlane.xlu0 %915 }
 0x236   : > { %v917_v54 = vmul.f32 0.03125, %v916_v53 }
 0x238   : > { %v918_v55 = vadd.f32 1e-05, %v917_v54  ;;  %v1022_v54 = vld [vmem:[%s4403_s9] sm:$0xff] }
 0x23a   : > { %3366 = vrsqrt.f32 %v918_v55  ;;  %v1146_v55 = vpack.c.bf16 %v1022_v54, %v1022_v54 }
 0x247   : > { %v3367_v56 = vpop.eup %3366 }
 0x248   : > { %v920_v58 = vmul.f32 %v3367_v56, %v912_v50  ;;  %v1311_v56 = vsel %vm1263_vm8, %v1146_v55, 0 }
 0x249   : > { %3158 = vmatpush3.bf16.msra.mxu0 %v1311_v56  ;;  %v1024_v56 = vld [vmem:[%s4403_s9 + $0x10] sm:$0xff] }
 0x24a   : > { %v927_v60 = vmul.f32 %v2885_v57, %v920_v58  ;;  %3169 = vmatprep.subr.bf16.mxu0 %v3426_v7 }
 0x24c   : > { %v3876_v61 = vadd.f32 %v2886_v59, %v927_v60 }
 0x24e   : > { %v937_v62 = vsel %vm906_vm0, %v3876_v61, 0.0 }
 0x24f   : > { %938 = vadd.xlane.f32.xlu1 %v937_v62 }
 0x2d8   : > { %v939_v63 = vpop.xlane.xlu1 %938 }
 0x2d9   : > { %v940_v0 = vmul.f32 0.03125, %v939_v63 }
 0x2db   : > { %v941_v1 = vsub.f32 %v3876_v61, %v940_v0 }
 0x2dd   : > { %v942_v2 = vmul.f32 %v941_v1, %v941_v1 }
 0x2df   : > { %v943_v3 = vsel %vm906_vm0, %v942_v2, 0.0 }
 0x2e0   : > { %944 = vadd.xlane.f32.xlu1 %v943_v3 }
 0x369   : > { %v945_v11 = vpop.xlane.xlu1 %944 }
 0x36a   : > { %v946_v12 = vmul.f32 0.03125, %v945_v11 }
 0x36c   : > { %v947_v13 = vadd.f32 1e-05, %v946_v12 }
 0x36e   : > { %3368 = vrsqrt.f32 %v947_v13 }
 0x37b   : > { %v3369_v14 = vpop.eup %3368 }
 0x37c   : > { %v949_v16 = vmul.f32 %v3369_v14, %v941_v1 }
 0x37e   : > { %v956_v18 = vmul.f32 %v2887_v15, %v949_v16 }
 0x380   : > { %v963_v19 = vadd.f32 %v2888_v17, %v956_v18  ;;  %v1023_v17 = vld [vmem:[%s4403_s9 + $0x8] sm:$0xff] }
 0x381   : > { %v1259_v18 = vpack.c.bf16 %v1023_v17, %v1023_v17 }
 0x382   : > { %v968_v20 = vpack.c.bf16 %v963_v19, %v963_v19 }
 0x384   : > { %3124 = vmatmul.mubr.msk.bf16.vlgmr.msra.gmra.mxu1 %vm978_vm2, %v968_v20 }
 0x385   : > { %3129 = vmatprep.mubr.msk.bf16.mxu1 %vm3427_vm1, %v3426_v7 }
 0x444   : > { %v1016_v22 = vpop.f32.mrf.mxu1 }
 0x445   : > { %v1017_v23 = vadd.f32 %v2889_v21, %v1016_v22  ;;  %v1265_v22 = vsel %vm1263_vm8, %v1259_v18, 0 }
 0x446   : > { %v3125_v24 = vpop.f32.mrf.mxu1 }
 0x447   : > { %v3914_v25 = vpack.c.bf16 %v1017_v23, %v1017_v23  ;;  %v1026_v30 = vmul.f32 0.35355338, %v1017_v23 }
 0x448   : > { %v1019_v26 = vpop.f32.mrf.mxu1 }
 0x449   : > { %1030 = vrot.lane.b32.xlu0 %v3914_v25, %s3428_s26  ;;  %v3922_v31 = vpack.c.bf16 %v1026_v30, %v1026_v30 }
 0x44a   : > { %v3126_v27 = vpop.f32.mrf.mxu1 }
 0x44d   : > { %1150 = vrot.lane.b32.xlu0 %v3914_v25, %s3429_s27 }
 0x4bb   : > { %v1031_v28 = vpop.permute.xlu0 %1030 }
 0x4bc   : > { %v1037_v29 = vsel %vm1032_vm3, %v1031_v28, 0 }
 0x4bd   : > { %3128 = vmatpush3.bf16.xpose.msra.mxu1 %v1037_v29 }
 0x4be   : > { %3133 = vmatprep.subr.bf16.mxu1 %v3426_v7 }
 0x4bf   : > { %v1151_v50 = vpop.permute.xlu0 %1150 }
 0x4c0   : > { %v1156_v52 = vsel %vm1032_vm3, %v1151_v50, 0 }
 0x4c4   : > { %3130 = vmatmul.mubr.msk.bf16.vlgmr.msra.gmra.mxu1 %vm1032_vm3, %v3922_v31 }
 0x4c5   : > { %3135 = vmatprep.mubr.msk.bf16.mxu1 %vm3427_vm1, %v3426_v7 }
 0x584   : > { %v1073_v32 = vpop.f32.mrf.mxu1 }
 0x585   : > { %v1080_v33 = vsel %vm1079_vm4, %v1073_v32, -inf }
 0x586   : > { %1081 = vmax.xlane.f32.xlu1 %v1080_v33  ;;  %v3131_v34 = vpop.f32.mrf.mxu1 }
 0x588   : > { %v1076_v35 = vpop.f32.mrf.mxu1 }
 0x58a   : > { %v3132_v36 = vpop.f32.mrf.mxu1 }
 0x60f   : > { %v1082_v37 = vpop.xlane.xlu1 %1081 }
 0x610   : > { %v1083_v38 = vsub.f32 %v1073_v32, %v1082_v37 }
 0x612   : > { %v1084_v39 = vmul.f32 1.442695, %v1083_v38 }
 0x614   : > { %3370 = vpow2.f32 %v1084_v39 }
 0x621   : > { %v3371_v40 = vpop.eup %3370 }
 0x622   : > { %v1086_v41 = vsel %vm1079_vm4, %v3371_v40, 0.0 }
 0x623   : > { %1087 = vadd.xlane.f32.xlu1 %v1086_v41 }
 0x634   : > { %1092 = vrot.lane.b32.xlu1 %v3914_v25, %s3430_s4 }
 0x638   : > { %1148 = vrot.lane.b32.xlu1 %v3922_v31, %s3431_s29 }
 0x6ac   : > { %v1088_v44 = vpop.xlane.xlu1 %1087 }
 0x6ad   : > { %3372 = vrcp.f32 %v1088_v44 }
 0x6b0   : > { %v1093_v46 = vpop.permute.xlu1 %1092 }
 0x6b1   : > { %v1103_v47 = vand.u32 %v3934_v45, %v1093_v46 }
 0x6b3   : > { %3134 = vmatpush3.bf16.msra.mxu1 %v1103_v47 }
 0x6b4   : > { %3139 = vmatprep.subr.bf16.mxu1 %v3426_v7  ;;  %v1149_v53 = vpop.permute.xlu1 %1148 }
 0x6ba   : > { %v3373_v48 = vpop.eup %3372 }
 0x6bb   : > { %v1090_v49 = vmul.f32 %v3373_v48, %v3371_v40 }
 0x6bd   : > { %v1091_v51 = vpack.c.bf16 %v1090_v49, %v1090_v49 }
 0x6bf   : > { %3136 = vmatmul.mubr.msk.bf16.vlgmr.msra.gmra.mxu1 %vm1094_vm7, %v1091_v51 }
 0x6c0   : > { %3140 = vmatpush3.bf16.xpose.msra.mxu1 %v1156_v52  ;;  %3141 = vmatprep.mubr.msk.bf16.mxu1 %vm3427_vm1, %v3426_v7 }
 0x6c1   : > { %3145 = vmatprep.subr.bf16.mxu1 %v3426_v7 }
 0x6c7   : > { %3142 = vmatmul.mubr.msk.bf16.vlgmr.msra.gmra.mxu1 %vm1032_vm3, %v1149_v53 }
 0x6c8   : > { %3147 = vmatprep.mubr.msk.bf16.mxu1 %vm3427_vm1, %v3426_v7 }
 0x77f   : > { %v1139_v57 = vpop.f32.mrf.mxu1 }
 0x780   : > { %v1145_v58 = vpack.c.bf16 %v1139_v57, %v1139_v57  ;;  %v1464_v57 = vpack.c.bf16 %v1024_v56, %v1024_v56  ;;  %v2904_v56 = vld [vmem:[%s4405_s11] ss:$0 sm:$0xff] }
 0x781   : > { %v3137_v59 = vpop.f32.mrf.mxu1 }
 0x782   : > { %3160 = vmatmul.mubr.msk.bf16.vlgmr.msra.gmra.mxu0 %vm1032_vm3, %v1145_v58  ;;  %v1469_v58 = vsel %vm1263_vm8, %v1464_v57, 0 }
 0x783   : > { %v1142_v60 = vpop.f32.mrf.mxu1  ;;  %3171 = vmatprep.mubr.msk.bf16.mxu0 %vm3427_vm1, %v3426_v7 }
 0x785   : > { %v3138_v62 = vpop.f32.mrf.mxu1 }
 0x787   : > { %v1192_v63 = vpop.f32.mrf.mxu1 }
 0x788   : > { %v1198_v0 = vsel %vm1079_vm4, %v1192_v63, -inf }
 0x789   : > { %1199 = vmax.xlane.f32.xlu0 %v1198_v0  ;;  %v3143_v1 = vpop.f32.mrf.mxu1 }
 0x78b   : > { %v1195_v2 = vpop.f32.mrf.mxu1 }
 0x78d   : > { %v3144_v3 = vpop.f32.mrf.mxu1 }
 0x79f   : > { %1210 = vrot.lane.b32.xlu0 %v3914_v25, %s3433_s28 }
 0x7a3   : > { %1353 = vrot.lane.b32.xlu0 %v3922_v31, %s4421_s21 }
 0x812   : > { %v1200_v4 = vpop.xlane.xlu0 %1199 }
 0x813   : > { %v1201_v5 = vsub.f32 %v1192_v63, %v1200_v4 }
 0x815   : > { %v1202_v6 = vmul.f32 1.442695, %v1201_v5 }
 0x816   : > { %v1211_v8 = vpop.permute.xlu0 %1210 }
 0x817   : > { %3374 = vpow2.f32 %v1202_v6  ;;  %v1216_v9 = vand.u32 %v1211_v8, %v3934_v45 }
 0x819   : > { %3146 = vmatpush3.bf16.msra.mxu1 %v1216_v9 }
 0x81a   : > { %3151 = vmatprep.subr.bf16.mxu1 %v3426_v7  ;;  %v1354_v32 = vpop.permute.xlu0 %1353 }
 0x824   : > { %v3375_v10 = vpop.eup %3374 }
 0x825   : > { %v1204_v11 = vsel %vm1079_vm4, %v3375_v10, 0.0 }
 0x826   : > { %1205 = vadd.xlane.f32.xlu1 %v1204_v11 }
 0x837   : > { %1355 = vrot.lane.b32.xlu1 %v3914_v25, %s4422_s24  ;;  %s4440_s24 = smov 40  }
 0x842   : > { %v3964_v12 = vpop.f32.mrf.mxu0 }
 0x844   : > { %v3161_v13 = vpop.f32.mrf.mxu0 }
 0x846   : > { %v1350_v14 = vpop.f32.mrf.mxu0 }
 0x848   : > { %v3162_v15 = vpop.f32.mrf.mxu0 }
 0x8af   : > { %v1206_v16 = vpop.xlane.xlu1 %1205 }
 0x8b0   : > { %3376 = vrcp.f32 %v1206_v16 }
 0x8b3   : > { %v1356_v23 = vpop.permute.xlu1 %1355 }
 0x8b4   : > { %v1361_v28 = vsel %vm1032_vm3, %v1356_v23, 0 }
 0x8bd   : > { %v3377_v19 = vpop.eup %3376 }
 0x8be   : > { %v1208_v20 = vmul.f32 %v3377_v19, %v3375_v10 }
 0x8c0   : > { %v1209_v21 = vpack.c.bf16 %v1208_v20, %v1208_v20 }
 0x8c2   : > { %3148 = vmatmul.mubr.msk.bf16.vlgmr.msra.gmra.mxu1 %vm1094_vm7, %v1209_v21 }
 0x8c3   : > { %3152 = vmatpush3.bf16.msra.mxu1 %v1265_v22  ;;  %3153 = vmatprep.mubr.msk.bf16.mxu1 %vm3427_vm1, %v3426_v7 }
 0x8c4   : > { %3163 = vmatprep.subr.bf16.mxu1 %v3426_v7 }
 0x982   : > { %v1252_v24 = vpop.f32.mrf.mxu1 }
 0x983   : > { %v1258_v26 = vpack.c.bf16 %v1252_v24, %v1252_v24 }
 0x984   : > { %v3149_v27 = vpop.f32.mrf.mxu1 }
 0x985   : > { %3154 = vmatmul.mubr.msk.bf16.vlgmr.msra.gmra.mxu1 %vm1032_vm3, %v1258_v26 }
 0x986   : > { %3164 = vmatpush3.bf16.xpose.msra.mxu1 %v1361_v28  ;;  %v1255_v29 = vpop.f32.mrf.mxu1  ;;  %3165 = vmatprep.mubr.msk.bf16.mxu1 %vm3427_vm1, %v3426_v7 }
 0x987   : > { %3175 = vmatprep.subr.bf16.mxu1 %v3426_v7 }
 0x988   : > { %v3150_v30 = vpop.f32.mrf.mxu1 }
 0x98d   : > { %3166 = vmatmul.mubr.msk.bf16.vlgmr.msra.gmra.mxu1 %vm1032_vm3, %v1354_v32 }
 0x98e   : > { %3177 = vmatprep.mubr.msk.bf16.mxu1 %vm3427_vm1, %v3426_v7  ;;  %3176 = vmatpush3.bf16.msra.mxu1 %v1469_v58  ;;  %v2905_v58 = vld [vmem:[%s4406_s12] ss:$0 sm:$0xff] }
 0x98f   : > { %3187 = vmatprep.subr.bf16.mxu1 %v3426_v7 }
 0xa45   : > { %v3982_v33 = vpop.f32.mrf.mxu1 }
 0xa46   : > { %v1348_v15 = vadd.f32 %v3964_v12, %v3982_v33 }
 0xa47   : > { %v3155_v34 = vpop.f32.mrf.mxu1 }
 0xa49   : > { %v1304_v35 = vpop.f32.mrf.mxu1 }
 0xa4a   : > { %v2903_v35 = vld [vmem:[%s4404_s10] ss:$0 sm:$0xff] }
 0xa4b   : > { %v3156_v36 = vpop.f32.mrf.mxu1 }
 0xa4d   : > { %v1397_v37 = vpop.f32.mrf.mxu1 }
 0xa4e   : > { %v1403_v38 = vsel %vm1079_vm4, %v1397_v37, -inf }
 0xa4f   : > { %1404 = vmax.xlane.f32.xlu1 %v1403_v38  ;;  %v3167_v39 = vpop.f32.mrf.mxu1 }
 0xa51   : > { %v1400_v40 = vpop.f32.mrf.mxu1 }
 0xa53   : > { %v3168_v41 = vpop.f32.mrf.mxu1 }
 0xa60   : > { %1514 = vrot.lane.b32.xlu1 %v3914_v25, %s4419_s3 }
 0xa64   : > { %1512 = vrot.lane.b32.xlu1 %v3922_v31, %s4418_s1  ;;  %s4438_s1 = smov 72  }
 0xad8   : > { %v1405_v42 = vpop.xlane.xlu1 %1404 }
 0xad9   : > { %v1406_v43 = vsub.f32 %v1397_v37, %v1405_v42 }
 0xadb   : > { %v1407_v44 = vmul.f32 1.442695, %v1406_v43 }
 0xadc   : > { %v1515_v52 = vpop.permute.xlu1 %1514 }
 0xadd   : > { %3378 = vpow2.f32 %v1407_v44  ;;  %v1520_v54 = vsel %vm1032_vm3, %v1515_v52, 0 }
 0xae0   : > { %v1513_v55 = vpop.permute.xlu1 %1512 }
 0xaea   : > { %v3379_v46 = vpop.eup %3378 }
 0xaeb   : > { %v1409_v47 = vsel %vm1079_vm4, %v3379_v46, 0.0 }
 0xaec   : > { %1410 = vadd.xlane.f32.xlu0 %v1409_v47 }
 0xb02   : > { %1415 = vrot.lane.b32.xlu0 %v3914_v25, %s4420_s0 }
 0xb75   : > { %v1411_v48 = vpop.xlane.xlu0 %1410 }
 0xb76   : > { %3380 = vrcp.f32 %v1411_v48  ;;  %v1712_v48 = vld [vmem:[%s4407_s13 + $0x18] sm:$0xff] }
 0xb79   : > { %v1416_v49 = vpop.permute.xlu0 %1415 }
 0xb7a   : > { %v1421_v50 = vand.u32 %v1416_v49, %v3934_v45 }
 0xb7c   : > { %3170 = vmatpush3.bf16.msra.mxu0 %v1421_v50  ;;  %v1709_v50 = vld [vmem:[%s4407_s13] sm:$0xff] }
 0xb7d   : > { %3181 = vmatprep.subr.bf16.mxu0 %v3426_v7 }
 0xb83   : > { %v3381_v31 = vpop.eup %3380 }
 0xb84   : > { %v1413_v51 = vmul.f32 %v3381_v31, %v3379_v46  ;;  %v1710_v31 = vld [vmem:[%s4407_s13 + $0x8] sm:$0xff] }
 0xb86   : > { %v1414_v53 = vpack.c.bf16 %v1413_v51, %v1413_v51  ;;  %v1714_v51 = vpack.c.bf16 %v1710_v31, %v1709_v50 }
 0xb88   : > { %3172 = vmatmul.mubr.msk.bf16.vlgmr.msra.gmra.mxu0 %vm1094_vm7, %v1414_v53 }
 0xb89   : > { %3182 = vmatpush3.bf16.xpose.msra.mxu0 %v1520_v54  ;;  %3183 = vmatprep.mubr.msk.bf16.mxu0 %vm3427_vm1, %v3426_v7 }
 0xb8a   : > { %3193 = vmatprep.subr.bf16.mxu0 %v3426_v7 }
 0xb90   : > { %3184 = vmatmul.mubr.msk.bf16.vlgmr.msra.gmra.mxu0 %vm1032_vm3, %v1513_v55 }
 0xb91   : > { %3195 = vmatprep.mubr.msk.bf16.mxu0 %vm3427_vm1, %v3426_v7 }
 0xc48   : > { %v1457_v59 = vpop.f32.mrf.mxu0 }
 0xc49   : > { %v1463_v60 = vpack.c.bf16 %v1457_v59, %v1457_v59 }
 0xc4a   : > { %v3173_v62 = vpop.f32.mrf.mxu0 }
 0xc4b   : > { %3178 = vmatmul.mubr.msk.bf16.vlgmr.msra.gmra.mxu1 %vm1032_vm3, %v1463_v60 }
 0xc4c   : > { %v1460_v63 = vpop.f32.mrf.mxu0  ;;  %3189 = vmatprep.mubr.msk.bf16.mxu1 %vm3427_vm1, %v3426_v7 }
 0xc4d   : > { %v1788_v63 = vld [vmem:[%s4409_s15 + $0x70] sm:$0xff] }
 0xc4e   : > { %v3174_v0 = vpop.f32.mrf.mxu0 }
 0xc4f   : > { %v1789_v0 = vld [vmem:[%s4409_s15 + $0x78] sm:$0xff] }
 0xc50   : > { %v1556_v1 = vpop.f32.mrf.mxu0 }
 0xc51   : > { %v1562_v2 = vsel %vm1079_vm4, %v1556_v1, -inf }
 0xc52   : > { %1563 = vmax.xlane.f32.xlu0 %v1562_v2  ;;  %v3185_v3 = vpop.f32.mrf.mxu0  ;;  %v1786_v2 = vld [vmem:[%s4409_s15 + $0x60] sm:$0xff] }
 0xc53   : > { %v1787_v3 = vld [vmem:[%s4409_s15 + $0x68] sm:$0xff] }
 0xc54   : > { %v1559_v4 = vpop.f32.mrf.mxu0 }
 0xc55   : > { %v1797_v4 = vpack.c.bf16 %v1787_v3, %v1786_v2  ;;  %v2919_v3 = vld [vmem:[%s4402_s8 + $0x1] ss:$0 sm:$0xff] }
 0xc56   : > { %v3186_v5 = vpop.f32.mrf.mxu0 }
 0xc57   : > { %v1784_v5 = vld [vmem:[%s4409_s15 + $0x50] sm:$0xff] }
 0xc68   : > { %1574 = vrot.lane.b32.xlu0 %v3914_v25, %s4417_s30  ;;  %v1025_v25 = vld [vmem:[%s4403_s9 + $0x18] sm:$0xff]  ;;  %s4439_s30 = smov 104  }
 0xc69   : > { %v1623_v18 = vpack.c.bf16 %v1025_v25, %v1025_v25  ;;  %v1779_v25 = vld [vmem:[%s4409_s15 + $0x28] sm:$0xff] }
 0xc6b   : > { %v1628_v20 = vsel %vm1263_vm8, %v1623_v18, 0  ;;  %v1776_v18 = vld [vmem:[%s4409_s15 + $0x10] sm:$0xff] }
 0xc6c   : > { %3194 = vmatpush3.bf16.msra.mxu0 %v1628_v20 }
 0xc6d   : > { %3207 = vmatprep.subr.bf16.mxu0 %v3426_v7 }
 0xcdb   : > { %v1564_v6 = vpop.xlane.xlu0 %1563 }
 0xcdc   : > { %v1565_v8 = vsub.f32 %v1556_v1, %v1564_v6  ;;  %v1798_v1 = vpack.c.bf16 %v1789_v0, %v1788_v63  ;;  %v1785_v6 = vld [vmem:[%s4409_s15 + $0x58] sm:$0xff]  ;;  %v2913_v63 = vld [vmem:[%s4400_s6 + $0x1] ss:$0 sm:$0xff] }
 0xcde   : > { %v1566_v9 = vmul.f32 1.442695, %v1565_v8  ;;  %v1796_v8 = vpack.c.bf16 %v1785_v6, %v1784_v5 }
 0xcdf   : > { %v1575_v10 = vpop.permute.xlu0 %1574 }
 0xce0   : > { %3382 = vpow2.f32 %v1566_v9  ;;  %v1580_v11 = vand.u32 %v1575_v10, %v3934_v45  ;;  %v1782_v9 = vld [vmem:[%s4409_s15 + $0x40] sm:$0xff]  ;;  %v1783_v10 = vld [vmem:[%s4409_s15 + $0x48] sm:$0xff] }
 0xce2   : > { %3188 = vmatpush3.bf16.msra.mxu1 %v1580_v11  ;;  %v1795_v11 = vpack.c.bf16 %v1783_v10, %v1782_v9 }
 0xce3   : > { %3199 = vmatprep.subr.bf16.mxu1 %v3426_v7 }
 0xced   : > { %v3383_v13 = vpop.eup %3382 }
 0xcee   : > { %v1568_v14 = vsel %vm1079_vm4, %v3383_v13, 0.0 }
 0xcef   : > { %1569 = vadd.xlane.f32.xlu1 %v1568_v14  ;;  %v1781_v14 = vld [vmem:[%s4409_s15 + $0x38] sm:$0xff] }
 0xd0b   : > { %v1505_v16 = vpop.f32.mrf.mxu1 }
 0xd0c   : > { %v1511_v17 = vadd.f32 %v1505_v16, %v1348_v15  ;;  %v1778_v16 = vld [vmem:[%s4409_s15 + $0x20] sm:$0xff] }
 0xd0d   : > { %v3179_v19 = vpop.f32.mrf.mxu1 }
 0xd0e   : > { %v1777_v19 = vld [vmem:[%s4409_s15 + $0x18] sm:$0xff] }
 0xd0f   : > { %v1508_v21 = vpop.f32.mrf.mxu1  ;;  %v1792_v20 = vpack.c.bf16 %v1777_v19, %v1776_v18 }
 0xd10   : > { %v1774_v21 = vld [vmem:[%s4409_s15] sm:$0xff] }
 0xd11   : > { %v3180_v22 = vpop.f32.mrf.mxu1 }
 0xd12   : > { %v1775_v22 = vld [vmem:[%s4409_s15 + $0x8] sm:$0xff] }
 0xd78   : > { %v1570_v23 = vpop.xlane.xlu1 %1569 }
 0xd79   : > { %3384 = vrcp.f32 %v1570_v23  ;;  %v1791_v23 = vpack.c.bf16 %v1775_v22, %v1774_v21 }
 0xd86   : > { %v3385_v24 = vpop.eup %3384 }
 0xd87   : > { %v1572_v26 = vmul.f32 %v3385_v24, %v3383_v13  ;;  %v1780_v13 = vld [vmem:[%s4409_s15 + $0x30] sm:$0xff]  ;;  %v2906_v24 = vld [vmem:[%s4408_s14] ss:$0 sm:$0xff] }
 0xd88   : > { %v1794_v15 = vpack.c.bf16 %v1781_v14, %v1780_v13 }
 0xd89   : > { %v1573_v12 = vpack.c.bf16 %v1572_v26, %v1572_v26 }
 0xd8b   : > { %3190 = vmatmul.mubr.msk.bf16.vlgmr.msra.gmra.mxu1 %vm1094_vm7, %v1573_v12 }
 0xd8c   : > { %3203 = vmatprep.mubr.msk.bf16.mxu1 %vm3427_vm1, %v3426_v7 }
 0xe4b   : > { %v1616_v27 = vpop.f32.mrf.mxu1 }
 0xe4c   : > { %v1622_v28 = vpack.c.bf16 %v1616_v27, %v1616_v27 }
 0xe4d   : > { %v3191_v29 = vpop.f32.mrf.mxu1 }
 0xe4e   : > { %3196 = vmatmul.mubr.msk.bf16.vlgmr.msra.gmra.mxu0 %vm1032_vm3, %v1622_v28 }
 0xe4f   : > { %v1619_v30 = vpop.f32.mrf.mxu1  ;;  %3223 = vmatprep.mubr.msk.bf16.mxu0 %vm3427_vm1, %v3426_v7  ;;  %3208 = vmatpush3.bf16.msra.mxu0 %v1798_v1 }
 0xe50   : > { %3209 = vmatprep.subr.bf16.mxu0 %v3426_v7 }
 0xe51   : > { %v3192_v32 = vpop.f32.mrf.mxu1 }
 0xe53   : > { %3210 = vmatpush3.bf16.msra.mxu0 %v1797_v4 }
 0xe54   : > { %3211 = vmatprep.subr.bf16.mxu0 %v3426_v7 }
 0xe57   : > { %3212 = vmatpush3.bf16.msra.mxu0 %v1796_v8 }
 0xe58   : > { %3213 = vmatprep.subr.bf16.mxu0 %v3426_v7 }
 0xe5b   : > { %3214 = vmatpush3.bf16.msra.mxu0 %v1795_v11 }
 0xe5c   : > { %3215 = vmatprep.subr.bf16.mxu0 %v3426_v7 }
 0xe5f   : > { %3216 = vmatpush3.bf16.msra.mxu0 %v1794_v15 }
 0xe60   : > { %3217 = vmatprep.subr.bf16.mxu0 %v3426_v7 }
 0xf0e   : > { %v1664_v33 = vpop.f32.mrf.mxu0 }
 0xf0f   : > { %v1670_v34 = vadd.f32 %v1664_v33, %v1511_v17  ;;  %v1793_v17 = vpack.c.bf16 %v1779_v25, %v1778_v16 }
 0xf10   : > { %v3197_v36 = vpop.f32.mrf.mxu0 }
 0xf11   : > { %v1671_v37 = vadd.f32 %v1670_v34, %v3876_v61  ;;  %v1711_v61 = vld [vmem:[%s4407_s13 + $0x10] sm:$0xff]  ;;  %3218 = vmatpush3.bf16.msra.mxu0 %v1793_v17 }
 0xf12   : > { %v1667_v38 = vpop.f32.mrf.mxu0  ;;  %v1715_v49 = vpack.c.bf16 %v1712_v48, %v1711_v61  ;;  %3219 = vmatprep.subr.bf16.mxu0 %v3426_v7 }
 0xf13   : > { %v4033_v39 = vadd.f32 %v2903_v35, %v1671_v37  ;;  %v2909_v38 = vld [vmem:[%s4410_s16] ss:$0 sm:$0xff] }
 0xf14   : > { %v3198_v40 = vpop.f32.mrf.mxu0  ;;  %3200 = vmatpush3.bf16.msra.mxu1 %v1715_v49 }
 0xf15   : > { %v1682_v41 = vsel %vm906_vm0, %v4033_v39, 0.0  ;;  %3201 = vmatprep.subr.bf16.mxu1 %v3426_v7  ;;  %3220 = vmatpush3.bf16.msra.mxu0 %v1792_v20 }
 0xf16   : > { %1683 = vadd.xlane.f32.xlu1 %v1682_v41  ;;  %3221 = vmatprep.subr.bf16.mxu0 %v3426_v7 }
 0xf18   : > { %3202 = vmatpush3.bf16.msra.mxu1 %v1714_v51  ;;  %v2916_v51 = vld [vmem:[%s4401_s7 + $0x30] sm:$0xff] }
 0xf19   : > { %3227 = vmatprep.subr.bf16.mxu1 %v3426_v7  ;;  %3222 = vmatpush3.bf16.msra.mxu0 %v1791_v23 }
 0xf1a   : > { %3253 = vmatprep.subr.bf16.mxu0 %v3426_v7 }
 0xf9f   : > { %v1684_v42 = vpop.xlane.xlu1 %1683 }
 0xfa0   : > { %v1685_v43 = vmul.f32 0.03125, %v1684_v42 }
 0xfa2   : > { %v1686_v44 = vsub.f32 %v4033_v39, %v1685_v43 }
 0xfa4   : > { %v1687_v46 = vmul.f32 %v1686_v44, %v1686_v44 }
 0xfa6   : > { %v1688_v47 = vsel %vm906_vm0, %v1687_v46, 0.0 }
 0xfa7   : > { %1689 = vadd.xlane.f32.xlu1 %v1688_v47 }
0x1030   : > { %v1690_v52 = vpop.xlane.xlu1 %1689 }
0x1031   : > { %v1691_v53 = vmul.f32 0.03125, %v1690_v52 }
0x1033   : > { %v1692_v54 = vadd.f32 1e-05, %v1691_v53  ;;  %v2914_v53 = vld [vmem:[%s4401_s7 + $0x20] sm:$0xff] }
0x1035   : > { %3386 = vrsqrt.f32 %v1692_v54  ;;  %v2915_v54 = vld [vmem:[%s4401_s7 + $0x28] sm:$0xff] }
0x1042   : > { %v3387_v55 = vpop.eup %3386 }
0x1043   : > { %v1694_v57 = vmul.f32 %v3387_v55, %v1686_v44  ;;  %v1884_v55 = vpack.c.bf16 %v2915_v54, %v2914_v53 }
0x1045   : > { %v1701_v59 = vmul.f32 %v2904_v56, %v1694_v57 }
0x1047   : > { %v1708_v60 = vadd.f32 %v2905_v58, %v1701_v59 }
0x1049   : > { %v1713_v62 = vpack.c.bf16 %v1708_v60, %v1708_v60  ;;  %v2912_v60 = vld [vmem:[%s4399_s5 + $0x1] ss:$0 sm:$0xff] }
0x104b   : > { %3204 = vmatmul.mubr.msk.bf16.vlgmr.msra.gmra.mxu1 %vm978_vm2, %v1713_v62 }
0x104c   : > { %3231 = vmatprep.mubr.msk.bf16.mxu1 %vm3427_vm1, %v3426_v7 }
0x110b   : > { %v1760_v26 = vpop.f32.mrf.mxu1 }
0x110c   : > { %v1761_v12 = vadd.f32 %v2906_v24, %v1760_v26 }
0x110d   : > { %v3205_v27 = vpop.f32.mrf.mxu1 }
0x110e   : > { %v2908_v28 = vmul.f32 -1.702, %v1761_v12 }
0x110f   : > { %v1763_v29 = vpop.f32.mrf.mxu1 }
0x1110   : > { %v1768_v30 = vmul.f32 1.442695, %v2908_v28 }
0x1111   : > { %v3206_v32 = vpop.f32.mrf.mxu1 }
0x1112   : > { %3388 = vpow2.f32 %v1768_v30 }
0x111f   : > { %v3389_v33 = vpop.eup %3388 }
0x1120   : > { %v1770_v34 = vadd.f32 1.0, %v3389_v33 }
0x1122   : > { %3390 = vrcp.f32 %v1770_v34 }
0x112f   : > { %v3391_v35 = vpop.eup %3390 }
0x1130   : > { %v1773_v36 = vmul.f32 %v3391_v35, %v1761_v12 }
0x1132   : > { %v1790_v37 = vpack.c.bf16 %v1773_v36, %v1773_v36 }
0x1134   : > { %3224 = vmatmul.mubr.bf16.vlgmr.msra.gmra.mxu0 %v1790_v37 }
0x1135   : > { %3255 = vmatprep.mubr.msk.bf16.mxu0 %vm3427_vm1, %v3426_v7 }
0x11f4   : > { %v1840_v40 = vpop.f32.mrf.mxu0 }
0x11f5   : > { %v1841_v41 = vadd.f32 %v2909_v38, %v1840_v40 }
0x11f6   : > { %v3225_v42 = vpop.f32.mrf.mxu0 }
0x11f7   : > { %v4127_v43 = vadd.f32 %v1841_v41, %v4033_v39  ;;  %v2917_v39 = vld [vmem:[%s4401_s7 + $0x38] sm:$0xff] }
0x11f8   : > { %v1843_v44 = vpop.f32.mrf.mxu0  ;;  %v1885_v52 = vpack.c.bf16 %v2917_v39, %v2916_v51 }
0x11f9   : > { %v1851_v46 = vsel %vm906_vm0, %v4127_v43, 0.0 }
0x11fa   : > { %1852 = vadd.xlane.f32.xlu1 %v1851_v46  ;;  %v3226_v47 = vpop.f32.mrf.mxu0  ;;  %3228 = vmatpush3.bf16.msra.mxu1 %v1885_v52 }
0x11fb   : > { %3229 = vmatprep.subr.bf16.mxu1 %v3426_v7 }
0x11fe   : > { %3230 = vmatpush3.bf16.msra.mxu1 %v1884_v55  ;;  %v2921_v55 = vld [vmem:[%s4403_s9 + $0x20] sm:$0xff] }
0x11ff   : > { %3235 = vmatprep.subr.bf16.mxu1 %v3426_v7 }
0x1283   : > { %v1853_v61 = vpop.xlane.xlu1 %1852 }
0x1284   : > { %v1854_v48 = vmul.f32 0.03125, %v1853_v61 }
0x1286   : > { %v1855_v49 = vsub.f32 %v4127_v43, %v1854_v48 }
0x1288   : > { %v1856_v50 = vmul.f32 %v1855_v49, %v1855_v49 }
0x128a   : > { %v1857_v31 = vsel %vm906_vm0, %v1856_v50, 0.0 }
0x128b   : > { %1858 = vadd.xlane.f32.xlu1 %v1857_v31  ;;  %v2922_v31 = vld [vmem:[%s4403_s9 + $0x28] sm:$0xff] }
0x128c   : > { %v2168_v51 = vpack.c.bf16 %v2922_v31, %v2922_v31 }
0x128e   : > { %v2173_v39 = vsel %vm1263_vm8, %v2168_v51, 0 }
0x1314   : > { %v1859_v56 = vpop.xlane.xlu1 %1858 }
0x1315   : > { %v1860_v57 = vmul.f32 0.03125, %v1859_v56  ;;  %v2055_v56 = vpack.c.bf16 %v2921_v55, %v2921_v55 }
0x1317   : > { %v1861_v58 = vadd.f32 1e-05, %v1860_v57 }
0x1319   : > { %3392 = vrsqrt.f32 %v1861_v58 }
0x1326   : > { %v3393_v59 = vpop.eup %3392 }
0x1327   : > { %v1863_v62 = vmul.f32 %v3393_v59, %v1855_v49 }
0x1329   : > { %v1870_v0 = vmul.f32 %v2912_v60, %v1863_v62  ;;  %v2219_v60 = vsel %vm1263_vm8, %v2055_v56, 0 }
0x132b   : > { %v1877_v1 = vadd.f32 %v2913_v63, %v1870_v0 }
0x132d   : > { %v1883_v2 = vpack.c.bf16 %v1877_v1, %v1877_v1 }
0x132f   : > { %3232 = vmatmul.mubr.msk.bf16.vlgmr.msra.gmra.mxu1 %vm978_vm2, %v1883_v2 }
0x1330   : > { %3237 = vmatprep.mubr.msk.bf16.mxu1 %vm3427_vm1, %v3426_v7 }
0x13ef   : > { %v1931_v4 = vpop.f32.mrf.mxu1 }
0x13f0   : > { %v1932_v5 = vadd.f32 %v2919_v3, %v1931_v4 }
0x13f1   : > { %v3233_v6 = vpop.f32.mrf.mxu1 }
0x13f2   : > { %v4159_v8 = vpack.c.bf16 %v1932_v5, %v1932_v5  ;;  %v1942_v14 = vmul.f32 0.35355338, %v1932_v5 }
0x13f3   : > { %v1934_v9 = vpop.f32.mrf.mxu1 }
0x13f4   : > { %1946 = vrot.lane.b32.xlu0 %v4159_v8, %s3428_s26  ;;  %v4165_v15 = vpack.c.bf16 %v1942_v14, %v1942_v14  ;;  %s4435_s26 = smov 80  }
0x13f5   : > { %v3234_v10 = vpop.f32.mrf.mxu1 }
0x1466   : > { %v1947_v11 = vpop.permute.xlu0 %1946 }
0x1467   : > { %v1952_v13 = vsel %vm1032_vm3, %v1947_v11, 0 }
0x1468   : > { %3236 = vmatpush3.bf16.xpose.msra.mxu1 %v1952_v13 }
0x1469   : > { %3241 = vmatprep.subr.bf16.mxu1 %v3426_v7 }
0x146f   : > { %3238 = vmatmul.mubr.msk.bf16.vlgmr.msra.gmra.mxu1 %vm1032_vm3, %v4165_v15 }
0x1470   : > { %3243 = vmatprep.mubr.msk.bf16.mxu1 %vm3427_vm1, %v3426_v7 }
0x152f   : > { %v1988_v16 = vpop.f32.mrf.mxu1 }
0x1530   : > { %v1994_v25 = vsel %vm1079_vm4, %v1988_v16, -inf }
0x1531   : > { %1995 = vmax.xlane.f32.xlu1 %v1994_v25  ;;  %v3239_v17 = vpop.f32.mrf.mxu1 }
0x1533   : > { %v1991_v18 = vpop.f32.mrf.mxu1 }
0x1535   : > { %v3240_v19 = vpop.f32.mrf.mxu1 }
0x1542   : > { %2006 = vrot.lane.b32.xlu1 %v4159_v8, %s3430_s4 }
0x1546   : > { %2059 = vrot.lane.b32.xlu1 %v4159_v8, %s3429_s27  ;;  %s4436_s27 = smov 112  }
0x154a   : > { %2057 = vrot.lane.b32.xlu1 %v4165_v15, %s3431_s29 }
0x15ba   : > { %v1996_v20 = vpop.xlane.xlu1 %1995 }
0x15bb   : > { %v1997_v21 = vsub.f32 %v1988_v16, %v1996_v20 }
0x15bd   : > { %v1998_v22 = vmul.f32 1.442695, %v1997_v21 }
0x15be   : > { %v2007_v23 = vpop.permute.xlu1 %2006 }
0x15bf   : > { %3394 = vpow2.f32 %v1998_v22  ;;  %v2012_v24 = vand.u32 %v2007_v23, %v3934_v45 }
0x15c1   : > { %3242 = vmatpush3.bf16.msra.mxu1 %v2012_v24 }
0x15c2   : > { %3247 = vmatprep.subr.bf16.mxu1 %v3426_v7  ;;  %v2060_v30 = vpop.permute.xlu1 %2059 }
0x15c3   : > { %v2065_v33 = vsel %vm1032_vm3, %v2060_v30, 0 }
0x15c6   : > { %v2058_v34 = vpop.permute.xlu1 %2057 }
0x15cc   : > { %v3395_v26 = vpop.eup %3394 }
0x15cd   : > { %v2000_v12 = vsel %vm1079_vm4, %v3395_v26, 0.0 }
0x15ce   : > { %2001 = vadd.xlane.f32.xlu0 %v2000_v12 }
0x1657   : > { %v2002_v27 = vpop.xlane.xlu0 %2001 }
0x1658   : > { %3396 = vrcp.f32 %v2002_v27 }
0x1665   : > { %v3397_v28 = vpop.eup %3396 }
0x1666   : > { %v2004_v29 = vmul.f32 %v3397_v28, %v3395_v26 }
0x1668   : > { %v2005_v32 = vpack.c.bf16 %v2004_v29, %v2004_v29 }
0x166a   : > { %3244 = vmatmul.mubr.msk.bf16.vlgmr.msra.gmra.mxu1 %vm1094_vm7, %v2005_v32 }
0x166b   : > { %3248 = vmatpush3.bf16.xpose.msra.mxu1 %v2065_v33  ;;  %3249 = vmatprep.mubr.msk.bf16.mxu1 %vm3427_vm1, %v3426_v7 }
0x166c   : > { %3259 = vmatprep.subr.bf16.mxu1 %v3426_v7 }
0x1672   : > { %3250 = vmatmul.mubr.msk.bf16.vlgmr.msra.gmra.mxu1 %vm1032_vm3, %v2058_v34 }
0x1673   : > { %3261 = vmatprep.mubr.msk.bf16.mxu1 %vm3427_vm1, %v3426_v7  ;;  %3260 = vmatpush3.bf16.msra.mxu1 %v2173_v39 }
0x1674   : > { %3271 = vmatprep.subr.bf16.mxu1 %v3426_v7 }
0x172a   : > { %v2048_v35 = vpop.f32.mrf.mxu1 }
0x172b   : > { %v2054_v62 = vpack.c.bf16 %v2048_v35, %v2048_v35 }
0x172c   : > { %v3245_v36 = vpop.f32.mrf.mxu1 }
0x172e   : > { %v2051_v37 = vpop.f32.mrf.mxu1 }
0x172f   : > { %v2923_v37 = vld [vmem:[%s4403_s9 + $0x30] sm:$0xff] }
0x1730   : > { %v3246_v38 = vpop.f32.mrf.mxu1 }
0x1731   : > { %v2372_v38 = vpack.c.bf16 %v2923_v37, %v2923_v37 }
0x1732   : > { %v2101_v40 = vpop.f32.mrf.mxu1 }
0x1733   : > { %v2107_v41 = vsel %vm1079_vm4, %v2101_v40, -inf }
0x1734   : > { %2108 = vmax.xlane.f32.xlu1 %v2107_v41  ;;  %v3251_v42 = vpop.f32.mrf.mxu1 }
0x1736   : > { %v2104_v44 = vpop.f32.mrf.mxu1 }
0x1738   : > { %v3252_v46 = vpop.f32.mrf.mxu1 }
0x17bd   : > { %v2109_v47 = vpop.xlane.xlu1 %2108 }
0x17be   : > { %v2110_v61 = vsub.f32 %v2101_v40, %v2109_v47  ;;  %v2377_v40 = vsel %vm1263_vm8, %v2372_v38, 0  ;;  %v2942_v38 = vld [vmem:[%s4406_s12 + $0x1] ss:$0 sm:$0xff] }
0x17c0   : > { %v2111_v48 = vmul.f32 1.442695, %v2110_v61 }
0x17c2   : > { %3398 = vpow2.f32 %v2111_v48 }
0x17cf   : > { %v3399_v49 = vpop.eup %3398 }
0x17d0   : > { %v2113_v50 = vsel %vm1079_vm4, %v3399_v49, 0.0 }
0x17d1   : > { %2114 = vadd.xlane.f32.xlu0 %v2113_v50 }
0x17e7   : > { %2119 = vrot.lane.b32.xlu0 %v4159_v8, %s3433_s28 }
0x17eb   : > { %2263 = vrot.lane.b32.xlu0 %v4159_v8, %s4435_s26  ;;  %s625_s26 = scalar_lea.vmem %s4414_s20, %s4443_s22 }
0x17ef   : > { %2261 = vrot.lane.b32.xlu0 %v4165_v15, %s4436_s27 }
0x185a   : > { %v2115_v52 = vpop.xlane.xlu0 %2114 }
0x185b   : > { %3400 = vrcp.f32 %v2115_v52 }
0x185e   : > { %v2120_v53 = vpop.permute.xlu0 %2119 }
0x185f   : > { %v2125_v54 = vand.u32 %v2120_v53, %v3934_v45 }
0x1861   : > { %3254 = vmatpush3.bf16.msra.mxu0 %v2125_v54 }
0x1862   : > { %3265 = vmatprep.subr.bf16.mxu0 %v3426_v7  ;;  %v2264_v63 = vpop.permute.xlu0 %2263 }
0x1863   : > { %v2269_v3 = vsel %vm1032_vm3, %v2264_v63, 0 }
0x1866   : > { %v2262_v9 = vpop.permute.xlu0 %2261 }
0x1868   : > { %v3401_v57 = vpop.eup %3400 }
0x1869   : > { %v2117_v58 = vmul.f32 %v3401_v57, %v3399_v49  ;;  %v2924_v57 = vld [vmem:[%s4403_s9 + $0x38] sm:$0xff] }
0x186b   : > { %v2118_v59 = vpack.c.bf16 %v2117_v58, %v2117_v58 }
0x186d   : > { %3256 = vmatmul.mubr.msk.bf16.vlgmr.msra.gmra.mxu0 %vm1094_vm7, %v2118_v59  ;;  %v2531_v59 = vpack.c.bf16 %v2924_v57, %v2924_v57  ;;  %v2955_v57 = vld [vmem:[%s4409_s15 + $0xa0] sm:$0xff] }
0x186e   : > { %3266 = vmatpush3.bf16.msra.mxu0 %v2219_v60  ;;  %3267 = vmatprep.mubr.msk.bf16.mxu0 %vm3427_vm1, %v3426_v7 }
0x186f   : > { %3277 = vmatprep.subr.bf16.mxu0 %v3426_v7 }
0x1875   : > { %3268 = vmatmul.mubr.msk.bf16.vlgmr.msra.gmra.mxu0 %vm1032_vm3, %v2054_v62  ;;  %v2536_v62 = vsel %vm1263_vm8, %v2531_v59, 0 }
0x1876   : > { %3279 = vmatprep.mubr.msk.bf16.mxu0 %vm3427_vm1, %v3426_v7 }
0x192d   : > { %v2161_v0 = vpop.f32.mrf.mxu0 }
0x192e   : > { %v2167_v1 = vpack.c.bf16 %v2161_v0, %v2161_v0 }
0x192f   : > { %v3257_v2 = vpop.f32.mrf.mxu0 }
0x1930   : > { %3262 = vmatmul.mubr.msk.bf16.vlgmr.msra.gmra.mxu1 %vm1032_vm3, %v2167_v1 }
0x1931   : > { %3272 = vmatpush3.bf16.xpose.msra.mxu1 %v2269_v3  ;;  %v2164_v4 = vpop.f32.mrf.mxu0  ;;  %3273 = vmatprep.mubr.msk.bf16.mxu1 %vm3427_vm1, %v3426_v7 }
0x1932   : > { %3283 = vmatprep.subr.bf16.mxu1 %v3426_v7 }
0x1933   : > { %v3258_v5 = vpop.f32.mrf.mxu0 }
0x1935   : > { %v4220_v6 = vpop.f32.mrf.mxu0 }
0x1937   : > { %v3269_v10 = vpop.f32.mrf.mxu0 }
0x1938   : > { %3274 = vmatmul.mubr.msk.bf16.vlgmr.msra.gmra.mxu1 %vm1032_vm3, %v2262_v9 }
0x1939   : > { %v2258_v11 = vpop.f32.mrf.mxu0  ;;  %3285 = vmatprep.mubr.msk.bf16.mxu1 %vm3427_vm1, %v3426_v7  ;;  %3284 = vmatpush3.bf16.msra.mxu1 %v2377_v40 }
0x193a   : > { %3295 = vmatprep.subr.bf16.mxu1 %v3426_v7 }
0x193b   : > { %v3270_v13 = vpop.f32.mrf.mxu0 }
0x19f0   : > { %v4225_v14 = vpop.f32.mrf.mxu1 }
0x19f1   : > { %v2256_v55 = vadd.f32 %v4220_v6, %v4225_v14 }
0x19f2   : > { %v3263_v16 = vpop.f32.mrf.mxu1 }
0x19f3   : > { %v2938_v16 = vld [vmem:[%s4404_s10 + $0x1] ss:$0 sm:$0xff] }
0x19f4   : > { %v2212_v25 = vpop.f32.mrf.mxu1 }
0x19f6   : > { %v3264_v17 = vpop.f32.mrf.mxu1 }
0x19f8   : > { %v2305_v18 = vpop.f32.mrf.mxu1 }
0x19f9   : > { %v2311_v19 = vsel %vm1079_vm4, %v2305_v18, -inf }
0x19fa   : > { %2312 = vmax.xlane.f32.xlu1 %v2311_v19  ;;  %v3275_v20 = vpop.f32.mrf.mxu1 }
0x19fc   : > { %v2308_v21 = vpop.f32.mrf.mxu1 }
0x19fe   : > { %v3276_v22 = vpop.f32.mrf.mxu1 }
0x1a0b   : > { %2323 = vrot.lane.b32.xlu1 %v4159_v8, %s4437_s25 }
0x1a0f   : > { %2422 = vrot.lane.b32.xlu1 %v4159_v8, %s4438_s1 }
0x1a13   : > { %2420 = vrot.lane.b32.xlu1 %v4165_v15, %s4439_s30 }
0x1a83   : > { %v2313_v23 = vpop.xlane.xlu1 %2312 }
0x1a84   : > { %v2314_v24 = vsub.f32 %v2305_v18, %v2313_v23 }
0x1a86   : > { %v2315_v26 = vmul.f32 1.442695, %v2314_v24 }
0x1a87   : > { %v2324_v12 = vpop.permute.xlu1 %2323 }
0x1a88   : > { %3402 = vpow2.f32 %v2315_v26  ;;  %v2329_v27 = vand.u32 %v2324_v12, %v3934_v45 }
0x1a8a   : > { %3278 = vmatpush3.bf16.msra.mxu0 %v2329_v27  ;;  %v2946_v27 = vld [vmem:[%s4407_s13 + $0x38] sm:$0xff] }
0x1a8b   : > { %3289 = vmatprep.subr.bf16.mxu0 %v3426_v7  ;;  %v2423_v34 = vpop.permute.xlu1 %2422 }
0x1a8c   : > { %v2428_v35 = vsel %vm1032_vm3, %v2423_v34, 0 }
0x1a8f   : > { %v2421_v36 = vpop.permute.xlu1 %2420 }
0x1a95   : > { %v3403_v28 = vpop.eup %3402 }
0x1a96   : > { %v2317_v29 = vsel %vm1079_vm4, %v3403_v28, 0.0 }
0x1a97   : > { %2318 = vadd.xlane.f32.xlu0 %v2317_v29  ;;  %v2943_v29 = vld [vmem:[%s4407_s13 + $0x20] sm:$0xff] }
0x1b20   : > { %v2319_v30 = vpop.xlane.xlu0 %2318 }
0x1b21   : > { %3404 = vrcp.f32 %v2319_v30  ;;  %v2944_v30 = vld [vmem:[%s4407_s13 + $0x28] sm:$0xff] }
0x1b2e   : > { %v3405_v32 = vpop.eup %3404 }
0x1b2f   : > { %v2321_v33 = vmul.f32 %v3405_v32, %v3403_v28  ;;  %v2626_v32 = vpack.c.bf16 %v2944_v30, %v2943_v29  ;;  %v2782_v30 = vld [vmem:[%s4413_s19 + $0x10] sm:$0xff] }
0x1b31   : > { %v2322_v15 = vpack.c.bf16 %v2321_v33, %v2321_v33 }
0x1b33   : > { %3280 = vmatmul.mubr.msk.bf16.vlgmr.msra.gmra.mxu0 %vm1094_vm7, %v2322_v15 }
0x1b34   : > { %3290 = vmatpush3.bf16.xpose.msra.mxu0 %v2428_v35  ;;  %3291 = vmatprep.mubr.msk.bf16.mxu0 %vm3427_vm1, %v3426_v7 }
0x1b35   : > { %3301 = vmatprep.subr.bf16.mxu0 %v3426_v7 }
0x1b3b   : > { %3292 = vmatmul.mubr.msk.bf16.vlgmr.msra.gmra.mxu0 %vm1032_vm3, %v2421_v36  ;;  %v2941_v36 = vld [vmem:[%s4405_s11 + $0x1] ss:$0 sm:$0xff] }
0x1b3c   : > { %3303 = vmatprep.mubr.msk.bf16.mxu0 %vm3427_vm1, %v3426_v7  ;;  %3302 = vmatpush3.bf16.msra.mxu0 %v2536_v62  ;;  %v2954_v62 = vld [vmem:[%s4409_s15 + $0x98] sm:$0xff] }
0x1b3d   : > { %3315 = vmatprep.subr.bf16.mxu0 %v3426_v7 }
0x1bf3   : > { %v2365_v41 = vpop.f32.mrf.mxu0 }
0x1bf4   : > { %v2371_v42 = vpack.c.bf16 %v2365_v41, %v2365_v41 }
0x1bf5   : > { %v3281_v44 = vpop.f32.mrf.mxu0 }
0x1bf6   : > { %3286 = vmatmul.mubr.msk.bf16.vlgmr.msra.gmra.mxu1 %vm1032_vm3, %v2371_v42  ;;  %v2965_v44 = vld [vmem:[%s4409_s15 + $0xf0] sm:$0xff] }
0x1bf7   : > { %v2368_v46 = vpop.f32.mrf.mxu0  ;;  %3297 = vmatprep.mubr.msk.bf16.mxu1 %vm3427_vm1, %v3426_v7 }
0x1bf8   : > { %v2966_v46 = vld [vmem:[%s4409_s15 + $0xf8] sm:$0xff] }
0x1bf9   : > { %v3282_v47 = vpop.f32.mrf.mxu0 }
0x1bfa   : > { %v2712_v47 = vpack.c.bf16 %v2966_v46, %v2965_v44 }
0x1bfb   : > { %v2464_v61 = vpop.f32.mrf.mxu0 }
0x1bfc   : > { %v2470_v48 = vsel %vm1079_vm4, %v2464_v61, -inf }
0x1bfd   : > { %2471 = vmax.xlane.f32.xlu1 %v2470_v48  ;;  %v3293_v49 = vpop.f32.mrf.mxu0  ;;  %v2964_v48 = vld [vmem:[%s4409_s15 + $0xe8] sm:$0xff] }
0x1bff   : > { %v2467_v50 = vpop.f32.mrf.mxu0 }
0x1c00   : > { %v2961_v50 = vld [vmem:[%s4409_s15 + $0xd0] sm:$0xff] }
0x1c01   : > { %v3294_v31 = vpop.f32.mrf.mxu0 }
0x1c02   : > { %v2962_v31 = vld [vmem:[%s4409_s15 + $0xd8] sm:$0xff] }
0x1c86   : > { %v2472_v51 = vpop.xlane.xlu1 %2471 }
0x1c87   : > { %v2473_v39 = vsub.f32 %v2464_v61, %v2472_v51  ;;  %v2963_v61 = vld [vmem:[%s4409_s15 + $0xe0] sm:$0xff]  ;;  %v2710_v51 = vpack.c.bf16 %v2962_v31, %v2961_v50 }
0x1c88   : > { %v2711_v49 = vpack.c.bf16 %v2964_v48, %v2963_v61 }
0x1c89   : > { %v2474_v52 = vmul.f32 1.442695, %v2473_v39  ;;  %v2959_v39 = vld [vmem:[%s4409_s15 + $0xc0] sm:$0xff] }
0x1c8b   : > { %3406 = vpow2.f32 %v2474_v52  ;;  %v2960_v52 = vld [vmem:[%s4409_s15 + $0xc8] sm:$0xff] }
0x1c98   : > { %v3407_v53 = vpop.eup %3406 }
0x1c99   : > { %v2476_v54 = vsel %vm1079_vm4, %v3407_v53, 0.0 }
0x1c9a   : > { %2477 = vadd.xlane.f32.xlu0 %v2476_v54  ;;  %v2957_v54 = vld [vmem:[%s4409_s15 + $0xb0] sm:$0xff] }
0x1cb0   : > { %2482 = vrot.lane.b32.xlu0 %v4159_v8, %s4440_s24 }
0x1cb6   : > { %v2413_v56 = vpop.f32.mrf.mxu1 }
0x1cb7   : > { %v2419_v58 = vadd.f32 %v2413_v56, %v2256_v55  ;;  %v2958_v55 = vld [vmem:[%s4409_s15 + $0xb8] sm:$0xff] }
0x1cb8   : > { %v3287_v60 = vpop.f32.mrf.mxu1  ;;  %v2708_v56 = vpack.c.bf16 %v2958_v55, %v2957_v54 }
0x1cb9   : > { %v2953_v60 = vld [vmem:[%s4409_s15 + $0x90] sm:$0xff] }
0x1cba   : > { %v2416_v63 = vpop.f32.mrf.mxu1 }
0x1cbb   : > { %v2706_v63 = vpack.c.bf16 %v2954_v62, %v2953_v60 }
0x1cbc   : > { %v3288_v0 = vpop.f32.mrf.mxu1 }
0x1cbd   : > { %v2951_v0 = vld [vmem:[%s4409_s15 + $0x80] sm:$0xff] }
0x1d23   : > { %v2478_v1 = vpop.xlane.xlu0 %2477 }
0x1d24   : > { %3408 = vrcp.f32 %v2478_v1  ;;  %v2952_v1 = vld [vmem:[%s4409_s15 + $0x88] sm:$0xff] }
0x1d27   : > { %v2483_v8 = vpop.permute.xlu0 %2482 }
0x1d28   : > { %v2488_v2 = vand.u32 %v2483_v8, %v3934_v45  ;;  %v2705_v8 = vpack.c.bf16 %v2952_v1, %v2951_v0 }
0x1d2a   : > { %3296 = vmatpush3.bf16.msra.mxu1 %v2488_v2  ;;  %v2948_v2 = vld [vmem:[%s4408_s14 + $0x1] ss:$0 sm:$0xff] }
0x1d2b   : > { %3307 = vmatprep.subr.bf16.mxu1 %v3426_v7 }
0x1d31   : > { %v3409_v3 = vpop.eup %3408 }
0x1d32   : > { %v2480_v4 = vmul.f32 %v3409_v3, %v3407_v53  ;;  %v2709_v53 = vpack.c.bf16 %v2960_v52, %v2959_v39 }
0x1d34   : > { %v2481_v5 = vpack.c.bf16 %v2480_v4, %v2480_v4 }
0x1d36   : > { %3298 = vmatmul.mubr.msk.bf16.vlgmr.msra.gmra.mxu1 %vm1094_vm7, %v2481_v5 }
0x1d37   : > { %3311 = vmatprep.mubr.msk.bf16.mxu1 %vm3427_vm1, %v3426_v7 }
0x1df6   : > { %v2524_v6 = vpop.f32.mrf.mxu1 }
0x1df7   : > { %v2530_v9 = vpack.c.bf16 %v2524_v6, %v2524_v6 }
0x1df8   : > { %v3299_v10 = vpop.f32.mrf.mxu1 }
0x1df9   : > { %3304 = vmatmul.mubr.msk.bf16.vlgmr.msra.gmra.mxu0 %vm1032_vm3, %v2530_v9 }
0x1dfa   : > { %v2527_v11 = vpop.f32.mrf.mxu1  ;;  %3331 = vmatprep.mubr.msk.bf16.mxu0 %vm3427_vm1, %v3426_v7  ;;  %3316 = vmatpush3.bf16.msra.mxu0 %v2712_v47 }
0x1dfb   : > { %3317 = vmatprep.subr.bf16.mxu0 %v3426_v7 }
0x1dfc   : > { %v3300_v45 = vpop.f32.mrf.mxu1 }
0x1dfe   : > { %3318 = vmatpush3.bf16.msra.mxu0 %v2711_v49 }
0x1dff   : > { %3319 = vmatprep.subr.bf16.mxu0 %v3426_v7 }
0x1e02   : > { %3320 = vmatpush3.bf16.msra.mxu0 %v2710_v51 }
0x1e03   : > { %3321 = vmatprep.subr.bf16.mxu0 %v3426_v7 }
0x1e06   : > { %3322 = vmatpush3.bf16.msra.mxu0 %v2709_v53 }
0x1e07   : > { %3323 = vmatprep.subr.bf16.mxu0 %v3426_v7 }
0x1e0a   : > { %3324 = vmatpush3.bf16.msra.mxu0 %v2708_v56 }
0x1e0b   : > { %3325 = vmatprep.subr.bf16.mxu0 %v3426_v7 }
0x1eb9   : > { %v2572_v13 = vpop.f32.mrf.mxu0 }
0x1eba   : > { %v2578_v14 = vadd.f32 %v2572_v13, %v2419_v58  ;;  %v2956_v58 = vld [vmem:[%s4409_s15 + $0xa8] sm:$0xff] }
0x1ebb   : > { %v3305_v25 = vpop.f32.mrf.mxu0  ;;  %v2707_v59 = vpack.c.bf16 %v2956_v58, %v2955_v57 }
0x1ebc   : > { %v2579_v17 = vadd.f32 %v2578_v14, %v4127_v43  ;;  %v2945_v43 = vld [vmem:[%s4407_s13 + $0x30] sm:$0xff] }
0x1ebd   : > { %v2575_v18 = vpop.f32.mrf.mxu0  ;;  %v2627_v28 = vpack.c.bf16 %v2946_v27, %v2945_v43  ;;  %3326 = vmatpush3.bf16.msra.mxu0 %v2707_v59 }
0x1ebe   : > { %v4276_v19 = vadd.f32 %v2938_v16, %v2579_v17  ;;  %3327 = vmatprep.subr.bf16.mxu0 %v3426_v7  ;;  %v2968_v17 = vld [vmem:[%s4410_s16 + $0x1] ss:$0 sm:$0xff] }
0x1ebf   : > { %v3306_v20 = vpop.f32.mrf.mxu0  ;;  %3308 = vmatpush3.bf16.msra.mxu1 %v2627_v28 }
0x1ec0   : > { %v2593_v21 = vsel %vm906_vm0, %v4276_v19, 0.0  ;;  %3309 = vmatprep.subr.bf16.mxu1 %v3426_v7 }
0x1ec1   : > { %2594 = vadd.xlane.f32.xlu0 %v2593_v21  ;;  %3328 = vmatpush3.bf16.msra.mxu0 %v2706_v63 }
0x1ec2   : > { %3329 = vmatprep.subr.bf16.mxu0 %v3426_v7 }
0x1ec3   : > { %3310 = vmatpush3.bf16.msra.mxu1 %v2626_v32  ;;  %v2783_v32 = vld [vmem:[%s4413_s19 + $0x18] sm:$0xff] }
0x1ec4   : > { %3335 = vmatprep.subr.bf16.mxu1 %v3426_v7 }
0x1ec5   : > { %3330 = vmatpush3.bf16.msra.mxu0 %v2705_v8 }
0x1f4a   : > { %v2595_v22 = vpop.xlane.xlu0 %2594 }
0x1f4b   : > { %v2596_v23 = vmul.f32 0.03125, %v2595_v22 }
0x1f4d   : > { %v2597_v24 = vsub.f32 %v4276_v19, %v2596_v23 }
0x1f4f   : > { %v2598_v26 = vmul.f32 %v2597_v24, %v2597_v24 }
0x1f51   : > { %v2599_v12 = vsel %vm906_vm0, %v2598_v26, 0.0 }
0x1f52   : > { %2600 = vadd.xlane.f32.xlu1 %v2599_v12 }
0x1fdb   : > { %v2601_v33 = vpop.xlane.xlu1 %2600 }
0x1fdc   : > { %v2602_v34 = vmul.f32 0.03125, %v2601_v33  ;;  %v2786_v33 = vpack.c.bf16 %v2783_v32, %v2782_v30 }
0x1fde   : > { %v2603_v15 = vadd.f32 1e-05, %v2602_v34  ;;  %v2781_v34 = vld [vmem:[%s4413_s19 + $0x8] sm:$0xff] }
0x1fe0   : > { %3410 = vrsqrt.f32 %v2603_v15 }
0x1fed   : > { %v3411_v35 = vpop.eup %3410 }
0x1fee   : > { %v2605_v37 = vmul.f32 %v3411_v35, %v2597_v24 }
0x1ff0   : > { %v2612_v40 = vmul.f32 %v2941_v36, %v2605_v37 }
0x1ff2   : > { %v2619_v41 = vadd.f32 %v2942_v38, %v2612_v40  ;;  %v2762_v40 = vld [vmem:[%s4411_s17] sm:$0x1] }
0x1ff4   : > { %v2625_v42 = vpack.c.bf16 %v2619_v41, %v2619_v41 }
0x1ff6   : > { %3312 = vmatmul.mubr.msk.bf16.vlgmr.msra.gmra.mxu1 %vm978_vm2, %v2625_v42  ;;  %v2763_v42 = vld [vmem:[%s4412_s18] sm:$0x1] }
0x1ff7   : > { %3339 = vmatprep.mubr.msk.bf16.mxu1 %vm3427_vm1, %v3426_v7  ;;  %3336 = vmatpush3.bf16.msra.mxu1 %v2786_v33 }
0x1ff8   : > { %3337 = vmatprep.subr.bf16.mxu1 %v3426_v7 }
0x20b6   : > { %v2673_v3 = vpop.f32.mrf.mxu1 }
0x20b7   : > { %v2674_v4 = vadd.f32 %v2948_v2, %v2673_v3 }
0x20b8   : > { %v3313_v5 = vpop.f32.mrf.mxu1 }
0x20b9   : > { %v2950_v6 = vmul.f32 -1.702, %v2674_v4 }
0x20ba   : > { %v2676_v9 = vpop.f32.mrf.mxu1 }
0x20bb   : > { %v2681_v10 = vmul.f32 1.442695, %v2950_v6 }
0x20bc   : > { %v3314_v11 = vpop.f32.mrf.mxu1 }
0x20bd   : > { %3412 = vpow2.f32 %v2681_v10 }
0x20ca   : > { %v3413_v45 = vpop.eup %3412 }
0x20cb   : > { %v2683_v13 = vadd.f32 1.0, %v3413_v45 }
0x20cd   : > { %3414 = vrcp.f32 %v2683_v13 }
0x20da   : > { %v3415_v14 = vpop.eup %3414 }
0x20db   : > { %v2686_v16 = vmul.f32 %v3415_v14, %v2674_v4 }
0x20dd   : > { %v2704_v25 = vpack.c.bf16 %v2686_v16, %v2686_v16 }
0x20df   : > { %3332 = vmatmul.mubr.bf16.vlgmr.msra.gmra.mxu0 %v2704_v25 }
0x219f   : > { %v2755_v18 = vpop.f32.mrf.mxu0 }
0x21a0   : > { %v2756_v20 = vadd.f32 %v2968_v17, %v2755_v18 }
0x21a1   : > { %v3333_v21 = vpop.f32.mrf.mxu0 }
0x21a2   : > { %v2761_v22 = vadd.f32 %v2756_v20, %v4276_v19  ;;  %v2780_v19 = vld [vmem:[%s4413_s19] sm:$0xff] }
0x21a3   : > { %v2758_v23 = vpop.f32.mrf.mxu0  ;;  %v2785_v15 = vpack.c.bf16 %v2781_v34, %v2780_v19 }
0x21a4   : > { %v2765_v24 = vsel %vm2764_vm9, %v2761_v22, 0.0 }
0x21a5   : > { %2766 = vadd.xlane.f32.xlu1 %v2765_v24  ;;  %v3334_v26 = vpop.f32.mrf.mxu0  ;;  %3338 = vmatpush3.bf16.msra.mxu1 %v2785_v15 }
0x222e   : > { %v2767_v12 = vpop.xlane.xlu1 %2766 }
0x222f   : > { %v2768_v43 = vmul.f32 0.03125, %v2767_v12 }
0x2231   : > { %v2769_v27 = vsub.f32 %v2761_v22, %v2768_v43 }
0x2233   : > { %v2770_v28 = vmul.f32 %v2769_v27, %v2769_v27 }
0x2235   : > { %v2771_v29 = vsel %vm2764_vm9, %v2770_v28, 0.0 }
0x2236   : > { %2772 = vadd.xlane.f32.xlu1 %v2771_v29 }
0x22bf   : > { %v2773_v35 = vpop.xlane.xlu1 %2772 }
0x22c0   : > { %v2774_v36 = vmul.f32 0.03125, %v2773_v35 }
0x22c2   : > { %v2775_v37 = vadd.f32 1e-05, %v2774_v36 }
0x22c4   : > { %3416 = vrsqrt.f32 %v2775_v37 }
0x22d1   : > { %v3417_v38 = vpop.eup %3416 }
0x22d2   : > { %v2777_v41 = vmul.f32 %v3417_v38, %v2769_v27 }
0x22d4   : > { %v2778_v44 = vmul.f32 %v2777_v41, %v2762_v40 }
0x22d6   : > { %v2779_v46 = vadd.f32 %v2778_v44, %v2763_v42 }
0x22d8   : > { %v2784_v47 = vpack.c.bf16 %v2779_v46, %v2779_v46 }
0x22da   : > { %3340 = vmatmul.mubr.msk.bf16.vlgmr.msra.gmra.mxu1 %vm978_vm2, %v2784_v47 }
0x239a   : > { %v2824_v7 = vpop.f32.mrf.mxu1 }
0x239b   : > { %2831 = vst.msk [vmem:[%s625_s26] sm:$0x1] %vm2830_vm10, %v2824_v7 }
0x239c   : > { %v3341_v61 = vpop.f32.mrf.mxu1 }
0x239e   : > { %v2827_v48 = vpop.f32.mrf.mxu1 }
0x23a0   : > { %v3342_v49 = vpop.f32.mrf.mxu1 }
0x23a1 PF: > { %s4441_s27 = sld [smem:[#allocation2_spill]] }
0x23a7   : > { %s30_s1 = sadd.s32 1, %s4441_s27  }
0x23a8   : > { %p27_p4 = scmp.ge.s32.totalorder %s30_s1, 4  }
0x23aa   :  { %29 = sbr.rel (!%p27_p4) target bundleno = 6 (0x6), region = 142 }

// kernel: clip_forward.4
= control target key start
LH: loop header
LB: loop body
LE: loop exit
PB: predicated region body
PF: predicated region fallthrough
CT: control target
= control target key end

     0   :  { %s3127_s24 = smov 0   ;;  %s3675_s0 = inlined_call_operand.vmem [shape: f32[2,8,32], index: 0, kind: input, shape index: {}]   ;;  %s3676_s1 = inlined_call_operand.vmem [shape: f32[2,8,1], index: 1, kind: input, shape index: {}]   ;;  %s3677_s2 = inlined_call_operand.vmem [shape: f32[2,1,32], index: 2, kind: input, shape index: {}]   ;;  %s3678_s3 = inlined_call_operand.vmem [shape: f32[2,1,32], index: 3, kind: input, shape index: {}]   ;;  %s3679_s4 = inlined_call_operand.vmem [shape: f32[2,32,96], index: 4, kind: input, shape index: {}]   ;;  %s3680_s5 = inlined_call_operand.vmem [shape: f32[2,1,96], index: 5, kind: input, shape index: {}]   ;;  %s3681_s6 = inlined_call_operand.vmem [shape: f32[2,32,32], index: 6, kind: input, shape index: {}]   ;;  %s3682_s7 = inlined_call_operand.vmem [shape: f32[2,1,32], index: 7, kind: input, shape index: {}]   ;;  %s3683_s8 = inlined_call_operand.vmem [shape: f32[2,1,32], index: 8, kind: input, shape index: {}]   ;;  %s3684_s9 = inlined_call_operand.vmem [shape: f32[2,1,32], index: 9, kind: input, shape index: {}]   ;;  %s3685_s10 = inlined_call_operand.vmem [shape: f32[2,32,128], index: 10, kind: input, shape index: {}]   ;;  %s3686_s11 = inlined_call_operand.vmem [shape: f32[2,1,128], index: 11, kind: input, shape index: {}]   ;;  %s3687_s12 = inlined_call_operand.vmem [shape: f32[2,128,32], index: 12, kind: input, shape index: {}]   ;;  %s3688_s13 = inlined_call_operand.vmem [shape: f32[2,1,32], index: 13, kind: input, shape index: {}]   ;;  %s3689_s14 = inlined_call_operand.vmem [shape: f32[1,32], index: 14, kind: input, shape index: {}]   ;;  %s3690_s15 = inlined_call_operand.vmem [shape: f32[1,32], index: 15, kind: input, shape index: {}]   ;;  %s3691_s16 = inlined_call_operand.vmem [shape: f32[32,16], index: 16, kind: input, shape index: {}]   ;;  %s3692_s17 = inlined_call_operand.vmem [shape: f32[2,1,16], index: 17, kind: output, shape index: {}]  }
   0x1   :  { %3700 = sst [smem:[#allocation2_spill]] %s3675_s0 }
   0x2   :  { %3701 = sst [smem:[#allocation3_spill]] %s3676_s1 }
   0x3 LB: > { %s2543_s25 = sadd.s32 4294967295, %s3021_s24   ;;  %p2547_p0 = scmp.ge.s32.totalorder %s3021_s24, 1  ;;  %s3021_s24 = sphi %s3127_s24, %s27_s24  }
   0x4   : > { %p495_p1 = scmp.lt.s32.totalorder %s3021_s24, 3 }
   0x6   : > { %p496_p2 = pnand %p2547_p0, %p495_p1 }
   0x7   : > { %p548_p3 = scmp.lt.s32.totalorder (!%p496_p2), %s2543_s25, 1  ;;  %s3702_s29 = sld [smem:[#allocation2_spill]] (!%p496_p2) }
   0x8   : > { %499 = sbr.rel (%p496_p2) target bundleno = 8070 (0x1f86), region = 88  ;;  %s3025_s19 = smov (!%p496_p2), 96  }
   0x9   : > { %s3026_s1 = smov (!%p496_p2), 120   ;;  %s3027_s20 = smov (!%p496_p2), 88  }
   0xa   : > { %s3028_s21 = smov (!%p496_p2), 56   ;;  %s3029_s22 = smov (!%p496_p2), 64  }
   0xb   : > { %s3698_s23 = smov (!%p496_p2), 80   ;;  %s3699_s27 = smov (!%p496_p2), 112  }
   0xc   : > { %s3697_s18 = smov (!%p496_p2), 48   ;;  %s3696_s28 = smov (!%p496_p2), 104  }
   0xd   : > { %s3712_s25 = smov (!%p548_p3, %s2543_s25), 1  ;;  %vm569_vm0 = vcmask 261120   ;;  %v600_v7 = vld [vmem:[%s3679_s4 + $0x10] sm:$0xff]  ;;  %v601_v8 = vld [vmem:[%s3679_s4 + $0x18] sm:$0xff]  ;;  %v598_v9 = vld [vmem:[%s3679_s4] sm:$0xff]  ;;  %v3023_v10 = vmov 0.0   ;;  %v561_v38 = vlaneseq }
   0xe   : > { %s3693_s26 = sshll.u32 %s3712_s25, 3  ;;  %2718 = vmatprep.subr.bf16.mxu1 %v3023_v10  ;;  %v604_v11 = vpack.c.bf16 %v601_v8, %v600_v7  ;;  %v599_v12 = vld [vmem:[%s3679_s4 + $0x8] sm:$0xff]  ;;  %vm3024_vm1 = vmmov 0   ;;  %2732 = vmatprep.subr.bf16.mxu0 %v3023_v10  ;;  %v2550_v18 = vld [vmem:[%s3677_s2] ss:$0 sm:$0xff]  ;;  %vm665_vm2 = vcmask 64512  }
   0xf   : > { %s551_s0 = scalar_lea.vmem %s3702_s29, %s3693_s26  ;;  %2722 = vmatprep.mubr.msk.bf16.mxu1 %vm3024_vm1, %v3023_v10  ;;  %2734 = vmatprep.mubr.msk.bf16.mxu0 %vm3024_vm1, %v3023_v10  ;;  %v603_v13 = vpack.c.bf16 %v599_v12, %v598_v9  ;;  %v2551_v20 = vld [vmem:[%s3678_s3] ss:$0 sm:$0xff]  ;;  %v562_v39 = vshrl.u32 %v561_v38, 7  ;;  %v564_v40 = vand.u32 127, %v561_v38  ;;  %vm729_vm4 = vcmask 1043456   ;;  %s3695_s29 = smov 72  }
  0x10   : > { %v3143_v0 = vld [vmem:[%s551_s0] sm:$0xff]  ;;  %2719 = vmatpush3.bf16.msra.mxu1 %v604_v11  ;;  %s3694_s0 = smov 40   ;;  %s3705_s30 = smov 48   ;;  %vm2482_vm5 = vcmask 122880  }
  0x11   : > { %v570_v1 = vsel %vm569_vm0, %v3143_v0, 0.0  ;;  %2720 = vmatprep.subr.bf16.mxu1 %v3023_v10  ;;  %v2552_v24 = vld [vmem:[%s3680_s5] ss:$0 sm:$0xff]  ;;  %vm565_vm3 = vcmp.gt.s32.totalorder %v564_v40, %v562_v39  ;;  %s558_s26 = scalar_lea.vmem %s3692_s17, %s3712_s25 }
  0x12   : > { %571 = vadd.xlane.f32.xlu0 %v570_v1  ;;  %v3203_v41 = vsel %vm565_vm3, -1e+09, %v3023_v10 }
  0x14   : > { %2721 = vmatpush3.bf16.msra.mxu1 %v603_v13 }
  0x15   : > { %2726 = vmatprep.subr.bf16.mxu1 %v3023_v10 }
  0x9b   : > { %v572_v2 = vpop.xlane.xlu0 %571 }
  0x9c   : > { %v574_v3 = vmul.f32 0.03125, %v572_v2 }
  0x9e   : > { %v575_v4 = vsub.f32 %v3143_v0, %v574_v3 }
  0xa0   : > { %v576_v5 = vmul.f32 %v575_v4, %v575_v4 }
  0xa2   : > { %v577_v6 = vsel %vm569_vm0, %v576_v5, 0.0 }
  0xa3   : > { %578 = vadd.xlane.f32.xlu0 %v577_v6 }
 0x12c   : > { %v579_v14 = vpop.xlane.xlu0 %578 }
 0x12d   : > { %v580_v15 = vmul.f32 0.03125, %v579_v14  ;;  %v655_v14 = vld [vmem:[%s3681_s6] sm:$0xff] }
 0x12f   : > { %v581_v16 = vadd.f32 1e-05, %v580_v15  ;;  %v774_v15 = vpack.c.bf16 %v655_v14, %v655_v14 }
 0x131   : > { %2965 = vrsqrt.f32 %v581_v16  ;;  %v938_v16 = vsel %vm729_vm4, %v774_v15, 0 }
 0x13e   : > { %v2966_v17 = vpop.eup %2965 }
 0x13f   : > { %v583_v19 = vmul.f32 %v2966_v17, %v575_v4  ;;  %v656_v17 = vld [vmem:[%s3681_s6 + $0x8] sm:$0xff] }
 0x141   : > { %v590_v21 = vmul.f32 %v2550_v18, %v583_v19  ;;  %v887_v18 = vpack.c.bf16 %v656_v17, %v656_v17 }
 0x143   : > { %v597_v22 = vadd.f32 %v2551_v20, %v590_v21  ;;  %v892_v19 = vsel %vm729_vm4, %v887_v18, 0 }
 0x145   : > { %v602_v23 = vpack.c.bf16 %v597_v22, %v597_v22 }
 0x147   : > { %2723 = vmatmul.mubr.msk.bf16.vlgmr.msra.gmra.mxu1 %vm569_vm0, %v602_v23 }
 0x148   : > { %2728 = vmatprep.mubr.msk.bf16.mxu1 %vm3024_vm1, %v3023_v10 }
 0x207   : > { %v649_v25 = vpop.f32.mrf.mxu1 }
 0x208   : > { %v650_v26 = vadd.f32 %v2552_v24, %v649_v25 }
 0x209   : > { %v2724_v27 = vpop.f32.mrf.mxu1 }
 0x20a   : > { %v659_v28 = vmul.f32 0.35355338, %v650_v26  ;;  %v3181_v29 = vpack.c.bf16 %v650_v26, %v650_v26 }
 0x20b   : > { %v652_v30 = vpop.f32.mrf.mxu1 }
 0x20c   : > { %v3183_v31 = vpack.c.bf16 %v659_v28, %v659_v28  ;;  %663 = vrot.lane.b32.xlu1 %v3181_v29, %s3025_s19 }
 0x20d   : > { %v2725_v32 = vpop.f32.mrf.mxu1 }
 0x20e   : > { %776 = vrot.lane.b32.xlu0 %v3183_v31, %s3026_s1 }
 0x210   : > { %778 = vrot.lane.b32.xlu1 %v3181_v29, %s3027_s20 }
 0x27e   : > { %v664_v33 = vpop.permute.xlu1 %663 }
 0x27f   : > { %v670_v34 = vsel %vm665_vm2, %v664_v33, 0 }
 0x280   : > { %2727 = vmatpush3.bf16.xpose.msra.mxu1 %v670_v34  ;;  %v777_v37 = vpop.permute.xlu0 %776 }
 0x281   : > { %2738 = vmatprep.subr.bf16.mxu1 %v3023_v10 }
 0x282   : > { %v779_v35 = vpop.permute.xlu1 %778 }
 0x283   : > { %v784_v36 = vsel %vm665_vm2, %v779_v35, 0 }
 0x287   : > { %2729 = vmatmul.mubr.msk.bf16.vlgmr.msra.gmra.mxu1 %vm665_vm2, %v3183_v31 }
 0x288   : > { %2739 = vmatpush3.bf16.xpose.msra.mxu1 %v784_v36  ;;  %2740 = vmatprep.mubr.msk.bf16.mxu1 %vm3024_vm1, %v3023_v10 }
 0x289   : > { %2750 = vmatprep.subr.bf16.mxu1 %v3023_v10 }
 0x28f   : > { %2741 = vmatmul.mubr.msk.bf16.vlgmr.msra.gmra.mxu1 %vm665_vm2, %v777_v37 }
 0x290   : > { %2752 = vmatprep.mubr.msk.bf16.mxu1 %vm3024_vm1, %v3023_v10  ;;  %2751 = vmatpush3.bf16.msra.mxu1 %v892_v19 }
 0x291   : > { %2762 = vmatprep.subr.bf16.mxu1 %v3023_v10 }
 0x347   : > { %v706_v42 = vpop.f32.mrf.mxu1 }
 0x348   : > { %v707_v43 = vadd.f32 %v706_v42, %v3203_v41 }
 0x349   : > { %v2730_v44 = vpop.f32.mrf.mxu1 }
 0x34a   : > { %v712_v45 = vsel %vm665_vm2, %v707_v43, -inf }
 0x34b   : > { %713 = vmax.xlane.f32.xlu1 %v712_v45  ;;  %v709_v46 = vpop.f32.mrf.mxu1 }
 0x34d   : > { %v2731_v47 = vpop.f32.mrf.mxu1 }
 0x34f   : > { %v820_v48 = vpop.f32.mrf.mxu1 }
 0x350   : > { %v821_v49 = vadd.f32 %v820_v48, %v3203_v41 }
 0x351   : > { %v2742_v50 = vpop.f32.mrf.mxu1 }
 0x352   : > { %v826_v51 = vsel %vm665_vm2, %v821_v49, -inf }
 0x353   : > { %827 = vmax.xlane.f32.xlu0 %v826_v51  ;;  %v823_v52 = vpop.f32.mrf.mxu1 }
 0x355   : > { %v2743_v53 = vpop.f32.mrf.mxu1 }
 0x369   : > { %838 = vrot.lane.b32.xlu0 %v3181_v29, %s3028_s21 }
 0x3d4   : > { %v714_v54 = vpop.xlane.xlu1 %713 }
 0x3d5   : > { %v715_v55 = vsub.f32 %v707_v43, %v714_v54 }
 0x3d7   : > { %v716_v56 = vmul.f32 1.442695, %v715_v55 }
 0x3d9   : > { %2967 = vpow2.f32 %v716_v56 }
 0x3dc   : > { %v828_v57 = vpop.xlane.xlu0 %827 }
 0x3dd   : > { %v829_v58 = vsub.f32 %v821_v49, %v828_v57 }
 0x3df   : > { %v830_v59 = vmul.f32 1.442695, %v829_v58 }
 0x3e0   : > { %v839_v7 = vpop.permute.xlu0 %838 }
 0x3e1   : > { %2969 = vpow2.f32 %v830_v59  ;;  %v844_v9 = vsel %vm729_vm4, %v839_v7, 0 }
 0x3e6   : > { %v2968_v60 = vpop.eup %2967 }
 0x3e7   : > { %v718_v61 = vsel %vm665_vm2, %v2968_v60, 0.0 }
 0x3e8   : > { %719 = vadd.xlane.f32.xlu1 %v718_v61 }
 0x3ee   : > { %v2970_v62 = vpop.eup %2969 }
 0x3ef   : > { %v832_v63 = vsel %vm665_vm2, %v2970_v62, 0.0 }
 0x3f0   : > { %833 = vadd.xlane.f32.xlu1 %v832_v63 }
 0x401   : > { %724 = vrot.lane.b32.xlu1 %v3181_v29, %s3029_s22 }
 0x405   : > { %982 = vrot.lane.b32.xlu1 %v3181_v29, %s3698_s23 }
 0x409   : > { %980 = vrot.lane.b32.xlu1 %v3183_v31, %s3699_s27  ;;  %s3708_s27 = smov 40  }
 0x471   : > { %v720_v1 = vpop.xlane.xlu1 %719 }
 0x472   : > { %2971 = vrcp.f32 %v720_v1  ;;  %v657_v1 = vld [vmem:[%s3681_s6 + $0x10] sm:$0xff] }
 0x479   : > { %v834_v2 = vpop.xlane.xlu1 %833 }
 0x47a   : > { %2973 = vrcp.f32 %v834_v2  ;;  %v1091_v2 = vpack.c.bf16 %v657_v1, %v657_v1  ;;  %v2567_v1 = vld [vmem:[%s3683_s8] ss:$0 sm:$0xff] }
 0x47d   : > { %v725_v3 = vpop.permute.xlu1 %724 }
 0x47e   : > { %v731_v4 = vsel %vm729_vm4, %v725_v3, 0  ;;  %v1096_v3 = vsel %vm729_vm4, %v1091_v2, 0 }
 0x47f   : > { %v2972_v5 = vpop.eup %2971  ;;  %2733 = vmatpush3.bf16.msra.mxu0 %v731_v4 }
 0x480   : > { %2744 = vmatprep.subr.bf16.mxu0 %v3023_v10  ;;  %v722_v6 = vmul.f32 %v2972_v5, %v2968_v60 }
 0x481   : > { %v983_v25 = vpop.permute.xlu1 %982 }
 0x482   : > { %v723_v8 = vpack.c.bf16 %v722_v6, %v722_v6  ;;  %v988_v30 = vsel %vm665_vm2, %v983_v25, 0 }
 0x484   : > { %2735 = vmatmul.mubr.msk.bf16.vlgmr.msra.gmra.mxu0 %vm665_vm2, %v723_v8 }
 0x485   : > { %2745 = vmatpush3.bf16.msra.mxu0 %v844_v9  ;;  %2746 = vmatprep.mubr.msk.bf16.mxu0 %vm3024_vm1, %v3023_v10  ;;  %v981_v34 = vpop.permute.xlu1 %980 }
 0x486   : > { %2756 = vmatprep.subr.bf16.mxu0 %v3023_v10 }
 0x487   : > { %v2974_v11 = vpop.eup %2973 }
 0x488   : > { %v836_v12 = vmul.f32 %v2974_v11, %v2970_v62 }
 0x48a   : > { %v837_v13 = vpack.c.bf16 %v836_v12, %v836_v12 }
 0x48c   : > { %2747 = vmatmul.mubr.msk.bf16.vlgmr.msra.gmra.mxu0 %vm665_vm2, %v837_v13 }
 0x48d   : > { %2758 = vmatprep.mubr.msk.bf16.mxu0 %vm3024_vm1, %v3023_v10  ;;  %2757 = vmatpush3.bf16.msra.mxu0 %v938_v16 }
 0x48e   : > { %2768 = vmatprep.subr.bf16.mxu0 %v3023_v10 }
 0x544   : > { %v767_v20 = vpop.f32.mrf.mxu0 }
 0x545   : > { %v773_v21 = vpack.c.bf16 %v767_v20, %v767_v20 }
 0x546   : > { %v2736_v22 = vpop.f32.mrf.mxu0 }
 0x547   : > { %2759 = vmatmul.mubr.msk.bf16.vlgmr.msra.gmra.mxu0 %vm665_vm2, %v773_v21 }
 0x548   : > { %v770_v23 = vpop.f32.mrf.mxu0  ;;  %2770 = vmatprep.mubr.msk.bf16.mxu0 %vm3024_vm1, %v3023_v10 }
 0x54a   : > { %v2737_v24 = vpop.f32.mrf.mxu0 }
 0x54b   : > { %v658_v24 = vld [vmem:[%s3681_s6 + $0x18] sm:$0xff] }
 0x54c   : > { %v880_v26 = vpop.f32.mrf.mxu0  ;;  %v1250_v25 = vpack.c.bf16 %v658_v24, %v658_v24  ;;  %v1406_v24 = vld [vmem:[%s3687_s12 + $0x28] sm:$0xff] }
 0x54d   : > { %v886_v27 = vpack.c.bf16 %v880_v26, %v880_v26 }
 0x54e   : > { %v2748_v28 = vpop.f32.mrf.mxu0 }
 0x54f   : > { %2753 = vmatmul.mubr.msk.bf16.vlgmr.msra.gmra.mxu1 %vm665_vm2, %v886_v27  ;;  %v1255_v27 = vsel %vm729_vm4, %v1250_v25, 0 }
 0x550   : > { %2763 = vmatpush3.bf16.xpose.msra.mxu1 %v988_v30  ;;  %v883_v32 = vpop.f32.mrf.mxu0  ;;  %2764 = vmatprep.mubr.msk.bf16.mxu1 %vm3024_vm1, %v3023_v10 }
 0x551   : > { %2774 = vmatprep.subr.bf16.mxu1 %v3023_v10 }
 0x552   : > { %v2749_v33 = vpop.f32.mrf.mxu0 }
 0x557   : > { %2765 = vmatmul.mubr.msk.bf16.vlgmr.msra.gmra.mxu1 %vm665_vm2, %v981_v34 }
 0x558   : > { %2776 = vmatprep.mubr.msk.bf16.mxu1 %vm3024_vm1, %v3023_v10  ;;  %2775 = vmatpush3.bf16.msra.mxu1 %v1096_v3  ;;  %v2568_v3 = vld [vmem:[%s3684_s9] ss:$0 sm:$0xff] }
 0x559   : > { %2786 = vmatprep.subr.bf16.mxu1 %v3023_v10 }
 0x607   : > { %v974_v35 = vpop.f32.mrf.mxu0 }
 0x609   : > { %v2760_v36 = vpop.f32.mrf.mxu0 }
 0x60b   : > { %v977_v37 = vpop.f32.mrf.mxu0 }
 0x60d   : > { %v2761_v38 = vpop.f32.mrf.mxu0 }
 0x60f   : > { %v928_v39 = vpop.f32.mrf.mxu1 }
 0x610   : > { %v3250_v40 = vadd.f32 %v974_v35, %v928_v39 }
 0x611   : > { %v2754_v42 = vpop.f32.mrf.mxu1 }
 0x613   : > { %v931_v43 = vpop.f32.mrf.mxu1 }
 0x615   : > { %v2755_v44 = vpop.f32.mrf.mxu1 }
 0x616   : > { %v2566_v44 = vld [vmem:[%s3682_s7] ss:$0 sm:$0xff] }
 0x617   : > { %v1024_v45 = vpop.f32.mrf.mxu1 }
 0x618   : > { %v1025_v46 = vadd.f32 %v1024_v45, %v3203_v41 }
 0x619   : > { %v2766_v47 = vpop.f32.mrf.mxu1 }
 0x61a   : > { %v1030_v48 = vsel %vm665_vm2, %v1025_v46, -inf }
 0x61b   : > { %1031 = vmax.xlane.f32.xlu1 %v1030_v48  ;;  %v1027_v49 = vpop.f32.mrf.mxu1 }
 0x61d   : > { %v2767_v50 = vpop.f32.mrf.mxu1 }
 0x62c   : > { %1042 = vrot.lane.b32.xlu1 %v3181_v29, %s3697_s18 }
 0x630   : > { %1139 = vrot.lane.b32.xlu1 %v3183_v31, %s3696_s28  ;;  %s3709_s28 = sshll.u32 %s3712_s25, 3 }
 0x6a4   : > { %v1032_v51 = vpop.xlane.xlu1 %1031 }
 0x6a5   : > { %v1033_v52 = vsub.f32 %v1025_v46, %v1032_v51 }
 0x6a7   : > { %v1034_v53 = vmul.f32 1.442695, %v1033_v52 }
 0x6a8   : > { %v1043_v54 = vpop.permute.xlu1 %1042 }
 0x6a9   : > { %2975 = vpow2.f32 %v1034_v53  ;;  %v1048_v55 = vsel %vm729_vm4, %v1043_v54, 0 }
 0x6aa   : > { %2769 = vmatpush3.bf16.msra.mxu0 %v1048_v55 }
 0x6ab   : > { %2780 = vmatprep.subr.bf16.mxu0 %v3023_v10 }
 0x6ac   : > { %v1140_v63 = vpop.permute.xlu1 %1139 }
 0x6b6   : > { %v2976_v56 = vpop.eup %2975 }
 0x6b7   : > { %v1036_v57 = vsel %vm665_vm2, %v2976_v56, 0.0 }
 0x6b8   : > { %1037 = vadd.xlane.f32.xlu0 %v1036_v57 }
 0x6ce   : > { %1141 = vrot.lane.b32.xlu0 %v3181_v29, %s3695_s29  ;;  %s3706_s29 = smov 104  }
 0x741   : > { %v1038_v58 = vpop.xlane.xlu0 %1037 }
 0x742   : > { %2977 = vrcp.f32 %v1038_v58  ;;  %v1336_v58 = vld [vmem:[%s3685_s10] sm:$0xff] }
 0x745   : > { %v1142_v60 = vpop.permute.xlu0 %1141 }
 0x746   : > { %v1147_v62 = vsel %vm665_vm2, %v1142_v60, 0 }
 0x74f   : > { %v2978_v31 = vpop.eup %2977 }
 0x750   : > { %v1040_v59 = vmul.f32 %v2978_v31, %v2976_v56  ;;  %v1339_v56 = vld [vmem:[%s3685_s10 + $0x18] sm:$0xff]  ;;  %v1337_v31 = vld [vmem:[%s3685_s10 + $0x8] sm:$0xff] }
 0x752   : > { %v1041_v61 = vpack.c.bf16 %v1040_v59, %v1040_v59  ;;  %v1341_v59 = vpack.c.bf16 %v1337_v31, %v1336_v58 }
 0x754   : > { %2771 = vmatmul.mubr.msk.bf16.vlgmr.msra.gmra.mxu0 %vm665_vm2, %v1041_v61 }
 0x755   : > { %2781 = vmatpush3.bf16.xpose.msra.mxu0 %v1147_v62  ;;  %2782 = vmatprep.mubr.msk.bf16.mxu0 %vm3024_vm1, %v3023_v10 }
 0x756   : > { %2792 = vmatprep.subr.bf16.mxu0 %v3023_v10 }
 0x75c   : > { %2783 = vmatmul.mubr.msk.bf16.vlgmr.msra.gmra.mxu0 %vm665_vm2, %v1140_v63 }
 0x75d   : > { %2794 = vmatprep.mubr.msk.bf16.mxu0 %vm3024_vm1, %v3023_v10  ;;  %2793 = vmatpush3.bf16.msra.mxu0 %v1255_v27  ;;  %v1404_v27 = vld [vmem:[%s3687_s12 + $0x18] sm:$0xff] }
 0x75e   : > { %2806 = vmatprep.subr.bf16.mxu0 %v3023_v10 }
 0x814   : > { %v1084_v4 = vpop.f32.mrf.mxu0 }
 0x815   : > { %v1090_v5 = vpack.c.bf16 %v1084_v4, %v1084_v4 }
 0x816   : > { %v2772_v6 = vpop.f32.mrf.mxu0 }
 0x817   : > { %2777 = vmatmul.mubr.msk.bf16.vlgmr.msra.gmra.mxu1 %vm665_vm2, %v1090_v5 }
 0x818   : > { %v1087_v7 = vpop.f32.mrf.mxu0  ;;  %2788 = vmatprep.mubr.msk.bf16.mxu1 %vm3024_vm1, %v3023_v10 }
 0x819   : > { %v1415_v7 = vld [vmem:[%s3687_s12 + $0x70] sm:$0xff] }
 0x81a   : > { %v2773_v8 = vpop.f32.mrf.mxu0 }
 0x81b   : > { %v1416_v8 = vld [vmem:[%s3687_s12 + $0x78] sm:$0xff] }
 0x81c   : > { %v1183_v9 = vpop.f32.mrf.mxu0 }
 0x81d   : > { %v1184_v11 = vadd.f32 %v1183_v9, %v3203_v41  ;;  %v1425_v9 = vpack.c.bf16 %v1416_v8, %v1415_v7  ;;  %v2576_v7 = vld [vmem:[%s3678_s3 + $0x1] ss:$0 sm:$0xff] }
 0x81e   : > { %v2784_v12 = vpop.f32.mrf.mxu0 }
 0x81f   : > { %v1189_v13 = vsel %vm665_vm2, %v1184_v11, -inf  ;;  %v1414_v12 = vld [vmem:[%s3687_s12 + $0x68] sm:$0xff] }
 0x820   : > { %1190 = vmax.xlane.f32.xlu1 %v1189_v13  ;;  %v1186_v14 = vpop.f32.mrf.mxu0 }
 0x821   : > { %v1411_v14 = vld [vmem:[%s3687_s12 + $0x50] sm:$0xff] }
 0x822   : > { %v2785_v15 = vpop.f32.mrf.mxu0 }
 0x823   : > { %v1412_v15 = vld [vmem:[%s3687_s12 + $0x58] sm:$0xff] }
 0x8a9   : > { %v1191_v16 = vpop.xlane.xlu1 %1190 }
 0x8aa   : > { %v1192_v17 = vsub.f32 %v1184_v11, %v1191_v16  ;;  %v1413_v11 = vld [vmem:[%s3687_s12 + $0x60] sm:$0xff]  ;;  %v1423_v16 = vpack.c.bf16 %v1412_v15, %v1411_v14 }
 0x8ab   : > { %v1424_v13 = vpack.c.bf16 %v1414_v12, %v1413_v11  ;;  %v2582_v12 = vld [vmem:[%s3680_s5 + $0x1] ss:$0 sm:$0xff] }
 0x8ac   : > { %v1193_v18 = vmul.f32 1.442695, %v1192_v17  ;;  %v1409_v17 = vld [vmem:[%s3687_s12 + $0x40] sm:$0xff] }
 0x8ae   : > { %2979 = vpow2.f32 %v1193_v18  ;;  %v1410_v18 = vld [vmem:[%s3687_s12 + $0x48] sm:$0xff] }
 0x8bb   : > { %v2980_v19 = vpop.eup %2979 }
 0x8bc   : > { %v1195_v20 = vsel %vm665_vm2, %v2980_v19, 0.0 }
 0x8bd   : > { %1196 = vadd.xlane.f32.xlu0 %v1195_v20  ;;  %v1407_v20 = vld [vmem:[%s3687_s12 + $0x30] sm:$0xff] }
 0x8d3   : > { %1201 = vrot.lane.b32.xlu0 %v3181_v29, %s3694_s0  ;;  %s3707_s0 = smov 72  }
 0x8d7   : > { %v1132_v21 = vpop.f32.mrf.mxu1 }
 0x8d8   : > { %v1138_v22 = vadd.f32 %v1132_v21, %v3250_v40  ;;  %v1408_v21 = vld [vmem:[%s3687_s12 + $0x38] sm:$0xff] }
 0x8d9   : > { %v2778_v23 = vpop.f32.mrf.mxu1 }
 0x8da   : > { %v1405_v23 = vld [vmem:[%s3687_s12 + $0x20] sm:$0xff] }
 0x8db   : > { %v1135_v26 = vpop.f32.mrf.mxu1  ;;  %v1420_v25 = vpack.c.bf16 %v1406_v24, %v1405_v23 }
 0x8dc   : > { %v1403_v26 = vld [vmem:[%s3687_s12 + $0x10] sm:$0xff] }
 0x8dd   : > { %v2779_v28 = vpop.f32.mrf.mxu1 }
 0x8de   : > { %v1419_v28 = vpack.c.bf16 %v1404_v27, %v1403_v26 }
 0x946   : > { %v1197_v30 = vpop.xlane.xlu0 %1196 }
 0x947   : > { %2981 = vrcp.f32 %v1197_v30  ;;  %v1401_v30 = vld [vmem:[%s3687_s12] sm:$0xff] }
 0x94a   : > { %v1202_v32 = vpop.permute.xlu0 %1201 }
 0x94b   : > { %v1207_v29 = vsel %vm729_vm4, %v1202_v32, 0  ;;  %v1402_v32 = vld [vmem:[%s3687_s12 + $0x8] sm:$0xff] }
 0x94c   : > { %2787 = vmatpush3.bf16.msra.mxu1 %v1207_v29  ;;  %v1418_v29 = vpack.c.bf16 %v1402_v32, %v1401_v30 }
 0x94d   : > { %2798 = vmatprep.subr.bf16.mxu1 %v3023_v10 }
 0x954   : > { %v2982_v33 = vpop.eup %2981 }
 0x955   : > { %v1199_v34 = vmul.f32 %v2982_v33, %v2980_v19  ;;  %v1422_v19 = vpack.c.bf16 %v1410_v18, %v1409_v17  ;;  %v2569_v33 = vld [vmem:[%s3686_s11] ss:$0 sm:$0xff] }
 0x957   : > { %v1200_v35 = vpack.c.bf16 %v1199_v34, %v1199_v34 }
 0x959   : > { %2789 = vmatmul.mubr.msk.bf16.vlgmr.msra.gmra.mxu1 %vm665_vm2, %v1200_v35 }
 0x95a   : > { %2802 = vmatprep.mubr.msk.bf16.mxu1 %vm3024_vm1, %v3023_v10 }
 0xa19   : > { %v1243_v36 = vpop.f32.mrf.mxu1 }
 0xa1a   : > { %v1249_v37 = vpack.c.bf16 %v1243_v36, %v1243_v36 }
 0xa1b   : > { %v2790_v38 = vpop.f32.mrf.mxu1 }
 0xa1c   : > { %2795 = vmatmul.mubr.msk.bf16.vlgmr.msra.gmra.mxu0 %vm665_vm2, %v1249_v37 }
 0xa1d   : > { %v1246_v39 = vpop.f32.mrf.mxu1  ;;  %2822 = vmatprep.mubr.msk.bf16.mxu0 %vm3024_vm1, %v3023_v10  ;;  %2807 = vmatpush3.bf16.msra.mxu0 %v1425_v9 }
 0xa1e   : > { %2808 = vmatprep.subr.bf16.mxu0 %v3023_v10 }
 0xa1f   : > { %v2791_v40 = vpop.f32.mrf.mxu1 }
 0xa21   : > { %2809 = vmatpush3.bf16.msra.mxu0 %v1424_v13 }
 0xa22   : > { %2810 = vmatprep.subr.bf16.mxu0 %v3023_v10 }
 0xa25   : > { %2811 = vmatpush3.bf16.msra.mxu0 %v1423_v16 }
 0xa26   : > { %2812 = vmatprep.subr.bf16.mxu0 %v3023_v10 }
 0xa29   : > { %2813 = vmatpush3.bf16.msra.mxu0 %v1422_v19 }
 0xa2a   : > { %2814 = vmatprep.subr.bf16.mxu0 %v3023_v10 }
 0xadc   : > { %v1291_v42 = vpop.f32.mrf.mxu0 }
 0xadd   : > { %v1297_v43 = vadd.f32 %v1291_v42, %v1138_v22  ;;  %v1421_v22 = vpack.c.bf16 %v1408_v21, %v1407_v20 }
 0xade   : > { %v2796_v45 = vpop.f32.mrf.mxu0 }
 0xadf   : > { %v1298_v46 = vadd.f32 %v1297_v43, %v3143_v0  ;;  %v1338_v0 = vld [vmem:[%s3685_s10 + $0x10] sm:$0xff]  ;;  %2815 = vmatpush3.bf16.msra.mxu0 %v1421_v22 }
 0xae0   : > { %v1294_v47 = vpop.f32.mrf.mxu0  ;;  %v1342_v57 = vpack.c.bf16 %v1339_v56, %v1338_v0  ;;  %2816 = vmatprep.subr.bf16.mxu0 %v3023_v10 }
 0xae1   : > { %v3302_v48 = vadd.f32 %v2566_v44, %v1298_v46  ;;  %v2572_v47 = vld [vmem:[%s3688_s13] ss:$0 sm:$0xff] }
 0xae2   : > { %v2797_v49 = vpop.f32.mrf.mxu0  ;;  %2799 = vmatpush3.bf16.msra.mxu1 %v1342_v57 }
 0xae3   : > { %v1309_v50 = vsel %vm569_vm0, %v3302_v48, 0.0  ;;  %2800 = vmatprep.subr.bf16.mxu1 %v3023_v10  ;;  %2817 = vmatpush3.bf16.msra.mxu0 %v1420_v25 }
 0xae4   : > { %1310 = vadd.xlane.f32.xlu1 %v1309_v50  ;;  %2818 = vmatprep.subr.bf16.mxu0 %v3023_v10 }
 0xae6   : > { %2801 = vmatpush3.bf16.msra.mxu1 %v1341_v59  ;;  %v2579_v59 = vld [vmem:[%s3679_s4 + $0x30] sm:$0xff] }
 0xae7   : > { %2826 = vmatprep.subr.bf16.mxu1 %v3023_v10  ;;  %2819 = vmatpush3.bf16.msra.mxu0 %v1419_v28 }
 0xae8   : > { %2820 = vmatprep.subr.bf16.mxu0 %v3023_v10 }
 0xaeb   : > { %2821 = vmatpush3.bf16.msra.mxu0 %v1418_v29 }
 0xaec   : > { %2852 = vmatprep.subr.bf16.mxu0 %v3023_v10 }
 0xb6d   : > { %v1311_v51 = vpop.xlane.xlu1 %1310 }
 0xb6e   : > { %v1312_v52 = vmul.f32 0.03125, %v1311_v51 }
 0xb70   : > { %v1313_v53 = vsub.f32 %v3302_v48, %v1312_v52 }
 0xb72   : > { %v1314_v54 = vmul.f32 %v1313_v53, %v1313_v53 }
 0xb74   : > { %v1315_v55 = vsel %vm569_vm0, %v1314_v54, 0.0 }
 0xb75   : > { %1316 = vadd.xlane.f32.xlu1 %v1315_v55 }
 0xbfe   : > { %v1317_v60 = vpop.xlane.xlu1 %1316 }
 0xbff   : > { %v1318_v61 = vmul.f32 0.03125, %v1317_v60 }
 0xc01   : > { %v1319_v62 = vadd.f32 1e-05, %v1318_v61  ;;  %v2577_v61 = vld [vmem:[%s3679_s4 + $0x20] sm:$0xff] }
 0xc03   : > { %2983 = vrsqrt.f32 %v1319_v62  ;;  %v2578_v62 = vld [vmem:[%s3679_s4 + $0x28] sm:$0xff] }
 0xc10   : > { %v2984_v63 = vpop.eup %2983 }
 0xc11   : > { %v1321_v2 = vmul.f32 %v2984_v63, %v1313_v53  ;;  %v1511_v63 = vpack.c.bf16 %v2578_v62, %v2577_v61  ;;  %v2585_v61 = vld [vmem:[%s3681_s6 + $0x28] sm:$0xff] }
 0xc12   : > { %v1795_v62 = vpack.c.bf16 %v2585_v61, %v2585_v61 }
 0xc13   : > { %v1328_v4 = vmul.f32 %v2567_v1, %v1321_v2 }
 0xc15   : > { %v1335_v5 = vadd.f32 %v2568_v3, %v1328_v4 }
 0xc17   : > { %v1340_v6 = vpack.c.bf16 %v1335_v5, %v1335_v5  ;;  %v2575_v5 = vld [vmem:[%s3677_s2 + $0x1] ss:$0 sm:$0xff] }
 0xc19   : > { %2803 = vmatmul.mubr.msk.bf16.vlgmr.msra.gmra.mxu1 %vm569_vm0, %v1340_v6 }
 0xc1a   : > { %2830 = vmatprep.mubr.msk.bf16.mxu1 %vm3024_vm1, %v3023_v10 }
 0xcd9   : > { %v1387_v34 = vpop.f32.mrf.mxu1 }
 0xcda   : > { %v1388_v35 = vadd.f32 %v2569_v33, %v1387_v34 }
 0xcdb   : > { %v2804_v36 = vpop.f32.mrf.mxu1 }
 0xcdc   : > { %v2571_v37 = vmul.f32 -1.702, %v1388_v35 }
 0xcdd   : > { %v1390_v38 = vpop.f32.mrf.mxu1 }
 0xcde   : > { %v1395_v39 = vmul.f32 1.442695, %v2571_v37 }
 0xcdf   : > { %v2805_v40 = vpop.f32.mrf.mxu1 }
 0xce0   : > { %2985 = vpow2.f32 %v1395_v39 }
 0xced   : > { %v2986_v42 = vpop.eup %2985 }
 0xcee   : > { %v1397_v43 = vadd.f32 1.0, %v2986_v42 }
 0xcf0   : > { %2987 = vrcp.f32 %v1397_v43 }
 0xcfd   : > { %v2988_v44 = vpop.eup %2987 }
 0xcfe   : > { %v1400_v45 = vmul.f32 %v2988_v44, %v1388_v35 }
 0xd00   : > { %v1417_v46 = vpack.c.bf16 %v1400_v45, %v1400_v45 }
 0xd02   : > { %2823 = vmatmul.mubr.bf16.vlgmr.msra.gmra.mxu0 %v1417_v46 }
 0xd03   : > { %2854 = vmatprep.mubr.msk.bf16.mxu0 %vm3024_vm1, %v3023_v10 }
 0xdc2   : > { %v1467_v49 = vpop.f32.mrf.mxu0 }
 0xdc3   : > { %v1468_v50 = vadd.f32 %v2572_v47, %v1467_v49 }
 0xdc4   : > { %v2824_v51 = vpop.f32.mrf.mxu0 }
 0xdc5   : > { %v3396_v52 = vadd.f32 %v1468_v50, %v3302_v48  ;;  %v2580_v48 = vld [vmem:[%s3679_s4 + $0x38] sm:$0xff] }
 0xdc6   : > { %v1470_v53 = vpop.f32.mrf.mxu0  ;;  %v1512_v60 = vpack.c.bf16 %v2580_v48, %v2579_v59 }
 0xdc7   : > { %v1478_v54 = vsel %vm569_vm0, %v3396_v52, 0.0 }
 0xdc8   : > { %1479 = vadd.xlane.f32.xlu1 %v1478_v54  ;;  %v2825_v55 = vpop.f32.mrf.mxu0  ;;  %2827 = vmatpush3.bf16.msra.mxu1 %v1512_v60 }
 0xdc9   : > { %2828 = vmatprep.subr.bf16.mxu1 %v3023_v10 }
 0xdcc   : > { %2829 = vmatpush3.bf16.msra.mxu1 %v1511_v63  ;;  %v1800_v63 = vsel %vm729_vm4, %v1795_v62, 0 }
 0xdcd   : > { %2834 = vmatprep.subr.bf16.mxu1 %v3023_v10 }
 0xe51   : > { %v1480_v0 = vpop.xlane.xlu1 %1479 }
 0xe52   : > { %v1481_v56 = vmul.f32 0.03125, %v1480_v0 }
 0xe54   : > { %v1482_v57 = vsub.f32 %v3396_v52, %v1481_v56 }
 0xe56   : > { %v1483_v58 = vmul.f32 %v1482_v57, %v1482_v57 }
 0xe58   : > { %v1484_v31 = vsel %vm569_vm0, %v1483_v58, 0.0 }
 0xe59   : > { %1485 = vadd.xlane.f32.xlu1 %v1484_v31 }
 0xee2   : > { %v1486_v1 = vpop.xlane.xlu1 %1485 }
 0xee3   : > { %v1487_v2 = vmul.f32 0.03125, %v1486_v1 }
 0xee5   : > { %v1488_v3 = vadd.f32 1e-05, %v1487_v2  ;;  %v2584_v2 = vld [vmem:[%s3681_s6 + $0x20] sm:$0xff] }
 0xee7   : > { %2989 = vrsqrt.f32 %v1488_v3  ;;  %v1682_v3 = vpack.c.bf16 %v2584_v2, %v2584_v2 }
 0xef4   : > { %v2990_v4 = vpop.eup %2989 }
 0xef5   : > { %v1490_v6 = vmul.f32 %v2990_v4, %v1482_v57 }
 0xef7   : > { %v1497_v8 = vmul.f32 %v2575_v5, %v1490_v6 }
 0xef9   : > { %v1504_v9 = vadd.f32 %v2576_v7, %v1497_v8  ;;  %v1846_v7 = vsel %vm729_vm4, %v1682_v3, 0 }
 0xefb   : > { %v1510_v11 = vpack.c.bf16 %v1504_v9, %v1504_v9 }
 0xefd   : > { %2831 = vmatmul.mubr.msk.bf16.vlgmr.msra.gmra.mxu1 %vm569_vm0, %v1510_v11 }
 0xefe   : > { %2836 = vmatprep.mubr.msk.bf16.mxu1 %vm3024_vm1, %v3023_v10 }
 0xfbd   : > { %v1558_v13 = vpop.f32.mrf.mxu1 }
 0xfbe   : > { %v1559_v14 = vadd.f32 %v2582_v12, %v1558_v13 }
 0xfbf   : > { %v2832_v15 = vpop.f32.mrf.mxu1 }
 0xfc0   : > { %v3428_v16 = vpack.c.bf16 %v1559_v14, %v1559_v14  ;;  %v1569_v21 = vmul.f32 0.35355338, %v1559_v14 }
 0xfc1   : > { %v1561_v17 = vpop.f32.mrf.mxu1 }
 0xfc2   : > { %1573 = vrot.lane.b32.xlu1 %v3428_v16, %s3025_s19  ;;  %v3434_v22 = vpack.c.bf16 %v1569_v21, %v1569_v21  ;;  %s3703_s19 = smov 112  }
 0xfc3   : > { %v2833_v18 = vpop.f32.mrf.mxu1 }
0x1034   : > { %v1574_v19 = vpop.permute.xlu1 %1573 }
0x1035   : > { %v1579_v20 = vsel %vm665_vm2, %v1574_v19, 0 }
0x1036   : > { %2835 = vmatpush3.bf16.xpose.msra.mxu1 %v1579_v20 }
0x1037   : > { %2840 = vmatprep.subr.bf16.mxu1 %v3023_v10 }
0x103d   : > { %2837 = vmatmul.mubr.msk.bf16.vlgmr.msra.gmra.mxu1 %vm665_vm2, %v3434_v22 }
0x103e   : > { %2842 = vmatprep.mubr.msk.bf16.mxu1 %vm3024_vm1, %v3023_v10 }
0x10fd   : > { %v1615_v23 = vpop.f32.mrf.mxu1 }
0x10fe   : > { %v1616_v24 = vadd.f32 %v1615_v23, %v3203_v41 }
0x10ff   : > { %v2838_v25 = vpop.f32.mrf.mxu1 }
0x1100   : > { %v1621_v26 = vsel %vm665_vm2, %v1616_v24, -inf }
0x1101   : > { %1622 = vmax.xlane.f32.xlu0 %v1621_v26  ;;  %v1618_v27 = vpop.f32.mrf.mxu1 }
0x1103   : > { %v2839_v28 = vpop.f32.mrf.mxu1 }
0x1117   : > { %1633 = vrot.lane.b32.xlu0 %v3428_v16, %s3029_s22 }
0x111b   : > { %1684 = vrot.lane.b32.xlu0 %v3434_v22, %s3026_s1  ;;  %s3704_s1 = smov 80  }
0x118a   : > { %v1623_v30 = vpop.xlane.xlu0 %1622 }
0x118b   : > { %v1624_v32 = vsub.f32 %v1616_v24, %v1623_v30 }
0x118d   : > { %v1625_v29 = vmul.f32 1.442695, %v1624_v32 }
0x118e   : > { %v1634_v33 = vpop.permute.xlu0 %1633 }
0x118f   : > { %2991 = vpow2.f32 %v1625_v29  ;;  %v1639_v34 = vsel %vm729_vm4, %v1634_v33, 0 }
0x1190   : > { %2841 = vmatpush3.bf16.msra.mxu1 %v1639_v34 }
0x1191   : > { %2846 = vmatprep.subr.bf16.mxu1 %v3023_v10 }
0x1192   : > { %v1685_v44 = vpop.permute.xlu0 %1684 }
0x119c   : > { %v2992_v35 = vpop.eup %2991 }
0x119d   : > { %v1627_v36 = vsel %vm665_vm2, %v2992_v35, 0.0 }
0x119e   : > { %1628 = vadd.xlane.f32.xlu1 %v1627_v36 }
0x11af   : > { %1686 = vrot.lane.b32.xlu1 %v3428_v16, %s3027_s20  ;;  %s3710_s20 = sld [smem:[#allocation3_spill]] }
0x1227   : > { %v1629_v37 = vpop.xlane.xlu1 %1628 }
0x1228   : > { %2993 = vrcp.f32 %v1629_v37 }
0x122b   : > { %v1687_v40 = vpop.permute.xlu1 %1686 }
0x122c   : > { %v1692_v43 = vsel %vm665_vm2, %v1687_v40, 0 }
0x1235   : > { %v2994_v38 = vpop.eup %2993 }
0x1236   : > { %v1631_v39 = vmul.f32 %v2994_v38, %v2992_v35 }
0x1238   : > { %v1632_v42 = vpack.c.bf16 %v1631_v39, %v1631_v39 }
0x123a   : > { %2843 = vmatmul.mubr.msk.bf16.vlgmr.msra.gmra.mxu1 %vm665_vm2, %v1632_v42 }
0x123b   : > { %2847 = vmatpush3.bf16.xpose.msra.mxu1 %v1692_v43  ;;  %2848 = vmatprep.mubr.msk.bf16.mxu1 %vm3024_vm1, %v3023_v10 }
0x123c   : > { %2858 = vmatprep.subr.bf16.mxu1 %v3023_v10 }
0x1242   : > { %2849 = vmatmul.mubr.msk.bf16.vlgmr.msra.gmra.mxu1 %vm665_vm2, %v1685_v44 }
0x1243   : > { %2860 = vmatprep.mubr.msk.bf16.mxu1 %vm3024_vm1, %v3023_v10  ;;  %2859 = vmatpush3.bf16.msra.mxu1 %v1800_v63 }
0x1244   : > { %2870 = vmatprep.subr.bf16.mxu1 %v3023_v10 }
0x12fa   : > { %v1675_v45 = vpop.f32.mrf.mxu1 }
0x12fb   : > { %v1681_v8 = vpack.c.bf16 %v1675_v45, %v1675_v45 }
0x12fc   : > { %v2844_v46 = vpop.f32.mrf.mxu1 }
0x12fe   : > { %v1678_v47 = vpop.f32.mrf.mxu1 }
0x1300   : > { %v2845_v49 = vpop.f32.mrf.mxu1 }
0x1302   : > { %v1728_v50 = vpop.f32.mrf.mxu1 }
0x1303   : > { %v1729_v51 = vadd.f32 %v1728_v50, %v3203_v41  ;;  %v2586_v50 = vld [vmem:[%s3681_s6 + $0x30] sm:$0xff] }
0x1304   : > { %v2850_v53 = vpop.f32.mrf.mxu1 }
0x1305   : > { %v1734_v54 = vsel %vm665_vm2, %v1729_v51, -inf }
0x1306   : > { %1735 = vmax.xlane.f32.xlu0 %v1734_v54  ;;  %v1731_v55 = vpop.f32.mrf.mxu1 }
0x1308   : > { %v2851_v0 = vpop.f32.mrf.mxu1 }
0x131c   : > { %1746 = vrot.lane.b32.xlu0 %v3428_v16, %s3028_s21  ;;  %s555_s21 = scalar_lea.vmem %s3710_s20, %s3709_s28 }
0x1320   : > { %1888 = vrot.lane.b32.xlu0 %v3434_v22, %s3703_s19 }
0x138f   : > { %v1736_v56 = vpop.xlane.xlu0 %1735 }
0x1390   : > { %v1737_v57 = vsub.f32 %v1729_v51, %v1736_v56  ;;  %v1999_v51 = vpack.c.bf16 %v2586_v50, %v2586_v50  ;;  %v2604_v50 = vld [vmem:[%s3683_s8 + $0x1] ss:$0 sm:$0xff] }
0x1392   : > { %v1738_v58 = vmul.f32 1.442695, %v1737_v57  ;;  %v2004_v53 = vsel %vm729_vm4, %v1999_v51, 0 }
0x1393   : > { %v1747_v31 = vpop.permute.xlu0 %1746 }
0x1394   : > { %2995 = vpow2.f32 %v1738_v58  ;;  %v1752_v59 = vsel %vm729_vm4, %v1747_v31, 0 }
0x1395   : > { %2853 = vmatpush3.bf16.msra.mxu0 %v1752_v59 }
0x1396   : > { %2864 = vmatprep.subr.bf16.mxu0 %v3023_v10 }
0x1397   : > { %v1889_v19 = vpop.permute.xlu0 %1888 }
0x13a1   : > { %v2996_v48 = vpop.eup %2995 }
0x13a2   : > { %v1740_v60 = vsel %vm665_vm2, %v2996_v48, 0.0 }
0x13a3   : > { %1741 = vadd.xlane.f32.xlu1 %v1740_v60 }
0x13b4   : > { %1890 = vrot.lane.b32.xlu1 %v3428_v16, %s3704_s1 }
0x142c   : > { %v1742_v1 = vpop.xlane.xlu1 %1741 }
0x142d   : > { %2997 = vrcp.f32 %v1742_v1 }
0x1430   : > { %v1891_v9 = vpop.permute.xlu1 %1890 }
0x1431   : > { %v1896_v14 = vsel %vm665_vm2, %v1891_v9, 0 }
0x143a   : > { %v2998_v4 = vpop.eup %2997 }
0x143b   : > { %v1744_v5 = vmul.f32 %v2998_v4, %v2996_v48 }
0x143d   : > { %v1745_v6 = vpack.c.bf16 %v1744_v5, %v1744_v5 }
0x143f   : > { %2855 = vmatmul.mubr.msk.bf16.vlgmr.msra.gmra.mxu0 %vm665_vm2, %v1745_v6 }
0x1440   : > { %2865 = vmatpush3.bf16.msra.mxu0 %v1846_v7  ;;  %2866 = vmatprep.mubr.msk.bf16.mxu0 %vm3024_vm1, %v3023_v10 }
0x1441   : > { %2876 = vmatprep.subr.bf16.mxu0 %v3023_v10 }
0x1447   : > { %2867 = vmatmul.mubr.msk.bf16.vlgmr.msra.gmra.mxu0 %vm665_vm2, %v1681_v8  ;;  %v2587_v8 = vld [vmem:[%s3681_s6 + $0x38] sm:$0xff] }
0x1448   : > { %2878 = vmatprep.mubr.msk.bf16.mxu0 %vm3024_vm1, %v3023_v10  ;;  %v2158_v9 = vpack.c.bf16 %v2587_v8, %v2587_v8  ;;  %v2617_v8 = vld [vmem:[%s3687_s12 + $0x98] sm:$0xff] }
0x14ff   : > { %v1788_v11 = vpop.f32.mrf.mxu0 }
0x1500   : > { %v1794_v12 = vpack.c.bf16 %v1788_v11, %v1788_v11 }
0x1501   : > { %v2856_v13 = vpop.f32.mrf.mxu0 }
0x1502   : > { %2861 = vmatmul.mubr.msk.bf16.vlgmr.msra.gmra.mxu1 %vm665_vm2, %v1794_v12  ;;  %v2163_v12 = vsel %vm729_vm4, %v2158_v9, 0 }
0x1503   : > { %2871 = vmatpush3.bf16.xpose.msra.mxu1 %v1896_v14  ;;  %v1791_v15 = vpop.f32.mrf.mxu0  ;;  %2872 = vmatprep.mubr.msk.bf16.mxu1 %vm3024_vm1, %v3023_v10 }
0x1504   : > { %2882 = vmatprep.subr.bf16.mxu1 %v3023_v10 }
0x1505   : > { %v2857_v17 = vpop.f32.mrf.mxu0 }
0x1507   : > { %v3491_v18 = vpop.f32.mrf.mxu0 }
0x1509   : > { %v2868_v20 = vpop.f32.mrf.mxu0 }
0x150a   : > { %2873 = vmatmul.mubr.msk.bf16.vlgmr.msra.gmra.mxu1 %vm665_vm2, %v1889_v19 }
0x150b   : > { %v1885_v21 = vpop.f32.mrf.mxu0  ;;  %2884 = vmatprep.mubr.msk.bf16.mxu1 %vm3024_vm1, %v3023_v10  ;;  %2883 = vmatpush3.bf16.msra.mxu1 %v2004_v53  ;;  %v2605_v53 = vld [vmem:[%s3684_s9 + $0x1] ss:$0 sm:$0xff] }
0x150c   : > { %2894 = vmatprep.subr.bf16.mxu1 %v3023_v10 }
0x150d   : > { %v2869_v23 = vpop.f32.mrf.mxu0 }
0x15c2   : > { %v3496_v24 = vpop.f32.mrf.mxu1 }
0x15c3   : > { %v1883_v5 = vadd.f32 %v3491_v18, %v3496_v24 }
0x15c4   : > { %v2862_v25 = vpop.f32.mrf.mxu1 }
0x15c6   : > { %v1839_v26 = vpop.f32.mrf.mxu1 }
0x15c8   : > { %v2863_v27 = vpop.f32.mrf.mxu1 }
0x15c9   : > { %v2601_v27 = vld [vmem:[%s3682_s7 + $0x1] ss:$0 sm:$0xff] }
0x15ca   : > { %v1932_v28 = vpop.f32.mrf.mxu1 }
0x15cb   : > { %v1933_v30 = vadd.f32 %v1932_v28, %v3203_v41 }
0x15cc   : > { %v2874_v32 = vpop.f32.mrf.mxu1 }
0x15cd   : > { %v1938_v29 = vsel %vm665_vm2, %v1933_v30, -inf }
0x15ce   : > { %1939 = vmax.xlane.f32.xlu0 %v1938_v29  ;;  %v1935_v33 = vpop.f32.mrf.mxu1 }
0x15d0   : > { %v2875_v34 = vpop.f32.mrf.mxu1 }
0x15e4   : > { %1950 = vrot.lane.b32.xlu0 %v3428_v16, %s3705_s30 }
0x15e8   : > { %2047 = vrot.lane.b32.xlu0 %v3434_v22, %s3706_s29 }
0x1657   : > { %v1940_v35 = vpop.xlane.xlu0 %1939 }
0x1658   : > { %v1941_v36 = vsub.f32 %v1933_v30, %v1940_v35 }
0x165a   : > { %v1942_v37 = vmul.f32 1.442695, %v1941_v36 }
0x165b   : > { %v1951_v38 = vpop.permute.xlu0 %1950 }
0x165c   : > { %2999 = vpow2.f32 %v1942_v37  ;;  %v1956_v39 = vsel %vm729_vm4, %v1951_v38, 0 }
0x165d   : > { %2877 = vmatpush3.bf16.msra.mxu0 %v1956_v39 }
0x165e   : > { %2888 = vmatprep.subr.bf16.mxu0 %v3023_v10 }
0x165f   : > { %v2048_v49 = vpop.permute.xlu0 %2047 }
0x1669   : > { %v3000_v40 = vpop.eup %2999 }
0x166a   : > { %v1944_v42 = vsel %vm665_vm2, %v3000_v40, 0.0 }
0x166b   : > { %1945 = vadd.xlane.f32.xlu1 %v1944_v42 }
0x167c   : > { %2049 = vrot.lane.b32.xlu1 %v3428_v16, %s3707_s0 }
0x16f4   : > { %v1946_v43 = vpop.xlane.xlu1 %1945 }
0x16f5   : > { %3001 = vrcp.f32 %v1946_v43  ;;  %v2606_v43 = vld [vmem:[%s3685_s10 + $0x20] sm:$0xff] }
0x16f8   : > { %v2050_v45 = vpop.permute.xlu1 %2049 }
0x16f9   : > { %v2055_v47 = vsel %vm665_vm2, %v2050_v45, 0 }
0x1702   : > { %v3002_v22 = vpop.eup %3001 }
0x1703   : > { %v1948_v44 = vmul.f32 %v3002_v22, %v3000_v40  ;;  %v2609_v40 = vld [vmem:[%s3685_s10 + $0x38] sm:$0xff]  ;;  %v2607_v22 = vld [vmem:[%s3685_s10 + $0x28] sm:$0xff] }
0x1705   : > { %v1949_v46 = vpack.c.bf16 %v1948_v44, %v1948_v44  ;;  %v2253_v44 = vpack.c.bf16 %v2607_v22, %v2606_v43 }
0x1707   : > { %2879 = vmatmul.mubr.msk.bf16.vlgmr.msra.gmra.mxu0 %vm665_vm2, %v1949_v46 }
0x1708   : > { %2889 = vmatpush3.bf16.xpose.msra.mxu0 %v2055_v47  ;;  %2890 = vmatprep.mubr.msk.bf16.mxu0 %vm3024_vm1, %v3023_v10 }
0x1709   : > { %2900 = vmatprep.subr.bf16.mxu0 %v3023_v10 }
0x170f   : > { %2891 = vmatmul.mubr.msk.bf16.vlgmr.msra.gmra.mxu0 %vm665_vm2, %v2048_v49 }
0x1710   : > { %2902 = vmatprep.mubr.msk.bf16.mxu0 %vm3024_vm1, %v3023_v10  ;;  %2901 = vmatpush3.bf16.msra.mxu0 %v2163_v12  ;;  %v2615_v12 = vld [vmem:[%s3687_s12 + $0x88] sm:$0xff] }
0x1711   : > { %2914 = vmatprep.subr.bf16.mxu0 %v3023_v10 }
0x17c7   : > { %v1992_v54 = vpop.f32.mrf.mxu0 }
0x17c8   : > { %v1998_v55 = vpack.c.bf16 %v1992_v54, %v1992_v54 }
0x17c9   : > { %v2880_v0 = vpop.f32.mrf.mxu0 }
0x17ca   : > { %2885 = vmatmul.mubr.msk.bf16.vlgmr.msra.gmra.mxu1 %vm665_vm2, %v1998_v55 }
0x17cb   : > { %v1995_v56 = vpop.f32.mrf.mxu0  ;;  %2896 = vmatprep.mubr.msk.bf16.mxu1 %vm3024_vm1, %v3023_v10 }
0x17cc   : > { %v2628_v56 = vld [vmem:[%s3687_s12 + $0xf0] sm:$0xff] }
0x17cd   : > { %v2881_v57 = vpop.f32.mrf.mxu0 }
0x17ce   : > { %v2629_v57 = vld [vmem:[%s3687_s12 + $0xf8] sm:$0xff] }
0x17cf   : > { %v2091_v58 = vpop.f32.mrf.mxu0 }
0x17d0   : > { %v2092_v31 = vadd.f32 %v2091_v58, %v3203_v41  ;;  %v2339_v58 = vpack.c.bf16 %v2629_v57, %v2628_v56  ;;  %v2633_v56 = vld [vmem:[%s3690_s15] ss:$0 sm:$0xff] }
0x17d1   : > { %v2892_v59 = vpop.f32.mrf.mxu0 }
0x17d2   : > { %v2097_v48 = vsel %vm665_vm2, %v2092_v31, -inf  ;;  %v2627_v59 = vld [vmem:[%s3687_s12 + $0xe8] sm:$0xff] }
0x17d3   : > { %2098 = vmax.xlane.f32.xlu0 %v2097_v48  ;;  %v2094_v60 = vpop.f32.mrf.mxu0 }
0x17d4   : > { %v2624_v60 = vld [vmem:[%s3687_s12 + $0xd0] sm:$0xff] }
0x17d5   : > { %v2893_v61 = vpop.f32.mrf.mxu0 }
0x17d6   : > { %v2625_v61 = vld [vmem:[%s3687_s12 + $0xd8] sm:$0xff] }
0x17e9   : > { %2109 = vrot.lane.b32.xlu0 %v3428_v16, %s3708_s27 }
0x185c   : > { %v2099_v62 = vpop.xlane.xlu0 %2098 }
0x185d   : > { %v2100_v63 = vsub.f32 %v2092_v31, %v2099_v62  ;;  %v2626_v31 = vld [vmem:[%s3687_s12 + $0xe0] sm:$0xff]  ;;  %v2337_v62 = vpack.c.bf16 %v2625_v61, %v2624_v60 }
0x185e   : > { %v2338_v48 = vpack.c.bf16 %v2627_v59, %v2626_v31 }
0x185f   : > { %v2101_v1 = vmul.f32 1.442695, %v2100_v63  ;;  %v2622_v63 = vld [vmem:[%s3687_s12 + $0xc0] sm:$0xff] }
0x1860   : > { %v2110_v2 = vpop.permute.xlu0 %2109 }
0x1861   : > { %3003 = vpow2.f32 %v2101_v1  ;;  %v2115_v3 = vsel %vm729_vm4, %v2110_v2, 0  ;;  %v2623_v1 = vld [vmem:[%s3687_s12 + $0xc8] sm:$0xff] }
0x1862   : > { %2895 = vmatpush3.bf16.msra.mxu1 %v2115_v3  ;;  %v2336_v2 = vpack.c.bf16 %v2623_v1, %v2622_v63  ;;  %v2620_v3 = vld [vmem:[%s3687_s12 + $0xb0] sm:$0xff] }
0x1863   : > { %2906 = vmatprep.subr.bf16.mxu1 %v3023_v10 }
0x186e   : > { %v3004_v41 = vpop.eup %3003 }
0x186f   : > { %v2103_v4 = vsel %vm665_vm2, %v3004_v41, 0.0 }
0x1870   : > { %2104 = vadd.xlane.f32.xlu1 %v2103_v4 }
0x188a   : > { %v2040_v6 = vpop.f32.mrf.mxu1 }
0x188b   : > { %v2046_v7 = vadd.f32 %v2040_v6, %v1883_v5  ;;  %v2618_v5 = vld [vmem:[%s3687_s12 + $0xa0] sm:$0xff]  ;;  %v2619_v6 = vld [vmem:[%s3687_s12 + $0xa8] sm:$0xff] }
0x188c   : > { %v2886_v16 = vpop.f32.mrf.mxu1 }
0x188d   : > { %v2616_v16 = vld [vmem:[%s3687_s12 + $0x90] sm:$0xff] }
0x188e   : > { %v2043_v11 = vpop.f32.mrf.mxu1  ;;  %v2333_v9 = vpack.c.bf16 %v2617_v8, %v2616_v16 }
0x188f   : > { %v2614_v11 = vld [vmem:[%s3687_s12 + $0x80] sm:$0xff] }
0x1890   : > { %v2887_v13 = vpop.f32.mrf.mxu1 }
0x1891   : > { %v2332_v13 = vpack.c.bf16 %v2615_v12, %v2614_v11 }
0x18f9   : > { %v2105_v14 = vpop.xlane.xlu1 %2104 }
0x18fa   : > { %3005 = vrcp.f32 %v2105_v14  ;;  %v2611_v14 = vld [vmem:[%s3686_s11 + $0x1] ss:$0 sm:$0xff] }
0x1907   : > { %v3006_v15 = vpop.eup %3005 }
0x1908   : > { %v2107_v17 = vmul.f32 %v3006_v15, %v3004_v41  ;;  %v2621_v41 = vld [vmem:[%s3687_s12 + $0xb8] sm:$0xff] }
0x1909   : > { %v2335_v4 = vpack.c.bf16 %v2621_v41, %v2620_v3 }
0x190a   : > { %v2108_v18 = vpack.c.bf16 %v2107_v17, %v2107_v17 }
0x190c   : > { %2897 = vmatmul.mubr.msk.bf16.vlgmr.msra.gmra.mxu1 %vm665_vm2, %v2108_v18 }
0x190d   : > { %2910 = vmatprep.mubr.msk.bf16.mxu1 %vm3024_vm1, %v3023_v10 }
0x19cc   : > { %v2151_v19 = vpop.f32.mrf.mxu1 }
0x19cd   : > { %v2157_v20 = vpack.c.bf16 %v2151_v19, %v2151_v19 }
0x19ce   : > { %v2898_v21 = vpop.f32.mrf.mxu1 }
0x19cf   : > { %2903 = vmatmul.mubr.msk.bf16.vlgmr.msra.gmra.mxu0 %vm665_vm2, %v2157_v20 }
0x19d0   : > { %v2154_v23 = vpop.f32.mrf.mxu1  ;;  %2930 = vmatprep.mubr.msk.bf16.mxu0 %vm3024_vm1, %v3023_v10  ;;  %2915 = vmatpush3.bf16.msra.mxu0 %v2339_v58 }
0x19d1   : > { %2916 = vmatprep.subr.bf16.mxu0 %v3023_v10 }
0x19d2   : > { %v2899_v24 = vpop.f32.mrf.mxu1 }
0x19d4   : > { %2917 = vmatpush3.bf16.msra.mxu0 %v2338_v48 }
0x19d5   : > { %2918 = vmatprep.subr.bf16.mxu0 %v3023_v10 }
0x19d8   : > { %2919 = vmatpush3.bf16.msra.mxu0 %v2337_v62 }
0x19d9   : > { %2920 = vmatprep.subr.bf16.mxu0 %v3023_v10 }
0x19dc   : > { %2921 = vmatpush3.bf16.msra.mxu0 %v2336_v2 }
0x19dd   : > { %2922 = vmatprep.subr.bf16.mxu0 %v3023_v10 }
0x19e0   : > { %2923 = vmatpush3.bf16.msra.mxu0 %v2335_v4 }
0x19e1   : > { %2924 = vmatprep.subr.bf16.mxu0 %v3023_v10 }
0x1a8f   : > { %v2199_v25 = vpop.f32.mrf.mxu0 }
0x1a90   : > { %v2205_v26 = vadd.f32 %v2199_v25, %v2046_v7  ;;  %v2334_v7 = vpack.c.bf16 %v2619_v6, %v2618_v5 }
0x1a91   : > { %v2904_v28 = vpop.f32.mrf.mxu0 }
0x1a92   : > { %v2206_v30 = vadd.f32 %v2205_v26, %v3396_v52  ;;  %v2608_v52 = vld [vmem:[%s3685_s10 + $0x30] sm:$0xff]  ;;  %2925 = vmatpush3.bf16.msra.mxu0 %v2334_v7 }
0x1a93   : > { %v2202_v32 = vpop.f32.mrf.mxu0  ;;  %v2254_v42 = vpack.c.bf16 %v2609_v40, %v2608_v52  ;;  %2926 = vmatprep.subr.bf16.mxu0 %v3023_v10  ;;  %v2418_v52 = vld [vmem:[%s555_s21] sm:$0xff] }
0x1a94   : > { %v3549_v29 = vadd.f32 %v2601_v27, %v2206_v30  ;;  %v2631_v30 = vld [vmem:[%s3688_s13 + $0x1] ss:$0 sm:$0xff] }
0x1a95   : > { %v2905_v33 = vpop.f32.mrf.mxu0  ;;  %2907 = vmatpush3.bf16.msra.mxu1 %v2254_v42 }
0x1a96   : > { %v2220_v34 = vsel %vm569_vm0, %v3549_v29, 0.0  ;;  %2908 = vmatprep.subr.bf16.mxu1 %v3023_v10  ;;  %2927 = vmatpush3.bf16.msra.mxu0 %v2333_v9 }
0x1a97   : > { %2221 = vadd.xlane.f32.xlu1 %v2220_v34  ;;  %2928 = vmatprep.subr.bf16.mxu0 %v3023_v10 }
0x1a99   : > { %2909 = vmatpush3.bf16.msra.mxu1 %v2253_v44  ;;  %v2434_v44 = vld [vmem:[%s3691_s16 + $0x10] sm:$0xff] }
0x1a9a   : > { %2934 = vmatprep.subr.bf16.mxu1 %v3023_v10  ;;  %2929 = vmatpush3.bf16.msra.mxu0 %v2332_v13 }
0x1b20   : > { %v2222_v35 = vpop.xlane.xlu1 %2221 }
0x1b21   : > { %v2223_v36 = vmul.f32 0.03125, %v2222_v35 }
0x1b23   : > { %v2224_v37 = vsub.f32 %v3549_v29, %v2223_v36 }
0x1b25   : > { %v2225_v38 = vmul.f32 %v2224_v37, %v2224_v37 }
0x1b27   : > { %v2226_v39 = vsel %vm569_vm0, %v2225_v38, 0.0 }
0x1b28   : > { %2227 = vadd.xlane.f32.xlu1 %v2226_v39  ;;  %v3036_v39 = vmov 0  }
0x1b29   : > { %2964 = vset.pattern.permute.xlu0 %v3036_v39 }
0x1b2a   : > { %2421 = vperm.xlu0 %2964, %v2418_v52  }
0x1ba5   : > { %v2422_v58 = vpop.permute.xlu0 %2421 }
0x1bb1   : > { %v2228_v45 = vpop.xlane.xlu1 %2227 }
0x1bb2   : > { %v2229_v46 = vmul.f32 0.03125, %v2228_v45  ;;  %v2435_v45 = vld [vmem:[%s3691_s16 + $0x18] sm:$0xff] }
0x1bb4   : > { %v2230_v47 = vadd.f32 1e-05, %v2229_v46  ;;  %v2438_v46 = vpack.c.bf16 %v2435_v45, %v2434_v44 }
0x1bb6   : > { %3007 = vrsqrt.f32 %v2230_v47  ;;  %v2432_v47 = vld [vmem:[%s3691_s16] sm:$0xff] }
0x1bc3   : > { %v3008_v49 = vpop.eup %3007 }
0x1bc4   : > { %v2232_v51 = vmul.f32 %v3008_v49, %v2224_v37  ;;  %v2433_v49 = vld [vmem:[%s3691_s16 + $0x8] sm:$0xff] }
0x1bc6   : > { %v2239_v54 = vmul.f32 %v2604_v50, %v2232_v51  ;;  %v2437_v50 = vpack.c.bf16 %v2433_v49, %v2432_v47 }
0x1bc8   : > { %v2246_v55 = vadd.f32 %v2605_v53, %v2239_v54 }
0x1bca   : > { %v2252_v0 = vpack.c.bf16 %v2246_v55, %v2246_v55 }
0x1bcc   : > { %2911 = vmatmul.mubr.msk.bf16.vlgmr.msra.gmra.mxu1 %vm569_vm0, %v2252_v0  ;;  %v2632_v0 = vld [vmem:[%s3689_s14] ss:$0 sm:$0xff] }
0x1bcd   : > { %2938 = vmatprep.mubr.msk.bf16.mxu1 %vm3024_vm1, %v3023_v10  ;;  %2935 = vmatpush3.bf16.msra.mxu1 %v2438_v46 }
0x1bce   : > { %2936 = vmatprep.subr.bf16.mxu1 %v3023_v10 }
0x1bd1   : > { %2937 = vmatpush3.bf16.msra.mxu1 %v2437_v50 }
0x1c8c   : > { %v2300_v15 = vpop.f32.mrf.mxu1 }
0x1c8d   : > { %v2301_v17 = vadd.f32 %v2611_v14, %v2300_v15 }
0x1c8e   : > { %v2912_v18 = vpop.f32.mrf.mxu1 }
0x1c8f   : > { %v2613_v19 = vmul.f32 -1.702, %v2301_v17 }
0x1c90   : > { %v2303_v20 = vpop.f32.mrf.mxu1 }
0x1c91   : > { %v2308_v21 = vmul.f32 1.442695, %v2613_v19 }
0x1c92   : > { %v2913_v23 = vpop.f32.mrf.mxu1 }
0x1c93   : > { %3009 = vpow2.f32 %v2308_v21 }
0x1ca0   : > { %v3010_v24 = vpop.eup %3009 }
0x1ca1   : > { %v2310_v25 = vadd.f32 1.0, %v3010_v24 }
0x1ca3   : > { %3011 = vrcp.f32 %v2310_v25 }
0x1cb0   : > { %v3012_v26 = vpop.eup %3011 }
0x1cb1   : > { %v2313_v27 = vmul.f32 %v3012_v26, %v2301_v17 }
0x1cb3   : > { %v2331_v28 = vpack.c.bf16 %v2313_v27, %v2313_v27 }
0x1cb5   : > { %2931 = vmatmul.mubr.bf16.vlgmr.msra.gmra.mxu0 %v2331_v28 }
0x1d75   : > { %v2382_v32 = vpop.f32.mrf.mxu0 }
0x1d76   : > { %v2383_v33 = vadd.f32 %v2631_v30, %v2382_v32 }
0x1d77   : > { %v2932_v34 = vpop.f32.mrf.mxu0 }
0x1d78   : > { %v2388_v35 = vadd.f32 %v2383_v33, %v3549_v29 }
0x1d79   : > { %v2385_v36 = vpop.f32.mrf.mxu0 }
0x1d7a   : > { %v2391_v37 = vsel %vm569_vm0, %v2388_v35, 0.0 }
0x1d7b   : > { %2392 = vadd.xlane.f32.xlu1 %v2391_v37  ;;  %v2933_v38 = vpop.f32.mrf.mxu0 }
0x1e04   : > { %v2393_v40 = vpop.xlane.xlu1 %2392 }
0x1e05   : > { %v2394_v42 = vmul.f32 0.03125, %v2393_v40 }
0x1e07   : > { %v2395_v43 = vsub.f32 %v2388_v35, %v2394_v42 }
0x1e09   : > { %v2396_v22 = vmul.f32 %v2395_v43, %v2395_v43 }
0x1e0b   : > { %v2397_v29 = vsel %vm569_vm0, %v2396_v22, 0.0 }
0x1e0c   : > { %2398 = vadd.xlane.f32.xlu1 %v2397_v29 }
0x1e95   : > { %v2399_v51 = vpop.xlane.xlu1 %2398 }
0x1e96   : > { %v2400_v53 = vmul.f32 0.03125, %v2399_v51 }
0x1e98   : > { %v2401_v54 = vadd.f32 1e-05, %v2400_v53 }
0x1e9a   : > { %3013 = vrsqrt.f32 %v2401_v54 }
0x1ea7   : > { %v3014_v55 = vpop.eup %3013 }
0x1ea8   : > { %v2403_v10 = vmul.f32 %v3014_v55, %v2395_v43 }
0x1eaa   : > { %v2410_v57 = vmul.f32 %v2632_v0, %v2403_v10 }
0x1eac   : > { %v2417_v31 = vadd.f32 %v2633_v56, %v2410_v57 }
0x1eae   : > { %v2424_v59 = vmul.f32 %v2422_v58, %v2417_v31 }
0x1eb0   : > { %v2425_v48 = vsel %vm569_vm0, %v2424_v59, 0.0 }
0x1eb1   : > { %v2426_v60 = vrot.slane %v2425_v48, 4 }
0x1eb3   : > { %v2427_v61 = vadd.f32 %v2426_v60, %v2425_v48 }
0x1eb5   : > { %v2428_v62 = vrot.slane %v2427_v61, 2 }
0x1eb7   : > { %v2429_v63 = vadd.f32 %v2428_v62, %v2427_v61 }
0x1eb9   : > { %v2430_v1 = vrot.slane %v2429_v63, 1 }
0x1ebb   : > { %v2431_v2 = vadd.f32 %v2430_v1, %v2429_v63 }
0x1ebd   : > { %v2436_v3 = vpack.c.bf16 %v2431_v2, %v2431_v2 }
0x1ebf   : > { %2939 = vmatmul.mubr.msk.bf16.vlgmr.msra.gmra.mxu1 %vm569_vm0, %v2436_v3 }
0x1f7f   : > { %v2476_v41 = vpop.f32.mrf.mxu1 }
0x1f80   : > { %2483 = vst.msk [vmem:[%s558_s26] sm:$0x1] %vm2482_vm5, %v2476_v41 }
0x1f81   : > { %v2940_v4 = vpop.f32.mrf.mxu1 }
0x1f83   : > { %v2479_v5 = vpop.f32.mrf.mxu1 }
0x1f85   : > { %v2941_v6 = vpop.f32.mrf.mxu1 }
0x1f86 PF: > { %s27_s24 = sadd.s32 1, %s3021_s24  }
0x1f87   : > { %p24_p4 = scmp.ge.s32.totalorder %s27_s24, 4  }
0x1f89   :  { %26 = sbr.rel (!%p24_p4) target bundleno = 3 (0x3), region = 133 }

</bundles_post_ra>
